<compile_context>
chip_gen: v6e
topology: v6e:2x2x1
jax: 0.10.0
libtpu: 0.0.40
codegen_flags: <defaults>
</compile_context>

<pallas_src>
import functools

import numpy as np
import jax
import jax.numpy as jnp
from jax.experimental import pallas as pl
from jax.experimental.pallas import tpu as pltpu


_TAPS = ((-1, -1), (-1, 0), (-1, 1),
         (0, -1),  (0, 0),  (0, 1),
         (1, -1),  (1, 0),  (1, 1))


# -----------------------------------------------------------------------------
# Pallas kernels
# -----------------------------------------------------------------------------

def _conv3x3_kernel(x_ref, w_ref, b_ref, m_ref, o_ref, acc_ref, *, width, relu_input):
    """One (batch, Cout-tile, Cin-tile) grid step of a 3x3 same-padded conv.

    x_ref:   (1, HW, tci)  bf16 input activations (flattened spatial)
    w_ref:   (9, tci, tn)  bf16 weights, tap-major (ky*3 + kx)
    b_ref:   (1, tn)       f32 bias
    m_ref:   (9, HW, 1)    bf16 {0,1} border-validity masks (zero padding)
    o_ref:   (1, HW, tn)   bf16 output
    acc_ref: (HW, tn)      f32 accumulator scratch (lives across the k axis)
    """
    k = pl.program_id(2)

    @pl.when(k == 0)
    def _init():
        acc_ref[...] = jnp.broadcast_to(b_ref[...], acc_ref.shape)

    x = x_ref[0]                               # (HW, tci) bf16
    if relu_input:
        # ReLU commutes with the zero padding / shifting below (ReLU(0)=0).
        x = jnp.maximum(x, 0)

    acc = acc_ref[...]
    for t, (oy, ox) in enumerate(_TAPS):
        shift = oy * width + ox
        if oy == 0 and ox == 0:
            xt = x
        else:
            # xt[i] = x[i + shift]  (wrapped rows are killed by the mask)
            xt = jnp.roll(x, -shift, axis=0) * m_ref[t]
        acc = acc + jnp.dot(xt, w_ref[t], preferred_element_type=jnp.float32)
    acc_ref[...] = acc

    @pl.when(k == pl.num_programs(2) - 1)
    def _finalize():
        o_ref[0] = acc_ref[...].astype(o_ref.dtype)


def _maxpool_kernel(x_ref, o_ref, *, channels, relu_input):
    """2x2 stride-2 max pool (+ optional fused ReLU).

    x_ref: (1, H/2, 2, W/2, 2*C) -- row-major view of (1, H, W, C): the window's
           two rows live in the leading '2' dim, the two columns in the lane
           halves [0:C] and [C:2C].
    o_ref: (1, H/2, W/2, C)
    """
    C = channels
    top = jnp.maximum(x_ref[0, :, 0, :, pl.ds(0, C)], x_ref[0, :, 0, :, pl.ds(C, C)])
    bot = jnp.maximum(x_ref[0, :, 1, :, pl.ds(0, C)], x_ref[0, :, 1, :, pl.ds(C, C)])
    m = jnp.maximum(top, bot)
    if relu_input:
        # maxpool(relu(x)) == relu(maxpool(x))
        m = jnp.maximum(m, 0)
    o_ref[0] = m


# -----------------------------------------------------------------------------
# Wrappers
# -----------------------------------------------------------------------------

def _border_masks(height, width):
    idx = np.arange(height * width)
    hh, ww = idx // width, idx % width
    m = np.zeros((9, height * width, 1), np.float32)
    for t, (oy, ox) in enumerate(_TAPS):
        valid = ((hh + oy >= 0) & (hh + oy < height) &
                 (ww + ox >= 0) & (ww + ox < width))
        m[t, :, 0] = valid.astype(np.float32)
    return jnp.asarray(m, jnp.bfloat16)


def _pick_conv_tiles(hw, cin, cout, budget_bytes=12 * 1024 * 1024):
    """Largest (Cin, Cout) tiles whose estimated VMEM footprint fits the budget."""
    tci, tn = cin, cout

    def est(tci_, tn_):
        x_b = 2 * hw * tci_ * 2           # bf16 activation block, double-buffered
        w_b = 2 * 9 * tci_ * tn_ * 2      # bf16 weight block, double-buffered
        m_b = 2 * 9 * hw * 128 * 2        # masks (lane-padded), double-buffered
        acc = hw * tn_ * 4                # f32 accumulator scratch
        o_b = 2 * hw * tn_ * 2            # bf16 output block, double-buffered
        bias = 2 * 8 * tn_ * 4
        return x_b + w_b + m_b + acc + o_b + bias

    while est(tci, tn) > budget_bytes and max(tci, tn) > 128:
        if tci >= tn and tci > 128:
            tci //= 2
        else:
            tn //= 2
    return tci, tn


def conv3x3(x, w, b, *, relu_input):
    """3x3 conv, stride 1, zero padding 1, optional fused ReLU on the input.

    x: (N, H, W, Cin);  w: (3, 3, Cin, Cout) f32;  b: (Cout,) f32.
    Returns (N, H, W, Cout) bf16.
    """
    N, H, W, Cin = x.shape
    Cout = w.shape[-1]
    HW = H * W
    tci, tn = _pick_conv_tiles(HW, Cin, Cout)
    nk = Cin // tci
    nj = Cout // tn

    x2 = x.reshape(N, HW, Cin).astype(jnp.bfloat16)          # free row-major reshape
    w9 = w.reshape(9, Cin, Cout).astype(jnp.bfloat16)
    b2 = b.reshape(1, Cout).astype(jnp.float32)
    masks = _border_masks(H, W)

    flops = 2 * N * HW * 9 * Cin * Cout
    bytes_accessed = (2 * N * HW * Cin * nj + 2 * 9 * Cin * Cout * N
                      + 2 * N * HW * Cout + 4 * Cout)

    out = pl.pallas_call(
        functools.partial(_conv3x3_kernel, width=W, relu_input=relu_input),
        out_shape=jax.ShapeDtypeStruct((N, HW, Cout), jnp.bfloat16),
        grid=(N, nj, nk),
        in_specs=[
            pl.BlockSpec((1, HW, tci), lambda n, j, k: (n, 0, k)),
            pl.BlockSpec((9, tci, tn), lambda n, j, k: (0, k, j)),
            pl.BlockSpec((1, tn), lambda n, j, k: (0, j)),
            pl.BlockSpec((9, HW, 1), lambda n, j, k: (0, 0, 0)),
        ],
        out_specs=pl.BlockSpec((1, HW, tn), lambda n, j, k: (n, 0, j)),
        scratch_shapes=[pltpu.VMEM((HW, tn), jnp.float32)],
        compiler_params=pltpu.CompilerParams(
            dimension_semantics=("parallel", "parallel", "arbitrary"),
            vmem_limit_bytes=32 * 1024 * 1024),
        cost_estimate=pl.CostEstimate(flops=flops, transcendentals=0,
                                      bytes_accessed=bytes_accessed),
    )(x2, w9, b2, masks)
    return out.reshape(N, H, W, Cout)


def maxpool2x2(x, *, relu_input):
    """2x2 stride-2 max pool on (N, H, W, C), optional fused input ReLU."""
    N, H, W, C = x.shape
    Hh, Wh = H // 2, W // 2
    xr = x.reshape(N, Hh, 2, Wh, 2 * C)                      # free row-major view
    return pl.pallas_call(
        functools.partial(_maxpool_kernel, channels=C, relu_input=relu_input),
        out_shape=jax.ShapeDtypeStruct((N, Hh, Wh, C), x.dtype),
        grid=(N,),
        in_specs=[pl.BlockSpec((1, Hh, 2, Wh, 2 * C), lambda n: (n, 0, 0, 0, 0))],
        out_specs=pl.BlockSpec((1, Hh, Wh, C), lambda n: (n, 0, 0, 0)),
        compiler_params=pltpu.CompilerParams(dimension_semantics=("parallel",)),
    )(xr)


# -----------------------------------------------------------------------------
# VGG19 feature slices (torchvision features[0..28]), synthetic weights
# -----------------------------------------------------------------------------

_VGG_CONVS = [  # (torchvision features index, Cin, Cout)
    (0, 3, 64), (2, 64, 64), (5, 64, 128), (7, 128, 128), (10, 128, 256),
    (12, 256, 256), (14, 256, 256), (16, 256, 256), (19, 256, 512),
    (21, 512, 512), (23, 512, 512), (25, 512, 512), (28, 512, 512),
]


def init_vgg19_params(key):
    # TODO(synk): torchvision's pretrained VGG19 checkpoint cannot be loaded here
    # (no files / network); He-initialized weights with identical shapes are used.
    params = {}
    for idx, cin, cout in _VGG_CONVS:
        key, kw = jax.random.split(key)
        std = (2.0 / (9.0 * cin)) ** 0.5
        w = jax.random.normal(kw, (3, 3, cin, cout), jnp.float32) * std
        b = jnp.zeros((cout,), jnp.float32)
        params[idx] = (w, b)
    return params


def vgg19_slices(x, params):
    # slice1 = [Conv0]   (no trailing ReLU)
    h1 = conv3x3(x, *params[0], relu_input=False)
    # slice2 = [ReLU1, Conv2, ReLU3, MaxPool4, Conv5]
    t = conv3x3(h1, *params[2], relu_input=True)
    t = maxpool2x2(t, relu_input=True)
    h2 = conv3x3(t, *params[5], relu_input=False)
    # slice3 = [ReLU6, Conv7, ReLU8, MaxPool9, Conv10]
    t = conv3x3(h2, *params[7], relu_input=True)
    t = maxpool2x2(t, relu_input=True)
    h3 = conv3x3(t, *params[10], relu_input=False)
    # slice4 = [ReLU11, Conv12, ReLU13, Conv14, ReLU15, Conv16, ReLU17, MaxPool18, Conv19]
    t = conv3x3(h3, *params[12], relu_input=True)
    t = conv3x3(t, *params[14], relu_input=True)
    t = conv3x3(t, *params[16], relu_input=True)
    t = maxpool2x2(t, relu_input=True)
    h4 = conv3x3(t, *params[19], relu_input=False)
    # slice5 = [ReLU20, Conv21, ReLU22, Conv23, ReLU24, Conv25, ReLU26, MaxPool27, Conv28]
    t = conv3x3(h4, *params[21], relu_input=True)
    t = conv3x3(t, *params[23], relu_input=True)
    t = conv3x3(t, *params[25], relu_input=True)
    t = maxpool2x2(t, relu_input=True)
    h5 = conv3x3(t, *params[28], relu_input=False)
    return [h1, h2, h3, h4, h5]


def vgg19_forward(x_nchw, params):
    """Vgg19.forward: NCHW f32 image -> [h_relu1 .. h_relu5] as NCHW f32."""
    x = jnp.transpose(x_nchw, (0, 2, 3, 1)).astype(jnp.bfloat16)
    feats = vgg19_slices(x, params)
    return [jnp.transpose(f.astype(jnp.float32), (0, 3, 1, 2)) for f in feats]


# -----------------------------------------------------------------------------
# Self-test
# -----------------------------------------------------------------------------

def _conv3x3_reference(x, w, b):
    y = jax.lax.conv_general_dilated(
        x.astype(jnp.float32), w.astype(jnp.float32), window_strides=(1, 1),
        padding="SAME", dimension_numbers=("NHWC", "HWIO", "NHWC"))
    return y + b


if __name__ == "__main__":
    key = jax.random.PRNGKey(0)
    kx, kp, kc, kq, kd, kw = jax.random.split(key, 6)

    params = init_vgg19_params(kp)

    # --- unit checks of the two Pallas kernels against pure-JAX references ----
    # Small-Cin conv (first VGG layer shape).
    xc = jax.random.uniform(kc, (2, 16, 16, 3), jnp.float32).astype(jnp.bfloat16)
    w0, b0 = params[0]
    w0b = w0.astype(jnp.bfloat16)
    got = conv3x3(xc, w0, b0, relu_input=False)
    ref = _conv3x3_reference(xc.astype(jnp.float32), w0b, b0)
    assert float(jnp.max(jnp.abs(got.astype(jnp.float32) - ref))) < 0.05

    # Wider-channel conv with fused input ReLU (exercises the big-tile path).
    xd = jax.random.normal(kd, (2, 8, 8, 128), jnp.float32).astype(jnp.bfloat16)
    wd = (jax.random.normal(kw, (3, 3, 128, 128), jnp.float32)
          * (2.0 / (9.0 * 128)) ** 0.5)
    bd = jnp.zeros((128,), jnp.float32)
    gotd = conv3x3(xd, wd, bd, relu_input=True)
    refd = _conv3x3_reference(jnp.maximum(xd.astype(jnp.float32), 0.0),
                              wd.astype(jnp.bfloat16), bd)
    assert float(jnp.max(jnp.abs(gotd.astype(jnp.float32) - refd))) < 0.05

    # Max-pool with fused ReLU.
    xq = jax.random.uniform(kq, (2, 8, 8, 64), jnp.float32).astype(jnp.bfloat16)
    gotp = maxpool2x2(xq, relu_input=True)
    refp = jnp.max(xq.reshape(2, 4, 2, 4, 2, 64), axis=(2, 4))
    assert bool(jnp.all(gotp == refp))

    # --- full VGG19 slice forward (the PyTorch module's forward) --------------
    N, C, H, W = 2, 3, 32, 32
    x = jax.random.uniform(kx, (N, C, H, W), jnp.float32)
    feats = jax.jit(vgg19_forward)(x, params)
    jax.block_until_ready(feats)

    expected = [(N, 64, 32, 32), (N, 128, 16, 16), (N, 256, 8, 8),
                (N, 512, 4, 4), (N, 512, 2, 2)]
    assert [tuple(f.shape) for f in feats] == expected
    assert all(bool(jnp.all(jnp.isfinite(f))) for f in feats)
    print("KERNEL_OK")
</pallas_src>

<mosaic_0001>
module attributes {stable_mosaic.version = 11 : i64} {
  func.func @_conv3x3_kernel(%arg0: i32, %arg1: i32, %arg2: i32, %arg3: memref<1x256x3xbf16, #tpu.memory_space<vmem>>, %arg4: memref<9x3x64xbf16, #tpu.memory_space<vmem>>, %arg5: memref<1x64xf32, #tpu.memory_space<vmem>>, %arg6: memref<9x256x1xbf16, #tpu.memory_space<vmem>>, %arg7: memref<1x256x64xbf16, #tpu.memory_space<vmem>>, %arg8: memref<256x64xf32, #tpu.memory_space<vmem>>) attributes {dimension_semantics = [#tpu.dimension_semantics<parallel>, #tpu.dimension_semantics<parallel>, #tpu.dimension_semantics<arbitrary>], iteration_bounds = array<i64: 2, 1, 1>, scalar_prefetch = 0 : i64, scratch_operands = 1 : i64, tpu.core_type = #tpu.core_type<tc>, window_params = [{transform_indices = @transform_0, window_bounds = array<i64: 1, 256, 3>}, {transform_indices = @transform_1, window_bounds = array<i64: 9, 3, 64>}, {transform_indices = @transform_2, window_bounds = array<i64: 1, 64>}, {pipeline_mode = #tpu.pipeline_mode<synchronous>, transform_indices = @transform_3, window_bounds = array<i64: 9, 256, 1>}, {transform_indices = @transform_4, window_bounds = array<i64: 1, 256, 64>}]} {
    %c0_i32 = arith.constant 0 : i32
    %0 = arith.cmpi eq, %arg2, %c0_i32 : i32
    %1 = arith.extui %0 : i1 to i32
    %c0_i32_0 = arith.constant 0 : i32
    %2 = arith.cmpi ne, %1, %c0_i32_0 : i32
    scf.if %2 {
      %c0_60 = arith.constant 0 : index
      %c0_61 = arith.constant 0 : index
      %102 = vector.load %arg5[%c0_60, %c0_61] : memref<1x64xf32, #tpu.memory_space<vmem>>, vector<1x64xf32>
      %103 = vector.shape_cast %102 : vector<1x64xf32> to vector<1x64xf32>
      %104 = vector.broadcast %103 : vector<1x64xf32> to vector<256x64xf32>
      %c0_62 = arith.constant 0 : index
      %c0_63 = arith.constant 0 : index
      %105 = vector.load %arg8[%c0_62, %c0_63] : memref<256x64xf32, #tpu.memory_space<vmem>>, vector<256x64xf32>
      tpu.vector_store %arg8[%c0_62, %c0_63], %104 {strides = array<i32>} : memref<256x64xf32, #tpu.memory_space<vmem>>, vector<256x64xf32>,
    } else {
    }
    %c0 = arith.constant 0 : index
    %c0_1 = arith.constant 0 : index
    %c0_2 = arith.constant 0 : index
    %3 = vector.load %arg3[%c0, %c0_1, %c0_2] : memref<1x256x3xbf16, #tpu.memory_space<vmem>>, vector<1x256x3xbf16>
    %4 = vector.shape_cast %3 : vector<1x256x3xbf16> to vector<256x3xbf16>
    %c0_3 = arith.constant 0 : index
    %c0_4 = arith.constant 0 : index
    %5 = vector.load %arg8[%c0_3, %c0_4] : memref<256x64xf32, #tpu.memory_space<vmem>>, vector<256x64xf32>
    %6 = vector.extract_strided_slice %4 {offsets = [239, 0], sizes = [17, 3], strides = [1, 1]} : vector<256x3xbf16> to vector<17x3xbf16>
    %7 = vector.extract_strided_slice %4 {offsets = [0, 0], sizes = [239, 3], strides = [1, 1]} : vector<256x3xbf16> to vector<239x3xbf16>
    %8 = tpu.concatenate %6, %7 in 0 : vector<17x3xbf16>, vector<239x3xbf16> -> vector<256x3xbf16>
    %c0_5 = arith.constant 0 : index
    %c0_6 = arith.constant 0 : index
    %c0_7 = arith.constant 0 : index
    %9 = vector.load %arg6[%c0_5, %c0_6, %c0_7] : memref<9x256x1xbf16, #tpu.memory_space<vmem>>, vector<1x256x1xbf16>
    %10 = vector.shape_cast %9 : vector<1x256x1xbf16> to vector<256x1xbf16>
    %11 = vector.broadcast %10 : vector<256x1xbf16> to vector<256x3xbf16>
    %12 = arith.mulf %8, %11 : vector<256x3xbf16>
    %c0_8 = arith.constant 0 : index
    %c0_9 = arith.constant 0 : index
    %c0_10 = arith.constant 0 : index
    %13 = vector.load %arg4[%c0_8, %c0_9, %c0_10] : memref<9x3x64xbf16, #tpu.memory_space<vmem>>, vector<1x3x64xbf16>
    %14 = vector.shape_cast %13 : vector<1x3x64xbf16> to vector<3x64xbf16>
    %cst = arith.constant dense<0.000000e+00> : vector<256x64xf32>
    %15 = tpu.matmul %12, %14, %cst {dimension_numbers = #tpu.dot_dimension_numbers<[1], [0], [0], [1], [0, 0, 1, 1], [], []>} : vector<256x3xbf16>, vector<3x64xbf16>, vector<256x64xf32> -> vector<256x64xf32>
    %16 = arith.addf %5, %15 : vector<256x64xf32>
    %17 = vector.extract_strided_slice %4 {offsets = [240, 0], sizes = [16, 3], strides = [1, 1]} : vector<256x3xbf16> to vector<16x3xbf16>
    %18 = vector.extract_strided_slice %4 {offsets = [0, 0], sizes = [240, 3], strides = [1, 1]} : vector<256x3xbf16> to vector<240x3xbf16>
    %19 = tpu.concatenate %17, %18 in 0 : vector<16x3xbf16>, vector<240x3xbf16> -> vector<256x3xbf16>
    %c1 = arith.constant 1 : index
    %c0_11 = arith.constant 0 : index
    %c0_12 = arith.constant 0 : index
    %20 = vector.load %arg6[%c1, %c0_11, %c0_12] : memref<9x256x1xbf16, #tpu.memory_space<vmem>>, vector<1x256x1xbf16>
    %21 = vector.shape_cast %20 : vector<1x256x1xbf16> to vector<256x1xbf16>
    %22 = vector.broadcast %21 : vector<256x1xbf16> to vector<256x3xbf16>
    %23 = arith.mulf %19, %22 : vector<256x3xbf16>
    %c1_13 = arith.constant 1 : index
    %c0_14 = arith.constant 0 : index
    %c0_15 = arith.constant 0 : index
    %24 = vector.load %arg4[%c1_13, %c0_14, %c0_15] : memref<9x3x64xbf16, #tpu.memory_space<vmem>>, vector<1x3x64xbf16>
    %25 = vector.shape_cast %24 : vector<1x3x64xbf16> to vector<3x64xbf16>
    %cst_16 = arith.constant dense<0.000000e+00> : vector<256x64xf32>
    %26 = tpu.matmul %23, %25, %cst_16 {dimension_numbers = #tpu.dot_dimension_numbers<[1], [0], [0], [1], [0, 0, 1, 1], [], []>} : vector<256x3xbf16>, vector<3x64xbf16>, vector<256x64xf32> -> vector<256x64xf32>
    %27 = arith.addf %16, %26 : vector<256x64xf32>
    %28 = vector.extract_strided_slice %4 {offsets = [241, 0], sizes = [15, 3], strides = [1, 1]} : vector<256x3xbf16> to vector<15x3xbf16>
    %29 = vector.extract_strided_slice %4 {offsets = [0, 0], sizes = [241, 3], strides = [1, 1]} : vector<256x3xbf16> to vector<241x3xbf16>
    %30 = tpu.concatenate %28, %29 in 0 : vector<15x3xbf16>, vector<241x3xbf16> -> vector<256x3xbf16>
    %c2 = arith.constant 2 : index
    %c0_17 = arith.constant 0 : index
    %c0_18 = arith.constant 0 : index
    %31 = vector.load %arg6[%c2, %c0_17, %c0_18] : memref<9x256x1xbf16, #tpu.memory_space<vmem>>, vector<1x256x1xbf16>
    %32 = vector.shape_cast %31 : vector<1x256x1xbf16> to vector<256x1xbf16>
    %33 = vector.broadcast %32 : vector<256x1xbf16> to vector<256x3xbf16>
    %34 = arith.mulf %30, %33 : vector<256x3xbf16>
    %c2_19 = arith.constant 2 : index
    %c0_20 = arith.constant 0 : index
    %c0_21 = arith.constant 0 : index
    %35 = vector.load %arg4[%c2_19, %c0_20, %c0_21] : memref<9x3x64xbf16, #tpu.memory_space<vmem>>, vector<1x3x64xbf16>
    %36 = vector.shape_cast %35 : vector<1x3x64xbf16> to vector<3x64xbf16>
    %cst_22 = arith.constant dense<0.000000e+00> : vector<256x64xf32>
    %37 = tpu.matmul %34, %36, %cst_22 {dimension_numbers = #tpu.dot_dimension_numbers<[1], [0], [0], [1], [0, 0, 1, 1], [], []>} : vector<256x3xbf16>, vector<3x64xbf16>, vector<256x64xf32> -> vector<256x64xf32>
    %38 = arith.addf %27, %37 : vector<256x64xf32>
    %39 = vector.extract_strided_slice %4 {offsets = [255, 0], sizes = [1, 3], strides = [1, 1]} : vector<256x3xbf16> to vector<1x3xbf16>
    %40 = vector.extract_strided_slice %4 {offsets = [0, 0], sizes = [255, 3], strides = [1, 1]} : vector<256x3xbf16> to vector<255x3xbf16>
    %41 = tpu.concatenate %39, %40 in 0 : vector<1x3xbf16>, vector<255x3xbf16> -> vector<256x3xbf16>
    %c3 = arith.constant 3 : index
    %c0_23 = arith.constant 0 : index
    %c0_24 = arith.constant 0 : index
    %42 = vector.load %arg6[%c3, %c0_23, %c0_24] : memref<9x256x1xbf16, #tpu.memory_space<vmem>>, vector<1x256x1xbf16>
    %43 = vector.shape_cast %42 : vector<1x256x1xbf16> to vector<256x1xbf16>
    %44 = vector.broadcast %43 : vector<256x1xbf16> to vector<256x3xbf16>
    %45 = arith.mulf %41, %44 : vector<256x3xbf16>
    %c3_25 = arith.constant 3 : index
    %c0_26 = arith.constant 0 : index
    %c0_27 = arith.constant 0 : index
    %46 = vector.load %arg4[%c3_25, %c0_26, %c0_27] : memref<9x3x64xbf16, #tpu.memory_space<vmem>>, vector<1x3x64xbf16>
    %47 = vector.shape_cast %46 : vector<1x3x64xbf16> to vector<3x64xbf16>
    %cst_28 = arith.constant dense<0.000000e+00> : vector<256x64xf32>
    %48 = tpu.matmul %45, %47, %cst_28 {dimension_numbers = #tpu.dot_dimension_numbers<[1], [0], [0], [1], [0, 0, 1, 1], [], []>} : vector<256x3xbf16>, vector<3x64xbf16>, vector<256x64xf32> -> vector<256x64xf32>
    %49 = arith.addf %38, %48 : vector<256x64xf32>
    %c4 = arith.constant 4 : index
    %c0_29 = arith.constant 0 : index
    %c0_30 = arith.constant 0 : index
    %50 = vector.load %arg4[%c4, %c0_29, %c0_30] : memref<9x3x64xbf16, #tpu.memory_space<vmem>>, vector<1x3x64xbf16>
    %51 = vector.shape_cast %50 : vector<1x3x64xbf16> to vector<3x64xbf16>
    %cst_31 = arith.constant dense<0.000000e+00> : vector<256x64xf32>
    %52 = tpu.matmul %4, %51, %cst_31 {dimension_numbers = #tpu.dot_dimension_numbers<[1], [0], [0], [1], [0, 0, 1, 1], [], []>} : vector<256x3xbf16>, vector<3x64xbf16>, vector<256x64xf32> -> vector<256x64xf32>
    %53 = arith.addf %49, %52 : vector<256x64xf32>
    %54 = vector.extract_strided_slice %4 {offsets = [1, 0], sizes = [255, 3], strides = [1, 1]} : vector<256x3xbf16> to vector<255x3xbf16>
    %55 = vector.extract_strided_slice %4 {offsets = [0, 0], sizes = [1, 3], strides = [1, 1]} : vector<256x3xbf16> to vector<1x3xbf16>
    %56 = tpu.concatenate %54, %55 in 0 : vector<255x3xbf16>, vector<1x3xbf16> -> vector<256x3xbf16>
    %c5 = arith.constant 5 : index
    %c0_32 = arith.constant 0 : index
    %c0_33 = arith.constant 0 : index
    %57 = vector.load %arg6[%c5, %c0_32, %c0_33] : memref<9x256x1xbf16, #tpu.memory_space<vmem>>, vector<1x256x1xbf16>
    %58 = vector.shape_cast %57 : vector<1x256x1xbf16> to vector<256x1xbf16>
    %59 = vector.broadcast %58 : vector<256x1xbf16> to vector<256x3xbf16>
    %60 = arith.mulf %56, %59 : vector<256x3xbf16>
    %c5_34 = arith.constant 5 : index
    %c0_35 = arith.constant 0 : index
    %c0_36 = arith.constant 0 : index
    %61 = vector.load %arg4[%c5_34, %c0_35, %c0_36] : memref<9x3x64xbf16, #tpu.memory_space<vmem>>, vector<1x3x64xbf16>
    %62 = vector.shape_cast %61 : vector<1x3x64xbf16> to vector<3x64xbf16>
    %cst_37 = arith.constant dense<0.000000e+00> : vector<256x64xf32>
    %63 = tpu.matmul %60, %62, %cst_37 {dimension_numbers = #tpu.dot_dimension_numbers<[1], [0], [0], [1], [0, 0, 1, 1], [], []>} : vector<256x3xbf16>, vector<3x64xbf16>, vector<256x64xf32> -> vector<256x64xf32>
    %64 = arith.addf %53, %63 : vector<256x64xf32>
    %65 = vector.extract_strided_slice %4 {offsets = [15, 0], sizes = [241, 3], strides = [1, 1]} : vector<256x3xbf16> to vector<241x3xbf16>
    %66 = vector.extract_strided_slice %4 {offsets = [0, 0], sizes = [15, 3], strides = [1, 1]} : vector<256x3xbf16> to vector<15x3xbf16>
    %67 = tpu.concatenate %65, %66 in 0 : vector<241x3xbf16>, vector<15x3xbf16> -> vector<256x3xbf16>
    %c6 = arith.constant 6 : index
    %c0_38 = arith.constant 0 : index
    %c0_39 = arith.constant 0 : index
    %68 = vector.load %arg6[%c6, %c0_38, %c0_39] : memref<9x256x1xbf16, #tpu.memory_space<vmem>>, vector<1x256x1xbf16>
    %69 = vector.shape_cast %68 : vector<1x256x1xbf16> to vector<256x1xbf16>
    %70 = vector.broadcast %69 : vector<256x1xbf16> to vector<256x3xbf16>
    %71 = arith.mulf %67, %70 : vector<256x3xbf16>
    %c6_40 = arith.constant 6 : index
    %c0_41 = arith.constant 0 : index
    %c0_42 = arith.constant 0 : index
    %72 = vector.load %arg4[%c6_40, %c0_41, %c0_42] : memref<9x3x64xbf16, #tpu.memory_space<vmem>>, vector<1x3x64xbf16>
    %73 = vector.shape_cast %72 : vector<1x3x64xbf16> to vector<3x64xbf16>
    %cst_43 = arith.constant dense<0.000000e+00> : vector<256x64xf32>
    %74 = tpu.matmul %71, %73, %cst_43 {dimension_numbers = #tpu.dot_dimension_numbers<[1], [0], [0], [1], [0, 0, 1, 1], [], []>} : vector<256x3xbf16>, vector<3x64xbf16>, vector<256x64xf32> -> vector<256x64xf32>
    %75 = arith.addf %64, %74 : vector<256x64xf32>
    %76 = vector.extract_strided_slice %4 {offsets = [16, 0], sizes = [240, 3], strides = [1, 1]} : vector<256x3xbf16> to vector<240x3xbf16>
    %77 = vector.extract_strided_slice %4 {offsets = [0, 0], sizes = [16, 3], strides = [1, 1]} : vector<256x3xbf16> to vector<16x3xbf16>
    %78 = tpu.concatenate %76, %77 in 0 : vector<240x3xbf16>, vector<16x3xbf16> -> vector<256x3xbf16>
    %c7 = arith.constant 7 : index
    %c0_44 = arith.constant 0 : index
    %c0_45 = arith.constant 0 : index
    %79 = vector.load %arg6[%c7, %c0_44, %c0_45] : memref<9x256x1xbf16, #tpu.memory_space<vmem>>, vector<1x256x1xbf16>
    %80 = vector.shape_cast %79 : vector<1x256x1xbf16> to vector<256x1xbf16>
    %81 = vector.broadcast %80 : vector<256x1xbf16> to vector<256x3xbf16>
    %82 = arith.mulf %78, %81 : vector<256x3xbf16>
    %c7_46 = arith.constant 7 : index
    %c0_47 = arith.constant 0 : index
    %c0_48 = arith.constant 0 : index
    %83 = vector.load %arg4[%c7_46, %c0_47, %c0_48] : memref<9x3x64xbf16, #tpu.memory_space<vmem>>, vector<1x3x64xbf16>
    %84 = vector.shape_cast %83 : vector<1x3x64xbf16> to vector<3x64xbf16>
    %cst_49 = arith.constant dense<0.000000e+00> : vector<256x64xf32>
    %85 = tpu.matmul %82, %84, %cst_49 {dimension_numbers = #tpu.dot_dimension_numbers<[1], [0], [0], [1], [0, 0, 1, 1], [], []>} : vector<256x3xbf16>, vector<3x64xbf16>, vector<256x64xf32> -> vector<256x64xf32>
    %86 = arith.addf %75, %85 : vector<256x64xf32>
    %87 = vector.extract_strided_slice %4 {offsets = [17, 0], sizes = [239, 3], strides = [1, 1]} : vector<256x3xbf16> to vector<239x3xbf16>
    %88 = vector.extract_strided_slice %4 {offsets = [0, 0], sizes = [17, 3], strides = [1, 1]} : vector<256x3xbf16> to vector<17x3xbf16>
    %89 = tpu.concatenate %87, %88 in 0 : vector<239x3xbf16>, vector<17x3xbf16> -> vector<256x3xbf16>
    %c8 = arith.constant 8 : index
    %c0_50 = arith.constant 0 : index
    %c0_51 = arith.constant 0 : index
    %90 = vector.load %arg6[%c8, %c0_50, %c0_51] : memref<9x256x1xbf16, #tpu.memory_space<vmem>>, vector<1x256x1xbf16>
    %91 = vector.shape_cast %90 : vector<1x256x1xbf16> to vector<256x1xbf16>
    %92 = vector.broadcast %91 : vector<256x1xbf16> to vector<256x3xbf16>
    %93 = arith.mulf %89, %92 : vector<256x3xbf16>
    %c8_52 = arith.constant 8 : index
    %c0_53 = arith.constant 0 : index
    %c0_54 = arith.constant 0 : index
    %94 = vector.load %arg4[%c8_52, %c0_53, %c0_54] : memref<9x3x64xbf16, #tpu.memory_space<vmem>>, vector<1x3x64xbf16>
    %95 = vector.shape_cast %94 : vector<1x3x64xbf16> to vector<3x64xbf16>
    %cst_55 = arith.constant dense<0.000000e+00> : vector<256x64xf32>
    %96 = tpu.matmul %93, %95, %cst_55 {dimension_numbers = #tpu.dot_dimension_numbers<[1], [0], [0], [1], [0, 0, 1, 1], [], []>} : vector<256x3xbf16>, vector<3x64xbf16>, vector<256x64xf32> -> vector<256x64xf32>
    %97 = arith.addf %86, %96 : vector<256x64xf32>
    %c0_56 = arith.constant 0 : index
    %c0_57 = arith.constant 0 : index
    %98 = vector.load %arg8[%c0_56, %c0_57] : memref<256x64xf32, #tpu.memory_space<vmem>>, vector<256x64xf32>
    tpu.vector_store %arg8[%c0_56, %c0_57], %97 {strides = array<i32>} : memref<256x64xf32, #tpu.memory_space<vmem>>, vector<256x64xf32>,
    %c0_i32_58 = arith.constant 0 : i32
    %99 = arith.cmpi eq, %arg2, %c0_i32_58 : i32
    %100 = arith.extui %99 : i1 to i32
    %c0_i32_59 = arith.constant 0 : i32
    %101 = arith.cmpi ne, %100, %c0_i32_59 : i32
    scf.if %101 {
      %c0_60 = arith.constant 0 : index
      %c0_61 = arith.constant 0 : index
      %102 = vector.load %arg8[%c0_60, %c0_61] : memref<256x64xf32, #tpu.memory_space<vmem>>, vector<256x64xf32>
      %103 = arith.truncf %102 : vector<256x64xf32> to vector<256x64xbf16>
      %c0_62 = arith.constant 0 : index
      %c0_63 = arith.constant 0 : index
      %c0_64 = arith.constant 0 : index
      %104 = vector.load %arg7[%c0_62, %c0_63, %c0_64] : memref<1x256x64xbf16, #tpu.memory_space<vmem>>, vector<1x256x64xbf16>
      %105 = vector.shape_cast %104 : vector<1x256x64xbf16> to vector<256x64xbf16>
      %106 = vector.shape_cast %103 : vector<256x64xbf16> to vector<1x256x64xbf16>
      tpu.vector_store %arg7[%c0_62, %c0_63, %c0_64], %106 {strides = array<i32>} : memref<1x256x64xbf16, #tpu.memory_space<vmem>>, vector<1x256x64xbf16>,
    } else {
    }
    return
  }
  func.func @transform_0(%arg0: i32, %arg1: i32, %arg2: i32) -> (i32, i32, i32) {
    %c0_i32 = arith.constant 0 : i32
    %c0_i32_0 = arith.constant 0 : i32
    return %arg0, %c0_i32, %arg2 : i32, i32, i32
  }
  func.func @transform_1(%arg0: i32, %arg1: i32, %arg2: i32) -> (i32, i32, i32) {
    %c0_i32 = arith.constant 0 : i32
    %c0_i32_0 = arith.constant 0 : i32
    return %c0_i32, %arg2, %arg1 : i32, i32, i32
  }
  func.func @transform_2(%arg0: i32, %arg1: i32, %arg2: i32) -> (i32, i32) {
    %c0_i32 = arith.constant 0 : i32
    %c0_i32_0 = arith.constant 0 : i32
    return %c0_i32, %arg1 : i32, i32
  }
  func.func @transform_3(%arg0: i32, %arg1: i32, %arg2: i32) -> (i32, i32, i32) {
    %c0_i32 = arith.constant 0 : i32
    %c0_i32_0 = arith.constant 0 : i32
    %c0_i32_1 = arith.constant 0 : i32
    %c0_i32_2 = arith.constant 0 : i32
    return %c0_i32, %c0_i32_0, %c0_i32_1 : i32, i32, i32
  }
  func.func @transform_4(%arg0: i32, %arg1: i32, %arg2: i32) -> (i32, i32, i32) {
    %c0_i32 = arith.constant 0 : i32
    %c0_i32_0 = arith.constant 0 : i32
    return %arg0, %c0_i32, %arg1 : i32, i32, i32
  }
}

</mosaic_0001>

<bundles_post_ra>
// kernel: tpu_custom_call.1
= control target key start
LH: loop header
LB: loop body
LE: loop exit
PB: predicated region body
PF: predicated region fallthrough
CT: control target
= control target key end

     0   :  { %s8885_s15 = smov 0   ;;  %s8887_s16 = smov 0   ;;  %s11384_s0 = inlined_call_operand.vmem [shape: bf16[2,256,3], index: 0, kind: input, shape index: {}]   ;;  %s11385_s1 = inlined_call_operand.vmem [shape: bf16[9,3,64], index: 1, kind: input, shape index: {}]   ;;  %s11386_s2 = inlined_call_operand.vmem [shape: f32[1,64], index: 2, kind: input, shape index: {}]   ;;  %s11387_s3 = inlined_call_operand.vmem [shape: bf16[9,256,1], index: 3, kind: input, shape index: {}]   ;;  %s11388_s4 = inlined_call_operand.vmem [shape: bf16[2,256,64], index: 4, kind: output, shape index: {}]  }
   0x1   :  { %s8889_s17 = smov 0  }
   0x2 LB: > { %s33_s18 = sadd.s32 1, %s8851_s16  ;;  %p7680_p0 = scmp.ge.s32.totalorder %s8855_s17, 1  ;;  %s8855_s17 = sphi %s8889_s17, %s14_s17   ;;  %s8851_s16 = sphi %s8887_s16, %s11556_s16   ;;  %s8847_s15 = sphi %s8885_s15, %s11555_s15  }
   0x3   : > { %p35_p1 = scmp.ge.s32.totalorder %s33_s18, 2  ;;  %p210_p2 = scmp.lt.s32.totalorder %s8855_s17, 3 }
   0x5   : > { %s11558_s18 = smov (%p35_p1, %s33_s18), 0  ;;  %p211_p3 = pnand %p7680_p0, %p210_p2 }
   0x7   : > { %214 = sbr.rel (%p211_p3) target bundleno = 871 (0x367), region = 36 }
   0xc   : > { %v628_v0 = vld [vmem:[%s11387_s3 + $0x8] sm:$0xf]  ;;  %v626_v1 = vld [vmem:[%s11387_s3] sm:$0xf]  ;;  %v8857_v2 = vmov 0   ;;  %vm1205_vm0 = vcmask 1041408  }
   0xd   : > { %8782 = vset.pattern.permute.xlu1 %v8857_v2  ;;  %8781 = vset.pattern.permute.xlu0 %v8857_v2  ;;  %v629_v3 = vld [vmem:[%s11387_s3 + $0xc] sm:$0xf]  ;;  %v627_v4 = vld [vmem:[%s11387_s3 + $0x4] sm:$0xf]  ;;  %v631_v5 = vld [vmem:[%s11387_s3 + $0x14] sm:$0xf] }
   0xe   : > { %684 = vperm.xlu1 %8782, %v628_v0   ;;  %660 = vperm.xlu0 %8781, %v626_v1   ;;  %v630_v6 = vld [vmem:[%s11387_s3 + $0x10] sm:$0xf]  ;;  %v633_v7 = vld [vmem:[%s11387_s3 + $0x1c] sm:$0xf]  ;;  %v632_v8 = vld [vmem:[%s11387_s3 + $0x18] sm:$0xf] }
   0xf   : > { %v635_v9 = vld [vmem:[%s11387_s3 + $0x24] sm:$0xf]  ;;  %v634_v10 = vld [vmem:[%s11387_s3 + $0x20] sm:$0xf]  ;;  %v637_v11 = vld [vmem:[%s11387_s3 + $0x2c] sm:$0xf] }
  0x10   : > { %v636_v12 = vld [vmem:[%s11387_s3 + $0x28] sm:$0xf]  ;;  %vm623_vm1 = vcmask 1040384   ;;  %v639_v13 = vld [vmem:[%s11387_s3 + $0x34] sm:$0xf]  ;;  %v8858_v15 = vmov 65535  }
  0x11   : > { %v638_v14 = vld [vmem:[%s11387_s3 + $0x30] sm:$0xf]  ;;  %v1206_v16 = vsel %vm623_vm1, 4294967295, %v8858_v15  ;;  %v1154_v18 = vld [vmem:[%s11385_s1] sm:$0x3]  ;;  %p252_p4 = scmp.lt.s32.totalorder %s8847_s15, 1 }
  0x12   : > { %696 = vperm.xlu1 %8782, %v629_v3   ;;  %672 = vperm.xlu0 %8781, %v627_v4   ;;  %v8948_v17 = vsel %vm1205_vm0, %v1206_v16, 0  ;;  %v641_v20 = vld [vmem:[%s11387_s3 + $0x3c] sm:$0xf]  ;;  %v640_v21 = vld [vmem:[%s11387_s3 + $0x38] sm:$0xf]  ;;  %v666_v16 = vlaneseq  ;;  %vm1155_vm5 = vcmask 23552  }
  0x13   : > { %v1209_v19 = vand.u32 %v8948_v17, %v1154_v18  ;;  %v643_v22 = vld [vmem:[%s11387_s3 + $0x44] sm:$0xf]  ;;  %v642_v23 = vld [vmem:[%s11387_s3 + $0x40] sm:$0xf]  ;;  %v645_v24 = vld [vmem:[%s11387_s3 + $0x4c] sm:$0xf] }
  0x14   : > { %v644_v25 = vld [vmem:[%s11387_s3 + $0x48] sm:$0xf]  ;;  %v647_v26 = vld [vmem:[%s11387_s3 + $0x54] sm:$0xf]  ;;  %v646_v27 = vld [vmem:[%s11387_s3 + $0x50] sm:$0xf] }
  0x15   : > { %8446 = vmatprep.subr.bf16.mxu0 %v1209_v19  ;;  %8752 = vmatprep.subr.bf16.mxu1 %v1209_v19  ;;  %v649_v28 = vld [vmem:[%s11387_s3 + $0x5c] sm:$0xf]  ;;  %v648_v29 = vld [vmem:[%s11387_s3 + $0x58] sm:$0xf]  ;;  %v651_v30 = vld [vmem:[%s11387_s3 + $0x64] sm:$0xf] }
  0x16   : > { %720 = vperm.xlu1 %8782, %v631_v5   ;;  %708 = vperm.xlu0 %8781, %v630_v6   ;;  %v650_v31 = vld [vmem:[%s11387_s3 + $0x60] sm:$0xf]  ;;  %v653_v32 = vld [vmem:[%s11387_s3 + $0x6c] sm:$0xf]  ;;  %v652_v33 = vld [vmem:[%s11387_s3 + $0x68] sm:$0xf] }
  0x17   : > { %8447 = vmatpush3.bf16.msra.mxu0 %v1209_v19  ;;  %8753 = vmatpush3.bf16.msra.mxu1 %v1209_v19  ;;  %v655_v34 = vld [vmem:[%s11387_s3 + $0x74] sm:$0xf]  ;;  %v654_v35 = vld [vmem:[%s11387_s3 + $0x70] sm:$0xf]  ;;  %v657_v36 = vld [vmem:[%s11387_s3 + $0x7c] sm:$0xf] }
  0x18   : > { %v656_v37 = vld [vmem:[%s11387_s3 + $0x78] sm:$0xf]  ;;  %v7737_v38 = vld [vmem:[%s11387_s3 + $0x84] sm:$0xf]  ;;  %v7736_v39 = vld [vmem:[%s11387_s3 + $0x80] sm:$0xf] }
  0x19   : > { %v7784_v40 = vld [vmem:[%s11385_s1 + $0x2] sm:$0x3]  ;;  %v7739_v41 = vld [vmem:[%s11387_s3 + $0x8c] sm:$0xf]  ;;  %v7738_v42 = vld [vmem:[%s11387_s3 + $0x88] sm:$0xf] }
  0x1a   : > { %744 = vperm.xlu1 %8782, %v633_v7   ;;  %732 = vperm.xlu0 %8781, %v632_v8   ;;  %v9024_v43 = vand.u32 %v7784_v40, %v8948_v17  ;;  %v7741_v44 = vld [vmem:[%s11387_s3 + $0x94] sm:$0xf]  ;;  %v7740_v45 = vld [vmem:[%s11387_s3 + $0x90] sm:$0xf]  ;;  %v7743_v46 = vld [vmem:[%s11387_s3 + $0x9c] sm:$0xf] }
  0x1b   : > { %v7742_v47 = vld [vmem:[%s11387_s3 + $0x98] sm:$0xf]  ;;  %v7745_v48 = vld [vmem:[%s11387_s3 + $0xa4] sm:$0xf]  ;;  %v7744_v49 = vld [vmem:[%s11387_s3 + $0xa0] sm:$0xf] }
  0x1c   : > { %8480 = vmatprep.subr.bf16.mxu1 %v9024_v43  ;;  %v7747_v50 = vld [vmem:[%s11387_s3 + $0xac] sm:$0xf]  ;;  %v7746_v51 = vld [vmem:[%s11387_s3 + $0xa8] sm:$0xf]  ;;  %v7749_v52 = vld [vmem:[%s11387_s3 + $0xb4] sm:$0xf] }
  0x1d   : > { %v7748_v53 = vld [vmem:[%s11387_s3 + $0xb0] sm:$0xf]  ;;  %v7751_v54 = vld [vmem:[%s11387_s3 + $0xbc] sm:$0xf]  ;;  %v7750_v55 = vld [vmem:[%s11387_s3 + $0xb8] sm:$0xf] }
  0x1e   : > { %768 = vperm.xlu1 %8782, %v635_v9   ;;  %756 = vperm.xlu0 %8781, %v634_v10   ;;  %v7753_v56 = vld [vmem:[%s11387_s3 + $0xc4] sm:$0xf]  ;;  %v7752_v57 = vld [vmem:[%s11387_s3 + $0xc0] sm:$0xf]  ;;  %v7755_v58 = vld [vmem:[%s11387_s3 + $0xcc] sm:$0xf] }
  0x1f   : > { %v7754_v59 = vld [vmem:[%s11387_s3 + $0xc8] sm:$0xf]  ;;  %s11560_s15 = smov (!%p252_p4, %s8847_s15), 1  ;;  %v7757_v60 = vld [vmem:[%s11387_s3 + $0xd4] sm:$0xf]  ;;  %vm290_vm6 = vcmask 523264  }
  0x20   : > { %v7756_v61 = vld [vmem:[%s11387_s3 + $0xd0] sm:$0xf]  ;;  %s8259_s21 = sshll.u32 %s11560_s15, 7  ;;  %v7759_v62 = vld [vmem:[%s11387_s3 + $0xdc] sm:$0xf]  ;;  %vm2271_vm8 = vcmask 1047552  }
  0x21   : > { %v7758_v63 = vld [vmem:[%s11387_s3 + $0xd8] sm:$0xf]  ;;  %s9097_s28 = scalar_lea.vmem %s11384_s0, %s8259_s21  ;;  %v7761_v0 = vld [vmem:[%s11387_s3 + $0xe4] sm:$0xf]  ;;  %v7760_v1 = vld [vmem:[%s11387_s3 + $0xe0] sm:$0xf]  ;;  %s11253_s25 = scalar_lea.vmem %s11388_s4, %s8259_s21 }
  0x22   : > { %792 = vperm.xlu1 %8782, %v637_v11   ;;  %780 = vperm.xlu0 %8781, %v636_v12   ;;  %v323_v2 = vld [vmem:[%s9097_s28] sm:$0xf]  ;;  %v324_v3 = vld [vmem:[%s9097_s28 + $0x4] sm:$0xf]  ;;  %v9108_v4 = vld [vmem:[%s9097_s28 + $0x7c] sm:$0xf] }
  0x23   : > { %v9111_v5 = vld [vmem:[%s9097_s28 + $0x74] sm:$0xf]  ;;  %v9114_v6 = vld [vmem:[%s9097_s28 + $0x78] sm:$0xf]  ;;  %v325_v7 = vld [vmem:[%s9097_s28 + $0x8] sm:$0xf]  ;;  %v9124_v11 = vcombine.low %v323_v2, %v324_v3  ;;  %v7687_v12 = vcombine.low %v9108_v4, %v9108_v4 }
  0x24   : > { %v326_v8 = vld [vmem:[%s9097_s28 + $0xc] sm:$0xf]  ;;  %v7762_v10 = vld [vmem:[%s11387_s3 + $0xe8] sm:$0xf]  ;;  %v7765_v19 = vld [vmem:[%s11387_s3 + $0xf4] sm:$0xf] }
  0x25   : > { %v7763_v9 = vld [vmem:[%s11387_s3 + $0xec] sm:$0xf]  ;;  %11445 = vst [vmem:[#allocation3_spill] sm:$0xff] %v9124_v11  ;;  %v9130_v18 = vcombine.low %v325_v7, %v326_v8  ;;  %vm488_vm2 = vsmask.f32 256  ;;  %vm7524_vm10 = vcmask 519168  }
  0x26   : > { %816 = vperm.xlu1 %8782, %v639_v13   ;;  %804 = vperm.xlu0 %8781, %v638_v14   ;;  %v7686_v13 = vcombine.low %v9111_v5, %v9114_v6  ;;  %v8859_v14 = vmov 839922192   ;;  %vm9175_vm3 = vmand %vm623_vm1, %vm488_vm2  ;;  %vm395_vm4 = vsmask.f32 4352  ;;  %v333_v3 = vld [vmem:[%s9097_s28 + $0x28] sm:$0xf] }
  0x27   : > { %v664_v15 = vunpack.c.l.s4 %v8859_v14  ;;  %v334_v7 = vld [vmem:[%s9097_s28 + $0x2c] sm:$0xf]  ;;  %v7850_v14 = vld [vmem:[%s11385_s1 + $0x4] sm:$0x3]  ;;  %vm2205_vm7 = vsmask.f32 7424 }
  0x28   : > { %vm9741_vm9 = vmand %vm2271_vm8, %vm2205_vm7 }
  0x2a   : > { %840 = vperm.xlu1 %8782, %v641_v20   ;;  %828 = vperm.xlu0 %8781, %v640_v21   ;;  %v7764_v20 = vld [vmem:[%s11387_s3 + $0xf0] sm:$0xf]  ;;  %v490_v21 = vshrl.u32 %v9124_v11, 16 }
  0x2e   : > { %864 = vperm.xlu1 %8782, %v643_v22   ;;  %852 = vperm.xlu0 %8781, %v642_v23   ;;  %v327_v22 = vld [vmem:[%s9097_s28 + $0x10] sm:$0xf]  ;;  %v405_v23 = vshrl.u32 %v7687_v12, 16 }
  0x32   : > { %888 = vperm.xlu1 %8782, %v645_v24   ;;  %876 = vperm.xlu0 %8781, %v644_v25   ;;  %v397_v24 = vshrl.u32 %v7686_v13, 16  ;;  %v400_v25 = vshll.u32 %v7686_v13, 16 }
  0x36   : > { %912 = vperm.xlu1 %8782, %v647_v26   ;;  %900 = vperm.xlu0 %8781, %v646_v27   ;;  %v408_v26 = vshll.u32 %v7687_v12, 16  ;;  %v328_v27 = vld [vmem:[%s9097_s28 + $0x14] sm:$0xf] }
  0x38   : > { %v410_v40 = vrot.slane %v408_v26, 4 }
  0x3a   : > { %936 = vperm.xlu1 %8782, %v649_v28   ;;  %924 = vperm.xlu0 %8781, %v648_v29   ;;  %v665_v28 = vunpack.c.0.s8 %v664_v15  ;;  %v667_v29 = vshrl.u32 %v666_v16, 7 }
  0x3e   : > { %960 = vperm.xlu1 %8782, %v651_v30   ;;  %948 = vperm.xlu0 %8781, %v650_v31   ;;  %v497_v30 = vshrl.u32 %v9130_v18, 16  ;;  %v7767_v31 = vld [vmem:[%s11387_s3 + $0xfc] sm:$0xf] }
  0x42   : > { %984 = vperm.xlu1 %8782, %v653_v32   ;;  %972 = vperm.xlu0 %8781, %v652_v33   ;;  %v7766_v32 = vld [vmem:[%s11387_s3 + $0xf8] sm:$0xf]  ;;  %v492_v33 = vrot.slane %v490_v21, 7 }
  0x46   : > { %1008 = vperm.xlu1 %8782, %v655_v34   ;;  %996 = vperm.xlu0 %8781, %v654_v35   ;;  %v493_v34 = vshll.u32 %v9124_v11, 16  ;;  %v9151_v35 = vcombine.low %v327_v22, %v328_v27 }
  0x48   : > { %v508_v2 = vshll.u32 %v9151_v35, 16 }
  0x4a   : > { %1032 = vperm.xlu1 %8782, %v657_v36   ;;  %1020 = vperm.xlu0 %8781, %v656_v37   ;;  %v329_v36 = vld [vmem:[%s9097_s28 + $0x18] sm:$0xf]  ;;  %v407_v37 = vrot.slane %v405_v23, 3 }
  0x4e   : > { %1468 = vperm.xlu1 %8782, %v7737_v38   ;;  %1456 = vperm.xlu0 %8781, %v7736_v39   ;;  %v399_v38 = vrot.slane %v397_v24, 3  ;;  %v402_v39 = vrot.slane %v400_v25, 4  ;;  %v9219_v25 = vcombine.low %v333_v3, %v334_v7 }
  0x50   : > { %11452 = vst [vmem:[#allocation8_spill] sm:$0xff] %v9219_v25  ;;  %v532_v3 = vshll.u32 %v9219_v25, 16 }
  0x52   : > { %1492 = vperm.xlu1 %8782, %v7739_v41   ;;  %1480 = vperm.xlu0 %8781, %v7738_v42   ;;  %v330_v41 = vld [vmem:[%s9097_s28 + $0x1c] sm:$0xf]  ;;  %v9155_v42 = vsub.s32 %v665_v28, %v667_v29 }
  0x56   : > { %1516 = vperm.xlu1 %8782, %v7741_v44   ;;  %1504 = vperm.xlu0 %8781, %v7740_v45  }
  0x5a   : > { %1540 = vperm.xlu1 %8782, %v7743_v46   ;;  %1528 = vperm.xlu0 %8781, %v7742_v47   ;;  %v9159_v46 = vrot.slane %v497_v30, 7  ;;  %v500_v47 = vshll.u32 %v9130_v18, 16 }
  0x5e   : > { %1564 = vperm.xlu1 %8782, %v7745_v48   ;;  %1552 = vperm.xlu0 %8781, %v7744_v49   ;;  %v495_v48 = vor.u32 %v493_v34, %v492_v33  ;;  %v7803_v49 = vld [vmem:[%s11387_s3 + $0x104] sm:$0xf] }
  0x60   : > { %v9198_v8 = vsel %vm9175_vm3, %v407_v37, %v495_v48 }
  0x62   : > { %1588 = vperm.xlu1 %8782, %v7747_v50   ;;  %1576 = vperm.xlu0 %8781, %v7746_v51   ;;  %v7802_v50 = vld [vmem:[%s11387_s3 + $0x100] sm:$0xf]  ;;  %v505_v51 = vshrl.u32 %v9151_v35, 16 }
  0x66   : > { %1612 = vperm.xlu1 %8782, %v7749_v52   ;;  %1600 = vperm.xlu0 %8781, %v7748_v53   ;;  %v9171_v52 = vcombine.low %v329_v36, %v330_v41  ;;  %v7806_v41 = vld [vmem:[%s11387_s3 + $0x110] sm:$0xf] }
  0x68   : > { %11446 = vst [vmem:[#allocation4_spill] sm:$0xff] %v9171_v52  ;;  %v513_v12 = vshrl.u32 %v9171_v52, 16  ;;  %v516_v29 = vshll.u32 %v9171_v52, 16 }
  0x6a   : > { %1636 = vperm.xlu1 %8782, %v7751_v54   ;;  %1624 = vperm.xlu0 %8781, %v7750_v55   ;;  %v9179_v54 = vor.u32 %v402_v39, %v399_v38  ;;  %v411_v55 = vor.u32 %v410_v40, %v407_v37  ;;  %v7807_v37 = vld [vmem:[%s11387_s3 + $0x114] sm:$0xf]  ;;  %v515_v38 = vrot.slane %v513_v12, 7 }
  0x6c   : > { %11449 = vst [vmem:[#allocation5_spill] sm:$0xff] %v9179_v54  ;;  %v9213_v16 = vsel %vm395_vm4, %v9179_v54, %v411_v55 }
  0x6d   : > { %11451 = vst [vmem:[#allocation7_spill] sm:$0xff] %v9213_v16 }
  0x6e   : > { %1660 = vperm.xlu1 %8782, %v7753_v56   ;;  %1648 = vperm.xlu0 %8781, %v7752_v57   ;;  %v331_v56 = vld [vmem:[%s9097_s28 + $0x20] sm:$0xf]  ;;  %v332_v57 = vld [vmem:[%s9097_s28 + $0x24] sm:$0xf] }
  0x6f   : > { %v9206_v13 = vcombine.low %v331_v56, %v332_v57  ;;  %v518_v57 = vor.u32 %v516_v29, %v515_v38 }
  0x71   : > { %11450 = vst [vmem:[#allocation6_spill] sm:$0xff] %v9206_v13  ;;  %v521_v39 = vshrl.u32 %v9206_v13, 16  ;;  %v524_v55 = vshll.u32 %v9206_v13, 16 }
  0x72   : > { %1684 = vperm.xlu1 %8782, %v7755_v58   ;;  %1672 = vperm.xlu0 %8781, %v7754_v59  }
  0x76   : > { %1708 = vperm.xlu1 %8782, %v7757_v60   ;;  %1696 = vperm.xlu0 %8781, %v7756_v61   ;;  %v502_v61 = vor.u32 %v500_v47, %v9159_v46 }
  0x78   : > { %v9217_v24 = vsel %vm488_vm2, %v492_v33, %v502_v61 }
  0x7a   : > { %1732 = vperm.xlu1 %8782, %v7759_v62   ;;  %1720 = vperm.xlu0 %8781, %v7758_v63   ;;  %v7805_v62 = vld [vmem:[%s11387_s3 + $0x10c] sm:$0xf] }
  0x7e   : > { %1756 = vperm.xlu1 %8782, %v7761_v0   ;;  %1744 = vperm.xlu0 %8781, %v7760_v1  }
  0x82   : > { %1780 = vperm.xlu1 %8782, %v7763_v9   ;;  %1768 = vperm.xlu0 %8781, %v7762_v10   ;;  %v7804_v9 = vld [vmem:[%s11387_s3 + $0x108] sm:$0xf]  ;;  %v507_v10 = vrot.slane %v505_v51, 7 }
  0x84   : > { %v510_v33 = vor.u32 %v508_v2, %v507_v10 }
  0x86   : > { %1804 = vperm.xlu1 %8782, %v7765_v19   ;;  %1792 = vperm.xlu0 %8781, %v7764_v20   ;;  %v2854_v20 = vand.u32 %v7850_v14, %v8948_v17  ;;  %v9249_v56 = vsel %vm488_vm2, %v9159_v46, %v510_v33  ;;  %v7808_v46 = vld [vmem:[%s11387_s3 + $0x118] sm:$0xf] }
  0x88   : > { %8514 = vmatprep.subr.bf16.mxu0 %v2854_v20 }
  0x89   : > { %v685_v44 = vpop.permute.xlu1 %684  ;;  %v661_v45 = vpop.permute.xlu0 %660 }
  0x8a   : > { %1828 = vperm.xlu1 %8782, %v7767_v31   ;;  %1816 = vperm.xlu0 %8781, %v7766_v32   ;;  %v693_v58 = vrot.slane %v685_v44, %v9155_v42  ;;  %v669_v63 = vrot.slane %v661_v45, %v9155_v42  ;;  %v335_v31 = vld [vmem:[%s9097_s28 + $0x30] sm:$0xf]  ;;  %v336_v32 = vld [vmem:[%s9097_s28 + $0x34] sm:$0xf] }
  0x8b   : > { %v9240_v48 = vcombine.low %v335_v31, %v336_v32  ;;  %v340_v31 = vld [vmem:[%s9097_s28 + $0x44] sm:$0xf] }
  0x8d   : > { %v697_v59 = vpop.permute.xlu1 %696  ;;  %v673_v60 = vpop.permute.xlu0 %672  ;;  %11453 = vst [vmem:[#allocation9_spill] sm:$0xff] %v9240_v48  ;;  %v11397_v33 = vshll.u32 %v9240_v48, 16 }
  0x8e   : > { %v705_v0 = vrot.slane %v697_v59, %v9155_v42  ;;  %v681_v1 = vrot.slane %v673_v60, %v9155_v42  ;;  %2321 = vperm.xlu1 %8782, %v7803_v49   ;;  %2309 = vperm.xlu0 %8781, %v7802_v50   ;;  %v523_v59 = vrot.slane %v521_v39, 7  ;;  %v11409_v60 = vshrl.u32 %v9219_v25, 16 }
  0x90   : > { %v7704_v15 = vcombine.low %v693_v58, %v705_v0  ;;  %v7703_v19 = vcombine.low %v669_v63, %v681_v1  ;;  %v7809_v58 = vld [vmem:[%s11387_s3 + $0x11c] sm:$0xf] }
  0x91   : > { %v721_v22 = vpop.permute.xlu1 %720  ;;  %v709_v23 = vpop.permute.xlu0 %708  ;;  %v338_v63 = vld [vmem:[%s9097_s28 + $0x3c] sm:$0xf] }
  0x92   : > { %v1139_v26 = vmul.bf16 %v7704_v15, %v9198_v8  ;;  %v729_v27 = vrot.slane %v721_v22, %v9155_v42  ;;  %v717_v28 = vrot.slane %v709_v23, %v9155_v42  ;;  %2345 = vperm.xlu1 %8782, %v7805_v62   ;;  %2333 = vperm.xlu0 %8781, %v7804_v9   ;;  %v337_v62 = vld [vmem:[%s9097_s28 + $0x38] sm:$0xf]  ;;  %v11394_v15 = vshrl.u32 %v9240_v48, 16  ;;  %v7811_v22 = vld [vmem:[%s11387_s3 + $0x124] sm:$0xf] }
  0x93   : > { %v1138_v36 = vmul.bf16 %v7703_v19, %v9213_v16  ;;  %v9271_v19 = vsel %vm488_vm2, %v507_v10, %v518_v57  ;;  %v531_v23 = vrot.slane %v11409_v60, 7  ;;  %v7810_v10 = vld [vmem:[%s11387_s3 + $0x120] sm:$0xf]  ;;  %v7813_v57 = vld [vmem:[%s11387_s3 + $0x12c] sm:$0xf] }
  0x94   : > { %v7705_v40 = vcombine.low %v717_v28, %v729_v27  ;;  %v339_v28 = vld [vmem:[%s9097_s28 + $0x40] sm:$0xf] }
  0x95   : > { %8448 = vmatprep.mubr.msk.bf16.mxu0 %vm1155_vm5, %v1138_v36  ;;  %v745_v44 = vpop.permute.xlu1 %744  ;;  %v733_v45 = vpop.permute.xlu0 %732 }
  0x96   : > { %v1140_v49 = vmul.bf16 %v7705_v40, %v9217_v24  ;;  %v753_v50 = vrot.slane %v745_v44, %v9155_v42  ;;  %v741_v53 = vrot.slane %v733_v45, %v9155_v42  ;;  %8449 = vmatmul.mubr.msk.bf16.vlgmr.msra.gmra.mxu0 %vm1155_vm5, %v1139_v26  ;;  %2369 = vperm.xlu1 %8782, %v7807_v37   ;;  %v539_v44 = vrot.slane %v11394_v15, 7  ;;  %v341_v45 = vld [vmem:[%s9097_s28 + $0x48] sm:$0xf] }
  0x97   : > { %2357 = vperm.xlu0 %8781, %v7806_v41   ;;  %8515 = vmatpush3.bf16.msra.mxu0 %v2854_v20  ;;  %v526_v20 = vor.u32 %v524_v55, %v523_v59  ;;  %v9280_v26 = vcombine.low %v337_v62, %v338_v63 }
  0x98   : > { %v7706_v61 = vcombine.low %v741_v53, %v753_v50  ;;  %8452 = vmatprep.mubr.msk.bf16.mxu0 %vm1155_vm5, %v1140_v49  ;;  %v342_v49 = vld [vmem:[%s9097_s28 + $0x4c] sm:$0xf]  ;;  %v534_v53 = vor.u32 %v532_v3, %v531_v23 }
  0x99   : > { %v769_v0 = vpop.permute.xlu1 %768  ;;  %v757_v1 = vpop.permute.xlu0 %756  ;;  %11454 = vst [vmem:[#allocation10_spill] sm:$0xff] %v9280_v26  ;;  %v9297_v50 = vsel %vm488_vm2, %v515_v38, %v526_v20  ;;  %v7812_v38 = vld [vmem:[%s11387_s3 + $0x128] sm:$0xf] }
  0x9a   : > { %v1141_v7 = vmul.bf16 %v7706_v61, %v9249_v56  ;;  %v777_v9 = vrot.slane %v769_v0, %v9155_v42  ;;  %v765_v14 = vrot.slane %v757_v1, %v9155_v42  ;;  %2393 = vperm.xlu1 %8782, %v7809_v58   ;;  %v9304_v58 = vcombine.low %v339_v28, %v340_v31 }
  0x9b   : > { %2381 = vperm.xlu0 %8781, %v7808_v46   ;;  %v11392_v61 = vshrl.u32 %v9280_v26, 16  ;;  %v9311_v0 = vcombine.low %v341_v45, %v342_v49  ;;  %v9318_v20 = vsel %vm488_vm2, %v523_v59, %v534_v53  ;;  %v343_v59 = vld [vmem:[%s9097_s28 + $0x50] sm:$0xf] }
  0x9c   : > { %v7707_v27 = vcombine.low %v765_v14, %v777_v9  ;;  %11455 = vst [vmem:[#allocation11_spill] sm:$0xff] %v9304_v58  ;;  %v11395_v14 = vshll.u32 %v9280_v26, 16  ;;  %v11390_v28 = vshrl.u32 %v9304_v58, 16 }
  0x9d   : > { %v793_v32 = vpop.permute.xlu1 %792  ;;  %v781_v36 = vpop.permute.xlu0 %780  ;;  %11456 = vst [vmem:[#allocation12_spill] sm:$0xff] %v9311_v0 }
  0x9e   : > { %v1142_v37 = vmul.bf16 %v7707_v27, %v9271_v19  ;;  %v801_v40 = vrot.slane %v793_v32, %v9155_v42  ;;  %v789_v41 = vrot.slane %v781_v36, %v9155_v42  ;;  %8453 = vmatmul.mubr.msk.bf16.gmra.mxu0 %vm1155_vm5, %v1141_v7  ;;  %2417 = vperm.xlu1 %8782, %v7811_v22   ;;  %v7815_v27 = vld [vmem:[%s11387_s3 + $0x134] sm:$0xf]  ;;  %v7814_v32 = vld [vmem:[%s11387_s3 + $0x130] sm:$0xf] }
  0x9f   : > { %2405 = vperm.xlu0 %8781, %v7810_v10   ;;  %v542_v22 = vor.u32 %v11397_v33, %v539_v44  ;;  %v547_v10 = vrot.slane %v11392_v61, 7  ;;  %v344_v36 = vld [vmem:[%s9097_s28 + $0x54] sm:$0xf] }
  0xa0   : > { %v7708_v46 = vcombine.low %v789_v41, %v801_v40  ;;  %8456 = vmatprep.mubr.msk.bf16.mxu0 %vm1155_vm5, %v1142_v37  ;;  %v11389_v41 = vshrl.u32 %v9311_v0, 16 }
  0xa1   : > { %v817_v62 = vpop.permute.xlu1 %816  ;;  %v805_v63 = vpop.permute.xlu0 %804 }
  0xa2   : > { %v1143_v1 = vmul.bf16 %v7708_v46, %v9297_v50  ;;  %v825_v7 = vrot.slane %v817_v62, %v9155_v42  ;;  %v813_v9 = vrot.slane %v805_v63, %v9155_v42  ;;  %2441 = vperm.xlu1 %8782, %v7813_v57   ;;  %v11391_v57 = vshll.u32 %v9304_v58, 16 }
  0xa3   : > { %2429 = vperm.xlu0 %8781, %v7812_v38   ;;  %v9340_v46 = vsel %vm488_vm2, %v531_v23, %v542_v22  ;;  %v7817_v38 = vld [vmem:[%s11387_s3 + $0x13c] sm:$0xf]  ;;  %v555_v62 = vrot.slane %v11390_v28, 7  ;;  %v550_v63 = vor.u32 %v11395_v14, %v547_v10  ;;  %v7816_v23 = vld [vmem:[%s11387_s3 + $0x138] sm:$0xf] }
  0xa4   : > { %v7709_v31 = vcombine.low %v813_v9, %v825_v7  ;;  %v9349_v7 = vcombine.low %v343_v59, %v344_v36  ;;  %v345_v9 = vld [vmem:[%s9097_s28 + $0x58] sm:$0xf]  ;;  %v346_v22 = vld [vmem:[%s9097_s28 + $0x5c] sm:$0xf]  ;;  %v11393_v59 = vshll.u32 %v9311_v0, 16 }
  0xa5   : > { %v841_v37 = vpop.permute.xlu1 %840  ;;  %v829_v40 = vpop.permute.xlu0 %828  ;;  %v9374_v28 = vcombine.low %v345_v9, %v346_v22  ;;  %v351_v14 = vld [vmem:[%s9097_s28 + $0x70] sm:$0xf] }
  0xa6   : > { %v1144_v45 = vmul.bf16 %v7709_v31, %v9318_v20  ;;  %v849_v49 = vrot.slane %v841_v37, %v9155_v42  ;;  %v837_v53 = vrot.slane %v829_v40, %v9155_v42  ;;  %8457 = vmatmul.mubr.msk.bf16.gmra.mxu0 %vm1155_vm5, %v1143_v1  ;;  %2465 = vperm.xlu1 %8782, %v7815_v27   ;;  %v11399_v22 = vshll.u32 %v9349_v7, 16 }
  0xa7   : > { %2453 = vperm.xlu0 %8781, %v7814_v32   ;;  %11457 = vst [vmem:[#allocation13_spill] sm:$0xff] %v9349_v7  ;;  %v9359_v32 = vrot.slane %v11389_v41, 7  ;;  %v11396_v41 = vshrl.u32 %v9349_v7, 16  ;;  %11458 = vst [vmem:[#allocation14_spill] sm:$0xff] %v9374_v28  ;;  %v11408_v15 = vshll.u32 %v9374_v28, 16 }
  0xa8   : > { %v7710_v1 = vcombine.low %v837_v53, %v849_v49  ;;  %8460 = vmatprep.mubr.msk.bf16.mxu0 %vm1155_vm5, %v1144_v45  ;;  %v558_v45 = vor.u32 %v11391_v57, %v555_v62  ;;  %v7819_v49 = vld [vmem:[%s11387_s3 + $0x144] sm:$0xf]  ;;  %v9371_v53 = vsel %vm488_vm2, %v539_v44, %v550_v63 }
  0xa9   : > { %v865_v27 = vpop.permute.xlu1 %864  ;;  %v853_v31 = vpop.permute.xlu0 %852  ;;  %v566_v61 = vor.u32 %v11393_v59, %v9359_v32 }
  0xaa   : > { %v1145_v36 = vmul.bf16 %v7710_v1, %v9340_v46  ;;  %v873_v37 = vrot.slane %v865_v27, %v9155_v42  ;;  %v861_v40 = vrot.slane %v853_v31, %v9155_v42  ;;  %2489 = vperm.xlu1 %8782, %v7817_v38   ;;  %v7818_v1 = vld [vmem:[%s11387_s3 + $0x140] sm:$0xf]  ;;  %v348_v27 = vld [vmem:[%s9097_s28 + $0x64] sm:$0xf] }
  0xab   : > { %2477 = vperm.xlu0 %8781, %v7816_v23   ;;  %v347_v23 = vld [vmem:[%s9097_s28 + $0x60] sm:$0xf] }
  0xac   : > { %v7711_v38 = vcombine.low %v861_v40, %v873_v37  ;;  %v9390_v37 = vsel %vm488_vm2, %v547_v10, %v558_v45  ;;  %v7821_v40 = vld [vmem:[%s11387_s3 + $0x14c] sm:$0xf]  ;;  %v7820_v10 = vld [vmem:[%s11387_s3 + $0x148] sm:$0xf] }
  0xad   : > { %v889_v31 = vpop.permute.xlu1 %888  ;;  %v877_v57 = vpop.permute.xlu0 %876  ;;  %v349_v45 = vld [vmem:[%s9097_s28 + $0x68] sm:$0xf] }
  0xae   : > { %v897_v44 = vrot.slane %v889_v31, %v9155_v42  ;;  %v885_v63 = vrot.slane %v877_v57, %v9155_v42  ;;  %8461 = vmatmul.mubr.msk.bf16.gmra.mxu0 %vm1155_vm5, %v1145_v36  ;;  %2513 = vperm.xlu1 %8782, %v7819_v49   ;;  %v1146_v9 = vmul.bf16 %v7711_v38, %v9371_v53  ;;  %v571_v31 = vrot.slane %v11396_v41, 7 }
  0xaf   : > { %2501 = vperm.xlu0 %8781, %v7818_v1   ;;  %v11398_v57 = vshrl.u32 %v9374_v28, 16  ;;  %v9398_v36 = vcombine.low %v347_v23, %v348_v27  ;;  %v350_v1 = vld [vmem:[%s9097_s28 + $0x6c] sm:$0xf]  ;;  %v9411_v23 = vsel %vm488_vm2, %v555_v62, %v566_v61  ;;  %v7822_v62 = vld [vmem:[%s11387_s3 + $0x150] sm:$0xf] }
  0xb0   : > { %v7712_v49 = vcombine.low %v885_v63, %v897_v44  ;;  %8464 = vmatprep.mubr.msk.bf16.mxu1 %vm1155_vm5, %v1146_v9  ;;  %v574_v44 = vor.u32 %v11399_v22, %v571_v31  ;;  %v7823_v63 = vld [vmem:[%s11387_s3 + $0x154] sm:$0xf] }
  0xb1   : > { %11459 = vst [vmem:[#allocation15_spill] sm:$0xff] %v9398_v36  ;;  %v913_v38 = vpop.permute.xlu1 %912  ;;  %v901_v59 = vpop.permute.xlu0 %900  ;;  %v579_v9 = vrot.slane %v11398_v57, 7 }
  0xb2   : > { %v1147_v41 = vmul.bf16 %v7712_v49, %v9390_v37  ;;  %v921_v33 = vrot.slane %v913_v38, %v9155_v42  ;;  %v909_v27 = vrot.slane %v901_v59, %v9155_v42  ;;  %2537 = vperm.xlu1 %8782, %v7821_v40   ;;  %v11400_v49 = vshrl.u32 %v9398_v36, 16 }
  0xb3   : > { %2525 = vperm.xlu0 %8781, %v7820_v10   ;;  %v9422_v38 = vcombine.low %v349_v45, %v350_v1  ;;  %v9429_v59 = vcombine.low %v351_v14, %v9111_v5  ;;  %v582_v5 = vor.u32 %v11408_v15, %v579_v9 }
  0xb4   : > { %v7713_v61 = vcombine.low %v909_v27, %v921_v33  ;;  %8465 = vmatmul.mubr.msk.bf16.vlgmr.msra.gmra.mxu1 %vm1155_vm5, %v1147_v41  ;;  %v11401_v33 = vshll.u32 %v9398_v36, 16  ;;  %v9438_v41 = vsel %vm488_vm2, %v9359_v32, %v574_v44  ;;  %v587_v14 = vrot.slane %v11400_v49, 7  ;;  %v7824_v32 = vld [vmem:[%s11387_s3 + $0x158] sm:$0xf] }
  0xb5   : > { %11460 = vst [vmem:[#allocation16_spill] sm:$0xff] %v9422_v38  ;;  %11461 = vst [vmem:[#allocation17_spill] sm:$0xff] %v9429_v59  ;;  %v937_v40 = vpop.permute.xlu1 %936  ;;  %v925_v10 = vpop.permute.xlu0 %924  ;;  %8481 = vmatpush3.bf16.msra.mxu1 %v9024_v43  ;;  %v7825_v43 = vld [vmem:[%s11387_s3 + $0x15c] sm:$0xf]  ;;  %v11402_v1 = vshrl.u32 %v9422_v38, 16  ;;  %v9457_v49 = vsel %vm488_vm2, %v571_v31, %v582_v5 }
  0xb6   : > { %v1148_v57 = vmul.bf16 %v7713_v61, %v9411_v23  ;;  %v945_v22 = vrot.slane %v937_v40, %v9155_v42  ;;  %v933_v45 = vrot.slane %v925_v10, %v9155_v42  ;;  %2561 = vperm.xlu1 %8782, %v7823_v63   ;;  %v11403_v10 = vshll.u32 %v9422_v38, 16  ;;  %v7826_v31 = vld [vmem:[%s11387_s3 + $0x160] sm:$0xf] }
  0xb7   : > { %2549 = vperm.xlu0 %8781, %v7822_v62  }
  0xb8   : > { %v7714_v27 = vcombine.low %v933_v45, %v945_v22  ;;  %8468 = vmatprep.mubr.msk.bf16.mxu1 %vm1155_vm5, %v1148_v57  ;;  %v590_v22 = vor.u32 %v11401_v33, %v587_v14  ;;  %v7827_v57 = vld [vmem:[%s11387_s3 + $0x164] sm:$0xf]  ;;  %v595_v45 = vrot.slane %v11402_v1, 7 }
  0xb9   : > { %v961_v44 = vpop.permute.xlu1 %960  ;;  %v949_v63 = vpop.permute.xlu0 %948 }
  0xba   : > { %v1149_v61 = vmul.bf16 %v7714_v27, %v9438_v41  ;;  %v969_v62 = vrot.slane %v961_v44, %v9155_v42  ;;  %v957_v40 = vrot.slane %v949_v63, %v9155_v42  ;;  %2585 = vperm.xlu1 %8782, %v7825_v43   ;;  %v11404_v27 = vshrl.u32 %v9429_v59, 16 }
  0xbb   : > { %2573 = vperm.xlu0 %8781, %v7824_v32   ;;  %v9475_v1 = vsel %vm488_vm2, %v579_v9, %v590_v22  ;;  %v7828_v9 = vld [vmem:[%s11387_s3 + $0x168] sm:$0xf] }
  0xbc   : > { %v7715_v44 = vcombine.low %v957_v40, %v969_v62  ;;  %8469 = vmatmul.mubr.msk.bf16.gmra.mxu1 %vm1155_vm5, %v1149_v61  ;;  %v598_v61 = vor.u32 %v11403_v10, %v595_v45  ;;  %v7829_v62 = vld [vmem:[%s11387_s3 + $0x16c] sm:$0xf]  ;;  %v9484_v40 = vrot.slane %v11404_v27, 7 }
  0xbd   : > { %v985_v5 = vpop.permute.xlu1 %984  ;;  %v973_v43 = vpop.permute.xlu0 %972 }
  0xbe   : > { %v1150_v32 = vmul.bf16 %v7715_v44, %v9457_v49  ;;  %v993_v63 = vrot.slane %v985_v5, %v9155_v42  ;;  %v981_v33 = vrot.slane %v973_v43, %v9155_v42  ;;  %2609 = vperm.xlu1 %8782, %v7827_v57   ;;  %v11405_v44 = vshll.u32 %v9429_v59, 16 }
  0xbf   : > { %2597 = vperm.xlu0 %8781, %v7826_v31   ;;  %v9495_v27 = vsel %vm488_vm2, %v587_v14, %v598_v61 }
  0xc0   : > { %v7716_v5 = vcombine.low %v981_v33, %v993_v63  ;;  %8472 = vmatprep.mubr.msk.bf16.mxu1 %vm1155_vm5, %v1150_v32  ;;  %v606_v33 = vor.u32 %v11405_v44, %v9484_v40  ;;  %v7831_v32 = vld [vmem:[%s11387_s3 + $0x174] sm:$0xf] }
  0xc1   : > { %v1009_v22 = vpop.permute.xlu1 %1008  ;;  %v997_v57 = vpop.permute.xlu0 %996 }
  0xc2   : > { %v1151_v31 = vmul.bf16 %v7716_v5, %v9475_v1  ;;  %v1017_v43 = vrot.slane %v1009_v22, %v9155_v42  ;;  %v1005_v10 = vrot.slane %v997_v57, %v9155_v42  ;;  %2633 = vperm.xlu1 %8782, %v7829_v62   ;;  %v7830_v5 = vld [vmem:[%s11387_s3 + $0x170] sm:$0xf]  ;;  %v9511_v57 = vsel %vm488_vm2, %v595_v45, %v606_v33 }
  0xc3   : > { %2621 = vperm.xlu0 %8781, %v7828_v9  }
  0xc4   : > { %v7717_v63 = vcombine.low %v1005_v10, %v1017_v43  ;;  %8473 = vmatmul.mubr.msk.bf16.gmra.mxu1 %vm1155_vm5, %v1151_v31  ;;  %v7833_v10 = vld [vmem:[%s11387_s3 + $0x17c] sm:$0xf]  ;;  %v7832_v43 = vld [vmem:[%s11387_s3 + $0x178] sm:$0xf] }
  0xc5   : > { %v1033_v62 = vpop.permute.xlu1 %1032  ;;  %v1021_v22 = vpop.permute.xlu0 %1020 }
  0xc6   : > { %v1152_v14 = vmul.bf16 %v7717_v63, %v9495_v27  ;;  %v1041_v61 = vrot.slane %v1033_v62, %v9155_v42  ;;  %v1029_v9 = vrot.slane %v1021_v22, %v9155_v42  ;;  %2657 = vperm.xlu1 %8782, %v7831_v32   ;;  %v9522_v32 = vcombine.low %v9114_v6, %v9108_v4  ;;  %v7868_v22 = vld [vmem:[%s11387_s3 + $0x184] sm:$0xf]  ;;  %v7867_v4 = vld [vmem:[%s11387_s3 + $0x180] sm:$0xf] }
  0xc7   : > { %2645 = vperm.xlu0 %8781, %v7830_v5  }
  0xc8   : > { %v7718_v31 = vcombine.low %v1029_v9, %v1041_v61  ;;  %8476 = vmatprep.mubr.msk.bf16.mxu1 %vm1155_vm5, %v1152_v14  ;;  %11462 = vst [vmem:[#allocation18_spill] sm:$0xff] %v9522_v32 }
  0xc9   : > { %v1469_v63 = vpop.permute.xlu1 %1468  ;;  %v1457_v62 = vpop.permute.xlu0 %1456 }
  0xca   : > { %v1153_v45 = vmul.bf16 %v7718_v31, %v9511_v57  ;;  %v1477_v33 = vrot.slane %v1469_v63, %v9155_v42  ;;  %v1465_v5 = vrot.slane %v1457_v62, %v9155_v42  ;;  %2681 = vperm.xlu1 %8782, %v7833_v10   ;;  %v7870_v63 = vld [vmem:[%s11387_s3 + $0x18c] sm:$0xf] }
  0xcb   : > { %2669 = vperm.xlu0 %8781, %v7832_v43   ;;  %v7915_v43 = vld [vmem:[%s11385_s1 + $0x6] sm:$0x3] }
  0xcc   : > { %v7768_v14 = vcombine.low %v1465_v5, %v1477_v33  ;;  %8477 = vmatmul.mubr.msk.bf16.gmra.mxu1 %vm1155_vm5, %v1153_v45  ;;  %v3633_v62 = vand.u32 %v7915_v43, %v8948_v17  ;;  %v7685_v45 = vld [vmem:[%s11386_s2] ss:$0 sm:$0xff]  ;;  %v7869_v5 = vld [vmem:[%s11387_s3 + $0x188] sm:$0xf] }
  0xcd   : > { %v1493_v6 = vpop.permute.xlu1 %1492  ;;  %v1481_v61 = vpop.permute.xlu0 %1480  ;;  %293 = vst.msk [vmem:[#allocation2 + $0x10] sm:$0xff] %vm290_vm6, %v7685_v45  ;;  %291 = vst.msk [vmem:[#allocation2] sm:$0xff] %vm290_vm6, %v7685_v45 }
  0xce   : > { %v1934_v9 = vmul.bf16 %v7768_v14, %v9522_v32  ;;  %v1501_v31 = vrot.slane %v1493_v6, %v9155_v42  ;;  %v1489_v10 = vrot.slane %v1481_v61, %v9155_v42  ;;  %3100 = vperm.xlu1 %8782, %v7868_v22   ;;  %v7932_v22 = vld [vmem:[%s11385_s1 + $0x8] sm:$0x3]  ;;  %292 = vst.msk [vmem:[#allocation2 + $0x8] sm:$0xff] %vm290_vm6, %v7685_v45  ;;  %294 = vst.msk [vmem:[#allocation2 + $0x18] sm:$0xff] %vm290_vm6, %v7685_v45 }
  0xcf   : > { %3088 = vperm.xlu0 %8781, %v7867_v4   ;;  %295 = vst.msk [vmem:[#allocation2 + $0x20] sm:$0xff] %vm290_vm6, %v7685_v45  ;;  %296 = vst.msk [vmem:[#allocation2 + $0x28] sm:$0xff] %vm290_vm6, %v7685_v45  ;;  %8548 = vmatprep.subr.bf16.mxu1 %v3633_v62  ;;  %v9587_v6 = vand.u32 %v7932_v22, %v8948_v17 }
  0xd0   : > { %v7769_v33 = vcombine.low %v1489_v10, %v1501_v31  ;;  %8482 = vmatprep.mubr.msk.bf16.mxu1 %vm1155_vm5, %v1934_v9  ;;  %297 = vst.msk [vmem:[#allocation2 + $0x30] sm:$0xff] %vm290_vm6, %v7685_v45  ;;  %298 = vst.msk [vmem:[#allocation2 + $0x38] sm:$0xff] %vm290_vm6, %v7685_v45  ;;  %v7872_v10 = vld [vmem:[%s11387_s3 + $0x194] sm:$0xf] }
  0xd1   : > { %299 = vst.msk [vmem:[#allocation2 + $0x40] sm:$0xff] %vm290_vm6, %v7685_v45  ;;  %300 = vst.msk [vmem:[#allocation2 + $0x48] sm:$0xff] %vm290_vm6, %v7685_v45  ;;  %v1517_v14 = vpop.permute.xlu1 %1516  ;;  %v1505_v4 = vpop.permute.xlu0 %1504  ;;  %8582 = vmatprep.subr.bf16.mxu0 %v9587_v6 }
  0xd2   : > { %301 = vst.msk [vmem:[#allocation2 + $0x50] sm:$0xff] %vm290_vm6, %v7685_v45  ;;  %302 = vst.msk [vmem:[#allocation2 + $0x58] sm:$0xff] %vm290_vm6, %v7685_v45  ;;  %v1935_v61 = vmul.bf16 %v7769_v33, %v9124_v11  ;;  %v1525_v9 = vrot.slane %v1517_v14, %v9155_v42  ;;  %v1513_v31 = vrot.slane %v1505_v4, %v9155_v42  ;;  %3124 = vperm.xlu1 %8782, %v7870_v63   ;;  %v7874_v4 = vld [vmem:[%s11387_s3 + $0x19c] sm:$0xf] }
  0xd3   : > { %303 = vst.msk [vmem:[#allocation2 + $0x60] sm:$0xff] %vm290_vm6, %v7685_v45  ;;  %304 = vst.msk [vmem:[#allocation2 + $0x68] sm:$0xff] %vm290_vm6, %v7685_v45  ;;  %3112 = vperm.xlu0 %8781, %v7869_v5  }
  0xd4   : > { %305 = vst.msk [vmem:[#allocation2 + $0x70] sm:$0xff] %vm290_vm6, %v7685_v45  ;;  %306 = vst.msk [vmem:[#allocation2 + $0x78] sm:$0xff] %vm290_vm6, %v7685_v45  ;;  %v7770_v43 = vcombine.low %v1513_v31, %v1525_v9  ;;  %8483 = vmatmul.mubr.msk.bf16.vlgmr.msra.gmra.mxu1 %vm1155_vm5, %v1935_v61  ;;  %v7873_v9 = vld [vmem:[%s11387_s3 + $0x198] sm:$0xf] }
  0xd5   : > { %307 = vst.msk [vmem:[#allocation2 + $0x80] sm:$0xff] %vm290_vm6, %v7685_v45  ;;  %308 = vst.msk [vmem:[#allocation2 + $0x88] sm:$0xff] %vm290_vm6, %v7685_v45  ;;  %v1541_v33 = vpop.permute.xlu1 %1540  ;;  %v1529_v22 = vpop.permute.xlu0 %1528  ;;  %8549 = vmatpush3.bf16.msra.mxu1 %v3633_v62 }
  0xd6   : > { %309 = vst.msk [vmem:[#allocation2 + $0x90] sm:$0xff] %vm290_vm6, %v7685_v45  ;;  %310 = vst.msk [vmem:[#allocation2 + $0x98] sm:$0xff] %vm290_vm6, %v7685_v45  ;;  %v1936_v14 = vmul.bf16 %v7770_v43, %v9130_v18  ;;  %v1549_v63 = vrot.slane %v1541_v33, %v9155_v42  ;;  %v1537_v5 = vrot.slane %v1529_v22, %v9155_v42  ;;  %3148 = vperm.xlu1 %8782, %v7872_v10  }
  0xd7   : > { %311 = vst.msk [vmem:[#allocation2 + $0xa0] sm:$0xff] %vm290_vm6, %v7685_v45  ;;  %312 = vst.msk [vmem:[#allocation2 + $0xa8] sm:$0xff] %vm290_vm6, %v7685_v45 }
  0xd8   : > { %313 = vst.msk [vmem:[#allocation2 + $0xb0] sm:$0xff] %vm290_vm6, %v7685_v45  ;;  %314 = vst.msk [vmem:[#allocation2 + $0xb8] sm:$0xff] %vm290_vm6, %v7685_v45  ;;  %v7771_v61 = vcombine.low %v1537_v5, %v1549_v63  ;;  %8486 = vmatprep.mubr.msk.bf16.mxu1 %vm1155_vm5, %v1936_v14  ;;  %v7875_v14 = vld [vmem:[%s11387_s3 + $0x1a0] sm:$0xf] }
  0xd9   : > { %315 = vst.msk [vmem:[#allocation2 + $0xc0] sm:$0xff] %vm290_vm6, %v7685_v45  ;;  %316 = vst.msk [vmem:[#allocation2 + $0xc8] sm:$0xff] %vm290_vm6, %v7685_v45  ;;  %v1565_v62 = vpop.permute.xlu1 %1564  ;;  %v1553_v31 = vpop.permute.xlu0 %1552 }
  0xda   : > { %317 = vst.msk [vmem:[#allocation2 + $0xd0] sm:$0xff] %vm290_vm6, %v7685_v45  ;;  %318 = vst.msk [vmem:[#allocation2 + $0xd8] sm:$0xff] %vm290_vm6, %v7685_v45  ;;  %v1937_v43 = vmul.bf16 %v7771_v61, %v9151_v35  ;;  %v1573_v33 = vrot.slane %v1565_v62, %v9155_v42  ;;  %v1561_v10 = vrot.slane %v1553_v31, %v9155_v42  ;;  %3172 = vperm.xlu1 %8782, %v7874_v4  }
  0xdb   : > { %319 = vst.msk [vmem:[#allocation2 + $0xe0] sm:$0xff] %vm290_vm6, %v7685_v45  ;;  %320 = vst.msk [vmem:[#allocation2 + $0xe8] sm:$0xff] %vm290_vm6, %v7685_v45 }
  0xdc   : > { %321 = vst.msk [vmem:[#allocation2 + $0xf0] sm:$0xff] %vm290_vm6, %v7685_v45  ;;  %322 = vst.msk [vmem:[#allocation2 + $0xf8] sm:$0xff] %vm290_vm6, %v7685_v45  ;;  %v7871_v45 = vld [vmem:[%s11387_s3 + $0x190] sm:$0xf]  ;;  %v7772_v22 = vcombine.low %v1561_v10, %v1573_v33  ;;  %8487 = vmatmul.mubr.msk.bf16.gmra.mxu1 %vm1155_vm5, %v1937_v43  ;;  %v7877_v43 = vld [vmem:[%s11387_s3 + $0x1a8] sm:$0xf] }
  0xdd   : > { %3136 = vperm.xlu0 %8781, %v7871_v45   ;;  %v7876_v45 = vld [vmem:[%s11387_s3 + $0x1a4] sm:$0xf]  ;;  %v1589_v63 = vpop.permute.xlu1 %1588  ;;  %v1577_v5 = vpop.permute.xlu0 %1576 }
  0xde   : > { %v1938_v61 = vmul.bf16 %v7772_v22, %v9171_v52  ;;  %v1597_v62 = vrot.slane %v1589_v63, %v9155_v42  ;;  %v1585_v4 = vrot.slane %v1577_v5, %v9155_v42  ;;  %3196 = vperm.xlu1 %8782, %v7876_v45  }
  0xe0   : > { %v7773_v31 = vcombine.low %v1585_v4, %v1597_v62  ;;  %8490 = vmatprep.mubr.msk.bf16.mxu1 %vm1155_vm5, %v1938_v61  ;;  %v7879_v61 = vld [vmem:[%s11387_s3 + $0x1b0] sm:$0xf] }
  0xe1   : > { %3160 = vperm.xlu0 %8781, %v7873_v9   ;;  %v7878_v9 = vld [vmem:[%s11387_s3 + $0x1ac] sm:$0xf]  ;;  %v1613_v33 = vpop.permute.xlu1 %1612  ;;  %v1601_v10 = vpop.permute.xlu0 %1600 }
  0xe2   : > { %v1939_v22 = vmul.bf16 %v7773_v31, %v9206_v13  ;;  %v1621_v63 = vrot.slane %v1613_v33, %v9155_v42  ;;  %v1609_v45 = vrot.slane %v1601_v10, %v9155_v42  ;;  %3220 = vperm.xlu1 %8782, %v7878_v9  }
  0xe4   : > { %v7774_v5 = vcombine.low %v1609_v45, %v1621_v63  ;;  %8491 = vmatmul.mubr.msk.bf16.gmra.mxu1 %vm1155_vm5, %v1939_v22  ;;  %v7881_v22 = vld [vmem:[%s11387_s3 + $0x1b8] sm:$0xf] }
  0xe5   : > { %3184 = vperm.xlu0 %8781, %v7875_v14   ;;  %v7880_v14 = vld [vmem:[%s11387_s3 + $0x1b4] sm:$0xf]  ;;  %v1637_v62 = vpop.permute.xlu1 %1636  ;;  %v1625_v4 = vpop.permute.xlu0 %1624 }
  0xe6   : > { %v1940_v31 = vmul.bf16 %v7774_v5, %v9219_v25  ;;  %v1645_v33 = vrot.slane %v1637_v62, %v9155_v42  ;;  %v1633_v9 = vrot.slane %v1625_v4, %v9155_v42  ;;  %3244 = vperm.xlu1 %8782, %v7880_v14  }
  0xe8   : > { %v7775_v10 = vcombine.low %v1633_v9, %v1645_v33  ;;  %8494 = vmatprep.mubr.msk.bf16.mxu1 %vm1155_vm5, %v1940_v31  ;;  %v7883_v31 = vld [vmem:[%s11387_s3 + $0x1c0] sm:$0xf] }
  0xe9   : > { %3208 = vperm.xlu0 %8781, %v7877_v43   ;;  %v7882_v43 = vld [vmem:[%s11387_s3 + $0x1bc] sm:$0xf]  ;;  %v1661_v63 = vpop.permute.xlu1 %1660  ;;  %v1649_v45 = vpop.permute.xlu0 %1648 }
  0xea   : > { %v1941_v5 = vmul.bf16 %v7775_v10, %v9240_v48  ;;  %v1669_v62 = vrot.slane %v1661_v63, %v9155_v42  ;;  %v1657_v14 = vrot.slane %v1649_v45, %v9155_v42  ;;  %3268 = vperm.xlu1 %8782, %v7882_v43  }
  0xec   : > { %v7776_v4 = vcombine.low %v1657_v14, %v1669_v62  ;;  %8495 = vmatmul.mubr.msk.bf16.gmra.mxu1 %vm1155_vm5, %v1941_v5  ;;  %v7885_v5 = vld [vmem:[%s11387_s3 + $0x1c8] sm:$0xf] }
  0xed   : > { %3232 = vperm.xlu0 %8781, %v7879_v61   ;;  %v7884_v61 = vld [vmem:[%s11387_s3 + $0x1c4] sm:$0xf]  ;;  %v1685_v33 = vpop.permute.xlu1 %1684  ;;  %v1673_v9 = vpop.permute.xlu0 %1672 }
  0xee   : > { %v1942_v10 = vmul.bf16 %v7776_v4, %v9280_v26  ;;  %v1693_v63 = vrot.slane %v1685_v33, %v9155_v42  ;;  %v1681_v43 = vrot.slane %v1673_v9, %v9155_v42  ;;  %3292 = vperm.xlu1 %8782, %v7884_v61  }
  0xf0   : > { %v7777_v45 = vcombine.low %v1681_v43, %v1693_v63  ;;  %8498 = vmatprep.mubr.msk.bf16.mxu1 %vm1155_vm5, %v1942_v10  ;;  %v7887_v10 = vld [vmem:[%s11387_s3 + $0x1d0] sm:$0xf] }
  0xf1   : > { %3256 = vperm.xlu0 %8781, %v7881_v22   ;;  %v7886_v22 = vld [vmem:[%s11387_s3 + $0x1cc] sm:$0xf]  ;;  %v1709_v62 = vpop.permute.xlu1 %1708  ;;  %v1697_v14 = vpop.permute.xlu0 %1696 }
  0xf2   : > { %v1943_v4 = vmul.bf16 %v7777_v45, %v9304_v58  ;;  %v1717_v33 = vrot.slane %v1709_v62, %v9155_v42  ;;  %v1705_v61 = vrot.slane %v1697_v14, %v9155_v42  ;;  %3316 = vperm.xlu1 %8782, %v7886_v22  }
  0xf4   : > { %v7778_v9 = vcombine.low %v1705_v61, %v1717_v33  ;;  %8499 = vmatmul.mubr.msk.bf16.gmra.mxu1 %vm1155_vm5, %v1943_v4  ;;  %v7889_v4 = vld [vmem:[%s11387_s3 + $0x1d8] sm:$0xf] }
  0xf5   : > { %3280 = vperm.xlu0 %8781, %v7883_v31   ;;  %v7888_v31 = vld [vmem:[%s11387_s3 + $0x1d4] sm:$0xf]  ;;  %v1733_v63 = vpop.permute.xlu1 %1732  ;;  %v1721_v43 = vpop.permute.xlu0 %1720 }
  0xf6   : > { %v1944_v45 = vmul.bf16 %v7778_v9, %v9311_v0  ;;  %v1741_v62 = vrot.slane %v1733_v63, %v9155_v42  ;;  %v1729_v22 = vrot.slane %v1721_v43, %v9155_v42  ;;  %3340 = vperm.xlu1 %8782, %v7888_v31  }
  0xf8   : > { %v7779_v14 = vcombine.low %v1729_v22, %v1741_v62  ;;  %8502 = vmatprep.mubr.msk.bf16.mxu1 %vm1155_vm5, %v1944_v45  ;;  %v7891_v45 = vld [vmem:[%s11387_s3 + $0x1e0] sm:$0xf] }
  0xf9   : > { %3304 = vperm.xlu0 %8781, %v7885_v5   ;;  %v7890_v5 = vld [vmem:[%s11387_s3 + $0x1dc] sm:$0xf]  ;;  %v1757_v33 = vpop.permute.xlu1 %1756  ;;  %v1745_v61 = vpop.permute.xlu0 %1744 }
  0xfa   : > { %v1945_v9 = vmul.bf16 %v7779_v14, %v9349_v7  ;;  %v1765_v63 = vrot.slane %v1757_v33, %v9155_v42  ;;  %v1753_v31 = vrot.slane %v1745_v61, %v9155_v42  ;;  %3364 = vperm.xlu1 %8782, %v7890_v5   ;;  %v11406_v61 = vshll.u32 %v9522_v32, 16 }
  0xfc   : > { %v7780_v43 = vcombine.low %v1753_v31, %v1765_v63  ;;  %8503 = vmatmul.mubr.msk.bf16.gmra.mxu1 %vm1155_vm5, %v1945_v9  ;;  %v7893_v63 = vld [vmem:[%s11387_s3 + $0x1e8] sm:$0xf] }
  0xfd   : > { %3328 = vperm.xlu0 %8781, %v7887_v10   ;;  %v7892_v10 = vld [vmem:[%s11387_s3 + $0x1e4] sm:$0xf]  ;;  %v1781_v62 = vpop.permute.xlu1 %1780  ;;  %v1769_v22 = vpop.permute.xlu0 %1768 }
  0xfe   : > { %v1946_v14 = vmul.bf16 %v7780_v43, %v9374_v28  ;;  %v1789_v33 = vrot.slane %v1781_v62, %v9155_v42  ;;  %v1777_v5 = vrot.slane %v1769_v22, %v9155_v42  ;;  %3388 = vperm.xlu1 %8782, %v7892_v10   ;;  %v7896_v22 = vld [vmem:[%s11387_s3 + $0x1f4] sm:$0xf] }
 0x100   : > { %v7781_v9 = vcombine.low %v1777_v5, %v1789_v33  ;;  %8506 = vmatprep.mubr.msk.bf16.mxu1 %vm1155_vm5, %v1946_v14  ;;  %v11407_v14 = vshrl.u32 %v9522_v32, 16  ;;  %v9720_v33 = vrot.slane %v11406_v61, 1 }
 0x101   : > { %3352 = vperm.xlu0 %8781, %v7889_v4   ;;  %v7894_v4 = vld [vmem:[%s11387_s3 + $0x1ec] sm:$0xf]  ;;  %v1805_v31 = vpop.permute.xlu1 %1804  ;;  %v1793_v43 = vpop.permute.xlu0 %1792 }
 0x102   : > { %v1947_v62 = vmul.bf16 %v7781_v9, %v9398_v36  ;;  %v1813_v10 = vrot.slane %v1805_v31, %v9155_v42  ;;  %3412 = vperm.xlu1 %8782, %v7894_v4   ;;  %11463 = vst [vmem:[#allocation19_spill] sm:$0xff] %v9720_v33  ;;  %v7895_v9 = vld [vmem:[%s11387_s3 + $0x1f0] sm:$0xf] }
 0x104   : > { %8507 = vmatmul.mubr.msk.bf16.gmra.mxu1 %vm1155_vm5, %v1947_v62  ;;  %v9732_v62 = vor.u32 %v9720_v33, %v11407_v14 }
 0x105   : > { %3376 = vperm.xlu0 %8781, %v7891_v45   ;;  %v1801_v45 = vrot.slane %v1793_v43, %v9155_v42  ;;  %v1829_v31 = vpop.permute.xlu1 %1828  ;;  %v1817_v4 = vpop.permute.xlu0 %1816 }
 0x106   : > { %v1837_v43 = vrot.slane %v1829_v31, %v9155_v42  ;;  %v1825_v44 = vrot.slane %v1817_v4, %v9155_v42  ;;  %3436 = vperm.xlu1 %8782, %v7896_v22   ;;  %11464 = vst [vmem:[#allocation20_spill] sm:$0xff] %v9732_v62  ;;  %v7897_v22 = vld [vmem:[%s11387_s3 + $0x1f8] sm:$0xf] }
 0x107   : > { %v7782_v5 = vcombine.low %v1801_v45, %v1813_v10  ;;  %v2206_v10 = vrot.slane %v493_v34, 1  ;;  %v7898_v45 = vld [vmem:[%s11387_s3 + $0x1fc] sm:$0xf] }
 0x108   : > { %v7783_v61 = vcombine.low %v1825_v44, %v1837_v43  ;;  %v2208_v43 = vrot.slane %v500_v47, 1  ;;  %v7998_v47 = vld [vmem:[%s11385_s1 + $0xa] sm:$0x3] }
 0x109   : > { %3400 = vperm.xlu0 %8781, %v7893_v63   ;;  %v1948_v63 = vmul.bf16 %v7782_v5, %v9422_v38  ;;  %v11465_v5 = vmov 0  ;;  %v2310_v31 = vpop.permute.xlu0 %2309  ;;  %v9754_v44 = vsel %vm9741_vm9, %v9732_v62, %v2206_v10 }
 0x10a   : > { %v11466_v5 = vsel %vm9741_vm9, 4294967295, %v11465_v5  ;;  %v1949_v34 = vmul.bf16 %v7783_v61, %v9429_v59  ;;  %v2318_v14 = vrot.slane %v2310_v31, %v9155_v42  ;;  %3460 = vperm.xlu1 %8782, %v7898_v45   ;;  %11468 = vst [vmem:[#allocation22_spill] sm:$0xff] %v9754_v44  ;;  %v7951_v61 = vld [vmem:[%s11387_s3 + $0x284] sm:$0xf]  ;;  %v7950_v45 = vld [vmem:[%s11387_s3 + $0x280] sm:$0xf] }
 0x10b   : > { %8510 = vmatprep.mubr.msk.bf16.mxu1 %vm1155_vm5, %v1948_v63  ;;  %11467 = vst [vmem:[#allocation21_spill] sm:$0xff] %v11466_v5  ;;  %v9758_v63 = vor.u32 %v2206_v10, %v490_v21 }
 0x10c   : > { %8511 = vmatmul.mubr.msk.bf16.gmra.mxu1 %vm1155_vm5, %v1949_v34  ;;  %v7953_v34 = vld [vmem:[%s11387_s3 + $0x28c] sm:$0xf] }
 0x10d   : > { %3424 = vperm.xlu0 %8781, %v7895_v9   ;;  %v2322_v9 = vpop.permute.xlu1 %2321  ;;  %11469 = vst [vmem:[#allocation23_spill] sm:$0xff] %v9758_v63 }
 0x10e   : > { %v2330_v4 = vrot.slane %v2322_v9, %v9155_v42  ;;  %4114 = vperm.xlu1 %8782, %v7951_v61   ;;  %v2210_v61 = vor.u32 %v2208_v43, %v497_v30  ;;  %v7955_v30 = vld [vmem:[%s11387_s3 + $0x294] sm:$0xf] }
 0x110   : > { %v7834_v9 = vcombine.low %v2318_v14, %v2330_v4  ;;  %v9777_v14 = vsel %vm2205_vm7, %v9758_v63, %v2208_v43  ;;  %v9783_v4 = vand.u32 %v7998_v47, %v8948_v17 }
 0x111   : > { %3448 = vperm.xlu0 %8781, %v7897_v22   ;;  %v2346_v31 = vpop.permute.xlu1 %2345  ;;  %v2334_v22 = vpop.permute.xlu0 %2333 }
 0x112   : > { %v2787_v15 = vmul.bf16 %v7834_v9, %v9754_v44  ;;  %v2354_v21 = vrot.slane %v2346_v31, %v9155_v42  ;;  %v2342_v10 = vrot.slane %v2334_v22, %v9155_v42  ;;  %v2211_v31 = vrot.slane %v508_v2, 1  ;;  %8616 = vmatprep.subr.bf16.mxu1 %v9783_v4  ;;  %4138 = vperm.xlu1 %8782, %v7953_v34   ;;  %v7954_v34 = vld [vmem:[%s11387_s3 + $0x290] sm:$0xf] }
 0x114   : > { %v7835_v9 = vcombine.low %v2342_v10, %v2354_v21  ;;  %8516 = vmatprep.mubr.msk.bf16.mxu0 %vm1155_vm5, %v2787_v15  ;;  %v9801_v2 = vsel %vm2205_vm7, %v2210_v61, %v2211_v31  ;;  %v2213_v43 = vor.u32 %v2211_v31, %v505_v51  ;;  %v2214_v10 = vrot.slane %v516_v29, 1  ;;  %v7957_v51 = vld [vmem:[%s11387_s3 + $0x29c] sm:$0xf] }
 0x115   : > { %4102 = vperm.xlu0 %8781, %v7950_v45   ;;  %v7952_v45 = vld [vmem:[%s11387_s3 + $0x288] sm:$0xf]  ;;  %v2370_v22 = vpop.permute.xlu1 %2369  ;;  %v2358_v21 = vpop.permute.xlu0 %2357  ;;  %11470 = vst [vmem:[#allocation24_spill] sm:$0xff] %v9801_v2 }
 0x116   : > { %v2788_v60 = vmul.bf16 %v7835_v9, %v9777_v14  ;;  %v2378_v47 = vrot.slane %v2370_v22, %v9155_v42  ;;  %v2366_v15 = vrot.slane %v2358_v21, %v9155_v42  ;;  %4162 = vperm.xlu1 %8782, %v7955_v30   ;;  %v9819_v29 = vsel %vm2205_vm7, %v2213_v43, %v2214_v10 }
 0x117   : > { %11471 = vst [vmem:[#allocation25_spill] sm:$0xff] %v9819_v29  ;;  %v2216_v31 = vor.u32 %v2214_v10, %v513_v12  ;;  %v7959_v12 = vld [vmem:[%s11387_s3 + $0x2a4] sm:$0xf] }
 0x118   : > { %8517 = vmatmul.mubr.msk.bf16.vlgmr.msra.gmra.mxu0 %vm1155_vm5, %v2788_v60  ;;  %v7836_v9 = vcombine.low %v2366_v15, %v2378_v47  ;;  %v7956_v47 = vld [vmem:[%s11387_s3 + $0x298] sm:$0xf] }
 0x119   : > { %4126 = vperm.xlu0 %8781, %v7952_v45   ;;  %v2394_v45 = vpop.permute.xlu1 %2393  ;;  %8583 = vmatpush3.bf16.msra.mxu0 %v9587_v6  ;;  %v2382_v61 = vpop.permute.xlu0 %2381  ;;  %v2217_v6 = vrot.slane %v524_v55, 1 }
 0x11a   : > { %v2402_v22 = vrot.slane %v2394_v45, %v9155_v42  ;;  %v2789_v60 = vmul.bf16 %v7836_v9, %v9801_v2  ;;  %v2390_v21 = vrot.slane %v2382_v61, %v9155_v42  ;;  %4186 = vperm.xlu1 %8782, %v7957_v51   ;;  %v7958_v61 = vld [vmem:[%s11387_s3 + $0x2a0] sm:$0xf] }
 0x11b   : > { %v9836_v55 = vsel %vm2205_vm7, %v2216_v31, %v2217_v6  ;;  %v2219_v10 = vor.u32 %v2217_v6, %v521_v39  ;;  %v7961_v39 = vld [vmem:[%s11387_s3 + $0x2ac] sm:$0xf]  ;;  %v11474_v6 = vshrl.u32 %v9219_v25, 16 }
 0x11c   : > { %v7837_v15 = vcombine.low %v2390_v21, %v2402_v22  ;;  %8520 = vmatprep.mubr.msk.bf16.mxu0 %vm1155_vm5, %v2789_v60  ;;  %11472 = vst [vmem:[#allocation26_spill] sm:$0xff] %v9836_v55  ;;  %v2220_v22 = vrot.slane %v532_v3, 1 }
 0x11d   : > { %4150 = vperm.xlu0 %8781, %v7954_v34   ;;  %v2418_v30 = vpop.permute.xlu1 %2417  ;;  %v2406_v9 = vpop.permute.xlu0 %2405 }
 0x11e   : > { %v2426_v34 = vrot.slane %v2418_v30, %v9155_v42  ;;  %v2790_v43 = vmul.bf16 %v7837_v15, %v9819_v29  ;;  %v2414_v45 = vrot.slane %v2406_v9, %v9155_v42  ;;  %4210 = vperm.xlu1 %8782, %v7959_v12   ;;  %v9853_v3 = vsel %vm2205_vm7, %v2219_v10, %v2220_v22 }
 0x11f   : > { %11473 = vst [vmem:[#allocation27_spill] sm:$0xff] %v9853_v3  ;;  %v2222_v30 = vor.u32 %v2220_v22, %v11474_v6  ;;  %v7963_v22 = vld [vmem:[%s11387_s3 + $0x2b4] sm:$0xf] }
 0x120   : > { %v7838_v60 = vcombine.low %v2414_v45, %v2426_v34  ;;  %8521 = vmatmul.mubr.msk.bf16.gmra.mxu0 %vm1155_vm5, %v2790_v43  ;;  %v11475_v34 = vshll.u32 %v9240_v48, 16  ;;  %v7960_v43 = vld [vmem:[%s11387_s3 + $0x2a8] sm:$0xf] }
 0x121   : > { %4174 = vperm.xlu0 %8781, %v7956_v47   ;;  %v2442_v21 = vpop.permute.xlu1 %2441  ;;  %v2430_v47 = vpop.permute.xlu0 %2429 }
 0x122   : > { %v2450_v51 = vrot.slane %v2442_v21, %v9155_v42  ;;  %v2791_v31 = vmul.bf16 %v7838_v60, %v9836_v55  ;;  %v2438_v15 = vrot.slane %v2430_v47, %v9155_v42  ;;  %v2223_v9 = vrot.slane %v11475_v34, 1  ;;  %4234 = vperm.xlu1 %8782, %v7961_v39   ;;  %v7962_v39 = vld [vmem:[%s11387_s3 + $0x2b0] sm:$0xf] }
 0x123   : > { %v11476_v47 = vshll.u32 %v9280_v26, 16 }
 0x124   : > { %v7839_v45 = vcombine.low %v2438_v15, %v2450_v51  ;;  %8524 = vmatprep.mubr.msk.bf16.mxu0 %vm1155_vm5, %v2791_v31  ;;  %v9872_v51 = vsel %vm2205_vm7, %v2222_v30, %v2223_v9  ;;  %v11478_v31 = vshrl.u32 %v9240_v48, 16 }
 0x125   : > { %4198 = vperm.xlu0 %8781, %v7958_v61   ;;  %v2466_v12 = vpop.permute.xlu1 %2465  ;;  %v2454_v60 = vpop.permute.xlu0 %2453  ;;  %v2226_v6 = vrot.slane %v11476_v47, 1  ;;  %11477 = vst [vmem:[#allocation28_spill] sm:$0xff] %v9872_v51 }
 0x126   : > { %v2474_v61 = vrot.slane %v2466_v12, %v9155_v42  ;;  %v2792_v10 = vmul.bf16 %v7839_v45, %v9853_v3  ;;  %v2462_v21 = vrot.slane %v2454_v60, %v9155_v42  ;;  %v2225_v15 = vor.u32 %v2223_v9, %v11478_v31  ;;  %4258 = vperm.xlu1 %8782, %v7963_v22   ;;  %v7965_v9 = vld [vmem:[%s11387_s3 + $0x2bc] sm:$0xf]  ;;  %v7964_v22 = vld [vmem:[%s11387_s3 + $0x2b8] sm:$0xf] }
 0x128   : > { %v7840_v34 = vcombine.low %v2462_v21, %v2474_v61  ;;  %8525 = vmatmul.mubr.msk.bf16.gmra.mxu0 %vm1155_vm5, %v2792_v10  ;;  %v9887_v47 = vsel %vm2205_vm7, %v2225_v15, %v2226_v6  ;;  %v11480_v61 = vshrl.u32 %v9280_v26, 16  ;;  %v11481_v21 = vshll.u32 %v9304_v58, 16 }
 0x129   : > { %4222 = vperm.xlu0 %8781, %v7960_v43   ;;  %v2490_v43 = vpop.permute.xlu1 %2489  ;;  %v2478_v12 = vpop.permute.xlu0 %2477  ;;  %11479 = vst [vmem:[#allocation29_spill] sm:$0xff] %v9887_v47 }
 0x12a   : > { %v2498_v45 = vrot.slane %v2490_v43, %v9155_v42  ;;  %v2793_v60 = vmul.bf16 %v7840_v34, %v9872_v51  ;;  %v2486_v30 = vrot.slane %v2478_v12, %v9155_v42  ;;  %v2228_v10 = vor.u32 %v2226_v6, %v11480_v61  ;;  %4282 = vperm.xlu1 %8782, %v7965_v9   ;;  %v7967_v6 = vld [vmem:[%s11387_s3 + $0x2c4] sm:$0xf]  ;;  %v7966_v9 = vld [vmem:[%s11387_s3 + $0x2c0] sm:$0xf] }
 0x12b   : > { %v2229_v31 = vrot.slane %v11481_v21, 1 }
 0x12c   : > { %v7841_v34 = vcombine.low %v2486_v30, %v2498_v45  ;;  %8528 = vmatprep.mubr.msk.bf16.mxu0 %vm1155_vm5, %v2793_v60  ;;  %v11483_v45 = vshrl.u32 %v9304_v58, 16  ;;  %v11484_v30 = vshll.u32 %v9311_v0, 16 }
 0x12d   : > { %4246 = vperm.xlu0 %8781, %v7962_v39   ;;  %v2514_v39 = vpop.permute.xlu1 %2513  ;;  %v2502_v12 = vpop.permute.xlu0 %2501  ;;  %v9904_v61 = vsel %vm2205_vm7, %v2228_v10, %v2229_v31 }
 0x12e   : > { %v2522_v43 = vrot.slane %v2514_v39, %v9155_v42  ;;  %v2794_v15 = vmul.bf16 %v7841_v34, %v9887_v47  ;;  %v2510_v63 = vrot.slane %v2502_v12, %v9155_v42  ;;  %11482 = vst [vmem:[#allocation30_spill] sm:$0xff] %v9904_v61  ;;  %v2231_v60 = vor.u32 %v2229_v31, %v11483_v45  ;;  %v7969_v31 = vld [vmem:[%s11387_s3 + $0x2cc] sm:$0xf] }
 0x12f   : > { %v2232_v21 = vrot.slane %v11484_v30, 1  ;;  %4306 = vperm.xlu1 %8782, %v7967_v6   ;;  %v7968_v6 = vld [vmem:[%s11387_s3 + $0x2c8] sm:$0xf] }
 0x130   : > { %v7842_v34 = vcombine.low %v2510_v63, %v2522_v43  ;;  %8529 = vmatmul.mubr.msk.bf16.gmra.mxu0 %vm1155_vm5, %v2794_v15  ;;  %v11486_v63 = vshrl.u32 %v9311_v0, 16  ;;  %v11487_v15 = vshll.u32 %v9349_v7, 16 }
 0x131   : > { %4270 = vperm.xlu0 %8781, %v7964_v22   ;;  %v2538_v22 = vpop.permute.xlu1 %2537  ;;  %v2526_v12 = vpop.permute.xlu0 %2525  ;;  %v9921_v45 = vsel %vm2205_vm7, %v2231_v60, %v2232_v21 }
 0x132   : > { %v2546_v39 = vrot.slane %v2538_v22, %v9155_v42  ;;  %v2795_v10 = vmul.bf16 %v7842_v34, %v9904_v61  ;;  %v2534_v44 = vrot.slane %v2526_v12, %v9155_v42  ;;  %11485 = vst [vmem:[#allocation31_spill] sm:$0xff] %v9921_v45  ;;  %v2234_v43 = vor.u32 %v2232_v21, %v11486_v63  ;;  %v7971_v21 = vld [vmem:[%s11387_s3 + $0x2d4] sm:$0xf] }
 0x133   : > { %v2235_v30 = vrot.slane %v11487_v15, 1  ;;  %4330 = vperm.xlu1 %8782, %v7969_v31   ;;  %v7970_v31 = vld [vmem:[%s11387_s3 + $0x2d0] sm:$0xf] }
 0x134   : > { %v7843_v34 = vcombine.low %v2534_v44, %v2546_v39  ;;  %8532 = vmatprep.mubr.msk.bf16.mxu0 %vm1155_vm5, %v2795_v10  ;;  %v11489_v44 = vshrl.u32 %v9349_v7, 16  ;;  %v11490_v10 = vshll.u32 %v9374_v28, 16 }
 0x135   : > { %4294 = vperm.xlu0 %8781, %v7966_v9   ;;  %v2562_v9 = vpop.permute.xlu1 %2561  ;;  %v2550_v12 = vpop.permute.xlu0 %2549  ;;  %v9938_v63 = vsel %vm2205_vm7, %v2234_v43, %v2235_v30 }
 0x136   : > { %v2570_v22 = vrot.slane %v2562_v9, %v9155_v42  ;;  %v2796_v60 = vmul.bf16 %v7843_v34, %v9921_v45  ;;  %v2558_v16 = vrot.slane %v2550_v12, %v9155_v42  ;;  %11488 = vst [vmem:[#allocation32_spill] sm:$0xff] %v9938_v63  ;;  %v2237_v39 = vor.u32 %v2235_v30, %v11489_v44  ;;  %v7973_v30 = vld [vmem:[%s11387_s3 + $0x2dc] sm:$0xf] }
 0x137   : > { %v2238_v15 = vrot.slane %v11490_v10, 1  ;;  %4354 = vperm.xlu1 %8782, %v7971_v21   ;;  %v7972_v21 = vld [vmem:[%s11387_s3 + $0x2d8] sm:$0xf] }
 0x138   : > { %v7844_v34 = vcombine.low %v2558_v16, %v2570_v22  ;;  %8533 = vmatmul.mubr.msk.bf16.gmra.mxu0 %vm1155_vm5, %v2796_v60  ;;  %v11492_v16 = vshrl.u32 %v9374_v28, 16  ;;  %v11493_v60 = vshll.u32 %v9398_v36, 16 }
 0x139   : > { %4318 = vperm.xlu0 %8781, %v7968_v6   ;;  %v2586_v6 = vpop.permute.xlu1 %2585  ;;  %v2574_v12 = vpop.permute.xlu0 %2573  ;;  %v9955_v44 = vsel %vm2205_vm7, %v2237_v39, %v2238_v15 }
 0x13a   : > { %v2594_v9 = vrot.slane %v2586_v6, %v9155_v42  ;;  %v2797_v43 = vmul.bf16 %v7844_v34, %v9938_v63  ;;  %v2582_v5 = vrot.slane %v2574_v12, %v9155_v42  ;;  %11491 = vst [vmem:[#allocation33_spill] sm:$0xff] %v9955_v44  ;;  %v2240_v22 = vor.u32 %v2238_v15, %v11492_v16  ;;  %v7975_v16 = vld [vmem:[%s11387_s3 + $0x2e4] sm:$0xf] }
 0x13b   : > { %v2241_v10 = vrot.slane %v11493_v60, 1  ;;  %4378 = vperm.xlu1 %8782, %v7973_v30   ;;  %v7974_v30 = vld [vmem:[%s11387_s3 + $0x2e0] sm:$0xf] }
 0x13c   : > { %v7845_v34 = vcombine.low %v2582_v5, %v2594_v9  ;;  %8536 = vmatprep.mubr.msk.bf16.mxu0 %vm1155_vm5, %v2797_v43  ;;  %v11495_v5 = vshrl.u32 %v9398_v36, 16  ;;  %v11496_v43 = vshll.u32 %v9422_v38, 16 }
 0x13d   : > { %4342 = vperm.xlu0 %8781, %v7970_v31   ;;  %v2610_v31 = vpop.permute.xlu1 %2609  ;;  %v2598_v12 = vpop.permute.xlu0 %2597  ;;  %v9972_v60 = vsel %vm2205_vm7, %v2240_v22, %v2241_v10 }
 0x13e   : > { %v2618_v6 = vrot.slane %v2610_v31, %v9155_v42  ;;  %v2798_v39 = vmul.bf16 %v7845_v34, %v9955_v44  ;;  %v2606_v15 = vrot.slane %v2598_v12, %v9155_v42  ;;  %11494 = vst [vmem:[#allocation34_spill] sm:$0xff] %v9972_v60  ;;  %v2243_v9 = vor.u32 %v2241_v10, %v11495_v5  ;;  %v8802_v34 = vld [vmem:[%s9097_s28 + $0x78] sm:$0xf]  ;;  %v7977_v5 = vld [vmem:[%s11387_s3 + $0x2ec] sm:$0xf] }
 0x13f   : > { %v2244_v31 = vrot.slane %v11496_v43, 1  ;;  %v7801_v12 = vcombine.low %v8802_v34, %v8802_v34  ;;  %4402 = vperm.xlu1 %8782, %v7975_v16   ;;  %v7976_v16 = vld [vmem:[%s11387_s3 + $0x2e8] sm:$0xf] }
 0x140   : > { %8537 = vmatmul.mubr.msk.bf16.gmra.mxu0 %vm1155_vm5, %v2798_v39 }
 0x141   : > { %4366 = vperm.xlu0 %8781, %v7972_v21   ;;  %v7846_v21 = vcombine.low %v2606_v15, %v2618_v6  ;;  %v2634_v62 = vpop.permute.xlu1 %2633  ;;  %v2622_v22 = vpop.permute.xlu0 %2621  ;;  %v9990_v43 = vsel %vm2205_vm7, %v2243_v9, %v2244_v31  ;;  %v11498_v6 = vshrl.u32 %v9422_v38, 16  ;;  %v11499_v15 = vshll.u32 %v9429_v59, 16 }
 0x142   : > { %v2642_v33 = vrot.slane %v2634_v62, %v9155_v42  ;;  %v2630_v10 = vrot.slane %v2622_v22, %v9155_v42  ;;  %11497 = vst [vmem:[#allocation35_spill] sm:$0xff] %v9990_v43  ;;  %v2251_v34 = vshll.u32 %v7801_v12, 16 }
 0x143   : > { %v2799_v54 = vmul.bf16 %v7846_v21, %v9972_v60  ;;  %v2246_v39 = vor.u32 %v2244_v31, %v11498_v6  ;;  %v2247_v62 = vrot.slane %v11499_v15, 1  ;;  %4426 = vperm.xlu1 %8782, %v7977_v5   ;;  %v8030_v6 = vld [vmem:[%s11387_s3 + $0x304] sm:$0xf] }
 0x144   : > { %v7847_v21 = vcombine.low %v2630_v10, %v2642_v33  ;;  %v11501_v33 = vshrl.u32 %v9429_v59, 16  ;;  %v2253_v12 = vrot.slane %v2251_v34, 1  ;;  %v8029_v10 = vld [vmem:[%s11387_s3 + $0x300] sm:$0xf] }
 0x145   : > { %4390 = vperm.xlu0 %8781, %v7974_v30   ;;  %8540 = vmatprep.mubr.msk.bf16.mxu0 %vm1155_vm5, %v2799_v54  ;;  %v2658_v30 = vpop.permute.xlu1 %2657  ;;  %v2646_v60 = vpop.permute.xlu0 %2645  ;;  %v10007_v15 = vsel %vm2205_vm7, %v2246_v39, %v2247_v62  ;;  %v8077_v39 = vld [vmem:[%s11385_s1 + $0xc] sm:$0x3] }
 0x146   : > { %v2666_v22 = vrot.slane %v2658_v30, %v9155_v42  ;;  %v2800_v9 = vmul.bf16 %v7847_v21, %v9990_v43  ;;  %v2654_v31 = vrot.slane %v2646_v60, %v9155_v42  ;;  %11500 = vst [vmem:[#allocation36_spill] sm:$0xff] %v10007_v15  ;;  %v10011_v54 = vor.u32 %v2247_v62, %v11501_v33  ;;  %v8032_v30 = vld [vmem:[%s11387_s3 + $0x30c] sm:$0xf] }
 0x147   : > { %5043 = vperm.xlu1 %8782, %v8030_v6  }
 0x148   : > { %v7848_v5 = vcombine.low %v2654_v31, %v2666_v22  ;;  %8541 = vmatmul.mubr.msk.bf16.gmra.mxu0 %vm1155_vm5, %v2800_v9  ;;  %v2254_v22 = vsel %vm2205_vm7, %v10011_v54, %v2253_v12  ;;  %v8031_v9 = vld [vmem:[%s11387_s3 + $0x308] sm:$0xf]  ;;  %v5576_v31 = vand.u32 %v8077_v39, %v8948_v17  ;;  %v8034_v12 = vld [vmem:[%s11387_s3 + $0x314] sm:$0xf] }
 0x149   : > { %4414 = vperm.xlu0 %8781, %v7976_v16   ;;  %v2682_v60 = vpop.permute.xlu1 %2681  ;;  %v2670_v21 = vpop.permute.xlu0 %2669 }
 0x14a   : > { %v2690_v16 = vrot.slane %v2682_v60, %v9155_v42  ;;  %v2801_v62 = vmul.bf16 %v7848_v5, %v10007_v15  ;;  %v2678_v34 = vrot.slane %v2670_v21, %v9155_v42  ;;  %8650 = vmatprep.subr.bf16.mxu0 %v5576_v31 }
 0x14b   : > { %5067 = vperm.xlu1 %8782, %v8032_v30  }
 0x14c   : > { %v7849_v6 = vcombine.low %v2678_v34, %v2690_v16  ;;  %8544 = vmatprep.mubr.msk.bf16.mxu0 %vm1155_vm5, %v2801_v62  ;;  %v8033_v16 = vld [vmem:[%s11387_s3 + $0x310] sm:$0xf] }
 0x14d   : > { %5031 = vperm.xlu0 %8781, %v8029_v10   ;;  %v3101_v33 = vpop.permute.xlu1 %3100  ;;  %v3089_v10 = vpop.permute.xlu0 %3088 }
 0x14e   : > { %v3109_v5 = vrot.slane %v3101_v33, %v9155_v42  ;;  %v2802_v60 = vmul.bf16 %v7849_v6, %v2254_v22  ;;  %v3097_v21 = vrot.slane %v3089_v10, %v9155_v42  ;;  %v8036_v6 = vld [vmem:[%s11387_s3 + $0x31c] sm:$0xf]  ;;  %v8035_v33 = vld [vmem:[%s11387_s3 + $0x318] sm:$0xf] }
 0x14f   : > { %5091 = vperm.xlu1 %8782, %v8034_v12  }
 0x150   : > { %v7899_v39 = vcombine.low %v3097_v21, %v3109_v5  ;;  %8545 = vmatmul.mubr.msk.bf16.gmra.mxu0 %vm1155_vm5, %v2802_v60 }
 0x151   : > { %5055 = vperm.xlu0 %8781, %v8031_v9   ;;  %v3125_v62 = vpop.permute.xlu1 %3124  ;;  %v3113_v30 = vpop.permute.xlu0 %3112  ;;  %8584 = vmatprep.mubr.msk.bf16.mxu0 %vm1155_vm5, %v9124_v11 }
 0x152   : > { %v3133_v34 = vrot.slane %v3125_v62, %v9155_v42  ;;  %v3566_v22 = vmul.bf16 %v7899_v39, %v9198_v8  ;;  %v3121_v9 = vrot.slane %v3113_v30, %v9155_v42  ;;  %v8038_v39 = vld [vmem:[%s11387_s3 + $0x324] sm:$0xf]  ;;  %v8037_v62 = vld [vmem:[%s11387_s3 + $0x320] sm:$0xf] }
 0x153   : > { %5115 = vperm.xlu1 %8782, %v8036_v6  }
 0x154   : > { %v7900_v5 = vcombine.low %v3121_v9, %v3133_v34  ;;  %8550 = vmatprep.mubr.msk.bf16.mxu1 %vm1155_vm5, %v3566_v22 }
 0x155   : > { %5079 = vperm.xlu0 %8781, %v8033_v16   ;;  %v3149_v10 = vpop.permute.xlu1 %3148 }
 0x156   : > { %v3157_v60 = vrot.slane %v3149_v10, %v9155_v42  ;;  %v3567_v12 = vmul.bf16 %v7900_v5, %v9217_v24  ;;  %v8039_v5 = vld [vmem:[%s11387_s3 + $0x328] sm:$0xf] }
 0x157   : > { %5139 = vperm.xlu1 %8782, %v8038_v39  }
 0x158   : > { %v3137_v21 = vpop.permute.xlu0 %3136  ;;  %8551 = vmatmul.mubr.msk.bf16.vlgmr.msra.gmra.mxu1 %vm1155_vm5, %v3567_v12  ;;  %8585 = vmatmul.mubr.msk.bf16.vlgmr.msra.gmra.mxu0 %vm1155_vm5, %v9130_v18 }
 0x159   : > { %v3145_v16 = vrot.slane %v3137_v21, %v9155_v42  ;;  %5103 = vperm.xlu0 %8781, %v8035_v33   ;;  %v3173_v30 = vpop.permute.xlu1 %3172  ;;  %8588 = vmatprep.mubr.msk.bf16.mxu0 %vm1155_vm5, %v9151_v35  ;;  %v8040_v33 = vld [vmem:[%s11387_s3 + $0x32c] sm:$0xf] }
 0x15a   : > { %v3181_v24 = vrot.slane %v3173_v30, %v9155_v42  ;;  %8617 = vmatpush3.bf16.msra.mxu1 %v9783_v4  ;;  %8651 = vmatpush3.bf16.msra.mxu0 %v5576_v31  ;;  %v8042_v4 = vld [vmem:[%s11387_s3 + $0x334] sm:$0xf]  ;;  %v8041_v31 = vld [vmem:[%s11387_s3 + $0x330] sm:$0xf] }
 0x15b   : > { %v7901_v34 = vcombine.low %v3145_v16, %v3157_v60  ;;  %5163 = vperm.xlu1 %8782, %v8040_v33  }
 0x15c   : > { %v3161_v22 = vpop.permute.xlu0 %3160 }
 0x15d   : > { %v3568_v9 = vmul.bf16 %v7901_v34, %v9249_v56  ;;  %v3169_v6 = vrot.slane %v3161_v22, %v9155_v42  ;;  %5127 = vperm.xlu0 %8781, %v8037_v62   ;;  %v3197_v60 = vpop.permute.xlu1 %3196  ;;  %v8044_v22 = vld [vmem:[%s11387_s3 + $0x33c] sm:$0xf] }
 0x15e   : > { %v3205_v56 = vrot.slane %v3197_v60, %v9155_v42 }
 0x15f   : > { %v7902_v10 = vcombine.low %v3169_v6, %v3181_v24  ;;  %8554 = vmatprep.mubr.msk.bf16.mxu1 %vm1155_vm5, %v3568_v9  ;;  %5187 = vperm.xlu1 %8782, %v8042_v4   ;;  %v8043_v9 = vld [vmem:[%s11387_s3 + $0x338] sm:$0xf] }
 0x160   : > { %v3185_v21 = vpop.permute.xlu0 %3184  ;;  %8589 = vmatmul.mubr.msk.bf16.gmra.mxu0 %vm1155_vm5, %v9171_v52 }
 0x161   : > { %v3569_v12 = vmul.bf16 %v7902_v10, %v9271_v19  ;;  %v3193_v16 = vrot.slane %v3185_v21, %v9155_v42  ;;  %5151 = vperm.xlu0 %8781, %v8039_v5   ;;  %v3221_v62 = vpop.permute.xlu1 %3220  ;;  %8592 = vmatprep.mubr.msk.bf16.mxu0 %vm1155_vm5, %v9206_v13  ;;  %v8045_v21 = vld [vmem:[%s11387_s3 + $0x340] sm:$0xf] }
 0x162   : > { %v3229_v19 = vrot.slane %v3221_v62, %v9155_v42  ;;  %v8048_v62 = vld [vmem:[%s11387_s3 + $0x34c] sm:$0xf] }
 0x163   : > { %v7903_v39 = vcombine.low %v3193_v16, %v3205_v56  ;;  %8555 = vmatmul.mubr.msk.bf16.gmra.mxu1 %vm1155_vm5, %v3569_v12  ;;  %5211 = vperm.xlu1 %8782, %v8044_v22   ;;  %v8046_v56 = vld [vmem:[%s11387_s3 + $0x344] sm:$0xf] }
 0x164   : > { %v3209_v34 = vpop.permute.xlu0 %3208 }
 0x165   : > { %v3570_v30 = vmul.bf16 %v7903_v39, %v9297_v50  ;;  %v3217_v24 = vrot.slane %v3209_v34, %v9155_v42  ;;  %5175 = vperm.xlu0 %8781, %v8041_v31   ;;  %v3245_v33 = vpop.permute.xlu1 %3244 }
 0x166   : > { %v3253_v5 = vrot.slane %v3245_v33, %v9155_v42  ;;  %v8049_v33 = vld [vmem:[%s11387_s3 + $0x350] sm:$0xf] }
 0x167   : > { %v7904_v6 = vcombine.low %v3217_v24, %v3229_v19  ;;  %8558 = vmatprep.mubr.msk.bf16.mxu1 %vm1155_vm5, %v3570_v30  ;;  %5235 = vperm.xlu1 %8782, %v8046_v56   ;;  %v8047_v19 = vld [vmem:[%s11387_s3 + $0x348] sm:$0xf] }
 0x168   : > { %v3233_v10 = vpop.permute.xlu0 %3232  ;;  %8593 = vmatmul.mubr.msk.bf16.gmra.mxu0 %vm1155_vm5, %v9219_v25 }
 0x169   : > { %v3571_v50 = vmul.bf16 %v7904_v6, %v9318_v20  ;;  %v3241_v60 = vrot.slane %v3233_v10, %v9155_v42  ;;  %5199 = vperm.xlu0 %8781, %v8043_v9   ;;  %v3269_v16 = vpop.permute.xlu1 %3268  ;;  %8596 = vmatprep.mubr.msk.bf16.mxu0 %vm1155_vm5, %v9240_v48  ;;  %v8050_v6 = vld [vmem:[%s11387_s3 + $0x354] sm:$0xf] }
 0x16a   : > { %v3277_v20 = vrot.slane %v3269_v16, %v9155_v42 }
 0x16b   : > { %v7905_v12 = vcombine.low %v3241_v60, %v3253_v5  ;;  %8559 = vmatmul.mubr.msk.bf16.gmra.mxu1 %vm1155_vm5, %v3571_v50  ;;  %5259 = vperm.xlu1 %8782, %v8048_v62   ;;  %v8054_v62 = vld [vmem:[%s11387_s3 + $0x364] sm:$0xf] }
 0x16c   : > { %v3257_v4 = vpop.permute.xlu0 %3256 }
 0x16d   : > { %v3572_v31 = vmul.bf16 %v7905_v12, %v9340_v46  ;;  %v3265_v39 = vrot.slane %v3257_v4, %v9155_v42  ;;  %5223 = vperm.xlu0 %8781, %v8045_v21   ;;  %v3293_v30 = vpop.permute.xlu1 %3292  ;;  %v8052_v21 = vld [vmem:[%s11387_s3 + $0x35c] sm:$0xf]  ;;  %v8051_v12 = vld [vmem:[%s11387_s3 + $0x358] sm:$0xf] }
 0x16e   : > { %v3301_v24 = vrot.slane %v3293_v30, %v9155_v42  ;;  %v8053_v30 = vld [vmem:[%s11387_s3 + $0x360] sm:$0xf] }
 0x16f   : > { %v7906_v34 = vcombine.low %v3265_v39, %v3277_v20  ;;  %8562 = vmatprep.mubr.msk.bf16.mxu1 %vm1155_vm5, %v3572_v31  ;;  %5283 = vperm.xlu1 %8782, %v8050_v6  }
 0x170   : > { %v3281_v22 = vpop.permute.xlu0 %3280  ;;  %8597 = vmatmul.mubr.msk.bf16.gmra.mxu0 %vm1155_vm5, %v9280_v26  ;;  %v8208_v26 = vld [vmem:[%s11385_s1 + $0x10] sm:$0x3] }
 0x171   : > { %v3573_v46 = vmul.bf16 %v7906_v34, %v9371_v53  ;;  %v3289_v9 = vrot.slane %v3281_v22, %v9155_v42  ;;  %5247 = vperm.xlu0 %8781, %v8047_v19   ;;  %v3317_v10 = vpop.permute.xlu1 %3316  ;;  %8600 = vmatprep.mubr.msk.bf16.mxu0 %vm1155_vm5, %v9304_v58  ;;  %v10157_v19 = vpop.f32.mrf.mxu0 }
 0x172   : > { %v3325_v53 = vrot.slane %v3317_v10, %v9155_v42 }
 0x173   : > { %v7907_v5 = vcombine.low %v3289_v9, %v3301_v24  ;;  %8563 = vmatmul.mubr.msk.bf16.gmra.mxu1 %vm1155_vm5, %v3573_v46  ;;  %5307 = vperm.xlu1 %8782, %v8052_v21   ;;  %v10177_v10 = vpop.f32.mrf.mxu0 }
 0x174   : > { %v3305_v50 = vpop.permute.xlu0 %3304  ;;  %v10159_v34 = vpop.f32.mrf.mxu1 }
 0x175   : > { %v3574_v60 = vmul.bf16 %v7907_v5, %v9390_v37  ;;  %v3313_v56 = vrot.slane %v3305_v50, %v9155_v42  ;;  %5271 = vperm.xlu0 %8781, %v8049_v33   ;;  %v3341_v20 = vpop.permute.xlu1 %3340  ;;  %v8056_v5 = vld [vmem:[%s11387_s3 + $0x36c] sm:$0xf]  ;;  %v8055_v50 = vld [vmem:[%s11387_s3 + $0x368] sm:$0xf] }
 0x176   : > { %v3349_v4 = vrot.slane %v3341_v20, %v9155_v42  ;;  %v10168_v9 = vpop.f32.mrf.mxu1 }
 0x177   : > { %v7908_v16 = vcombine.low %v3313_v56, %v3325_v53  ;;  %8566 = vmatprep.mubr.msk.bf16.mxu1 %vm1155_vm5, %v3574_v60  ;;  %5331 = vperm.xlu1 %8782, %v8054_v62  }
 0x178   : > { %v3329_v31 = vpop.permute.xlu0 %3328  ;;  %8601 = vmatmul.mubr.msk.bf16.gmra.mxu0 %vm1155_vm5, %v9311_v0  ;;  %v10179_v53 = vpop.f32.mrf.mxu1 }
 0x179   : > { %v3575_v37 = vmul.bf16 %v7908_v16, %v9411_v23  ;;  %v3337_v39 = vrot.slane %v3329_v31, %v9155_v42  ;;  %5295 = vperm.xlu0 %8781, %v8051_v12   ;;  %v3365_v22 = vpop.permute.xlu1 %3364  ;;  %8604 = vmatprep.mubr.msk.bf16.mxu0 %vm1155_vm5, %v9349_v7  ;;  %v10193_v31 = vpop.f32.mrf.mxu0 }
 0x17a   : > { %v3373_v23 = vrot.slane %v3365_v22, %v9155_v42  ;;  %v10186_v12 = vpop.f32.mrf.mxu1 }
 0x17b   : > { %v7909_v24 = vcombine.low %v3337_v39, %v3349_v4  ;;  %8567 = vmatmul.mubr.msk.bf16.gmra.mxu1 %vm1155_vm5, %v3575_v37  ;;  %5355 = vperm.xlu1 %8782, %v8056_v5   ;;  %v7979_v4 = vld [vmem:[%s11387_s3 + $0x2f4] sm:$0xf]  ;;  %v7978_v39 = vld [vmem:[%s11387_s3 + $0x2f0] sm:$0xf] }
 0x17c   : > { %v3353_v46 = vpop.permute.xlu0 %3352  ;;  %v10195_v37 = vpop.f32.mrf.mxu1 }
 0x17d   : > { %v3576_v6 = vmul.bf16 %v7909_v24, %v9438_v41  ;;  %v3361_v33 = vrot.slane %v3353_v46, %v9155_v42  ;;  %5319 = vperm.xlu0 %8781, %v8053_v30   ;;  %v3389_v56 = vpop.permute.xlu1 %3388 }
 0x17e   : > { %v3397_v41 = vrot.slane %v3389_v56, %v9155_v42  ;;  %v10204_v22 = vpop.f32.mrf.mxu1 }
 0x17f   : > { %v7910_v60 = vcombine.low %v3361_v33, %v3373_v23  ;;  %8570 = vmatprep.mubr.msk.bf16.mxu1 %vm1155_vm5, %v3576_v6  ;;  %4450 = vperm.xlu1 %8782, %v7979_v4   ;;  %v7981_v6 = vld [vmem:[%s11387_s3 + $0x2fc] sm:$0xf]  ;;  %v10213_v33 = vpop.f32.mrf.mxu0 }
 0x180   : > { %v3377_v21 = vpop.permute.xlu0 %3376  ;;  %8605 = vmatmul.mubr.msk.bf16.gmra.mxu0 %vm1155_vm5, %v9374_v28  ;;  %11502 = vst [vmem:[#allocation37_spill] sm:$0xff] %v10213_v33  ;;  %v10215_v5 = vpop.f32.mrf.mxu1  ;;  %v358_v28 = vld [vmem:[#allocation2 + $0x18] sm:$0xff] }
 0x181   : > { %v3577_v16 = vmul.bf16 %v7910_v60, %v9457_v49  ;;  %v3385_v20 = vrot.slane %v3377_v21, %v9155_v42  ;;  %5343 = vperm.xlu0 %8781, %v8055_v50   ;;  %v3413_v30 = vpop.permute.xlu1 %3412  ;;  %8608 = vmatprep.mubr.msk.bf16.mxu0 %vm1155_vm5, %v9398_v36  ;;  %v7980_v50 = vld [vmem:[%s11387_s3 + $0x2f8] sm:$0xf]  ;;  %v11503_v60 = vshrl.u32 %v9522_v32, 16 }
 0x182   : > { %v3421_v49 = vrot.slane %v3413_v30, %v9155_v42  ;;  %v10231_v30 = vpop.f32.mrf.mxu0 }
 0x183   : > { %v7911_v62 = vcombine.low %v3385_v20, %v3397_v41  ;;  %8571 = vmatmul.mubr.msk.bf16.gmra.mxu1 %vm1155_vm5, %v3577_v16  ;;  %v3049_v56 = vrot.slane %v11503_v60, 7  ;;  %4474 = vperm.xlu1 %8782, %v7981_v6   ;;  %v10224_v20 = vpop.f32.mrf.mxu1 }
 0x184   : > { %v3401_v24 = vpop.permute.xlu0 %3400 }
 0x185   : > { %v3578_v23 = vmul.bf16 %v7911_v62, %v9475_v1  ;;  %v3409_v46 = vrot.slane %v3401_v24, %v9155_v42  ;;  %4438 = vperm.xlu0 %8781, %v7978_v39   ;;  %v3437_v1 = vpop.permute.xlu1 %3436  ;;  %v8058_v62 = vld [vmem:[%s11387_s3 + $0x374] sm:$0xf]  ;;  %v11504_v24 = vshll.u32 %v9522_v32, 16 }
 0x186   : > { %v3445_v21 = vrot.slane %v3437_v1, %v9155_v42 }
 0x187   : > { %v7912_v41 = vcombine.low %v3409_v46, %v3421_v49  ;;  %8574 = vmatprep.mubr.msk.bf16.mxu1 %vm1155_vm5, %v3578_v23  ;;  %v10233_v49 = vpop.f32.mrf.mxu1  ;;  %v3050_v23 = vor.u32 %v3049_v56, %v11504_v24  ;;  %v8057_v46 = vld [vmem:[%s11387_s3 + $0x370] sm:$0xf]  ;;  %5379 = vperm.xlu1 %8782, %v8058_v62   ;;  %v8059_v62 = vld [vmem:[%s11387_s3 + $0x378] sm:$0xf] }
 0x188   : > { %v3425_v16 = vpop.permute.xlu0 %3424  ;;  %8609 = vmatmul.mubr.msk.bf16.gmra.mxu0 %vm1155_vm5, %v9422_v38 }
 0x189   : > { %v3579_v4 = vmul.bf16 %v7912_v41, %v9495_v27  ;;  %v3433_v39 = vrot.slane %v3425_v16, %v9155_v42  ;;  %4462 = vperm.xlu0 %8781, %v7980_v50   ;;  %v3461_v27 = vpop.permute.xlu1 %3460  ;;  %v10244_v41 = vpop.f32.mrf.mxu1  ;;  %8612 = vmatprep.mubr.msk.bf16.mxu0 %vm1155_vm5, %v9429_v59  ;;  %v8096_v59 = vld [vmem:[%s11387_s3 + $0x388] sm:$0xf] }
 0x18a   : > { %v3469_v50 = vrot.slane %v3461_v27, %v9155_v42  ;;  %v10253_v16 = vpop.f32.mrf.mxu0 }
 0x18b   : > { %v7913_v6 = vcombine.low %v3433_v39, %v3445_v21  ;;  %8575 = vmatmul.mubr.msk.bf16.gmra.mxu1 %vm1155_vm5, %v3579_v4  ;;  %v8060_v21 = vld [vmem:[%s11387_s3 + $0x37c] sm:$0xf]  ;;  %v3051_v4 = vsel %vm488_vm2, %v9484_v40, %v3050_v23  ;;  %v10257_v39 = vpop.f32.mrf.mxu1  ;;  %v8095_v40 = vld [vmem:[%s11387_s3 + $0x384] sm:$0xf] }
 0x18c   : > { %v3449_v60 = vpop.permute.xlu0 %3448  ;;  %5403 = vperm.xlu1 %8782, %v8060_v21   ;;  %v10270_v23 = vpop.f32.mrf.mxu0 }
 0x18d   : > { %v3580_v56 = vmul.bf16 %v7913_v6, %v9511_v57  ;;  %v3457_v1 = vrot.slane %v3449_v60, %v9155_v42  ;;  %5367 = vperm.xlu0 %8781, %v8057_v46   ;;  %v4115_v57 = vpop.permute.xlu1 %4114  ;;  %v10264_v27 = vpop.f32.mrf.mxu1 }
 0x18e   : > { %v4123_v46 = vrot.slane %v4115_v57, %v9155_v42  ;;  %v8142_v57 = vld [vmem:[%s11385_s1 + $0xe] sm:$0x3] }
 0x18f   : > { %v7914_v24 = vcombine.low %v3457_v1, %v3469_v50  ;;  %8578 = vmatprep.mubr.msk.bf16.mxu1 %vm1155_vm5, %v3580_v56  ;;  %v10272_v50 = vpop.f32.mrf.mxu1  ;;  %v8094_v56 = vld [vmem:[%s11387_s3 + $0x380] sm:$0xf] }
 0x190   : > { %v4103_v6 = vpop.permute.xlu0 %4102  ;;  %8613 = vmatmul.mubr.msk.bf16.gmra.mxu0 %vm1155_vm5, %v9522_v32  ;;  %5818 = vperm.xlu1 %8782, %v8095_v40   ;;  %v10292_v32 = vpop.f32.mrf.mxu0 }
 0x191   : > { %v3581_v60 = vmul.bf16 %v7914_v24, %v3051_v4  ;;  %v4111_v11 = vrot.slane %v4103_v6, %v9155_v42  ;;  %5391 = vperm.xlu0 %8781, %v8059_v62   ;;  %v4139_v21 = vpop.permute.xlu1 %4138  ;;  %v10281_v24 = vpop.f32.mrf.mxu1  ;;  %11505 = vst [vmem:[#allocation38_spill] sm:$0xff] %v10292_v32 }
 0x192   : > { %v4147_v4 = vrot.slane %v4139_v21, %v9155_v42  ;;  %v357_v21 = vld [vmem:[#allocation2 + $0x10] sm:$0xff] }
 0x193   : > { %v7982_v1 = vcombine.low %v4111_v11, %v4123_v46  ;;  %8579 = vmatmul.mubr.msk.bf16.gmra.mxu1 %vm1155_vm5, %v3581_v60  ;;  %v8097_v46 = vld [vmem:[%s11387_s3 + $0x38c] sm:$0xf]  ;;  %v6351_v60 = vand.u32 %v8142_v57, %v8948_v17  ;;  %v10294_v40 = vpop.f32.mrf.mxu1  ;;  %v1374_v36 = vadd.f32 %v10157_v19, %v357_v21 }
 0x194   : > { %v4127_v62 = vpop.permute.xlu0 %4126  ;;  %5842 = vperm.xlu1 %8782, %v8097_v46   ;;  %v8160_v46 = vld [vmem:[%s11387_s3 + $0x400] sm:$0xf] }
 0x195   : > { %v4580_v6 = vmul.bf16 %v7982_v1, %v9777_v14  ;;  %v4135_v11 = vrot.slane %v4127_v62, %v9155_v42  ;;  %5806 = vperm.xlu0 %8781, %v8094_v56   ;;  %v4163_v14 = vpop.permute.xlu1 %4162  ;;  %8684 = vmatprep.subr.bf16.mxu1 %v6351_v60  ;;  %v355_v56 = vld [vmem:[#allocation2] sm:$0xff]  ;;  %v10301_v57 = vpop.f32.mrf.mxu1 }
 0x196   : > { %v4171_v1 = vrot.slane %v4163_v14, %v9155_v42  ;;  %11506 = vst [vmem:[#allocation39_spill] sm:$0xff] %v10301_v57  ;;  %v1372_v14 = vadd.f32 %v10177_v10, %v355_v56 }
 0x197   : > { %v7983_v38 = vcombine.low %v4135_v11, %v4147_v4  ;;  %8618 = vmatprep.mubr.msk.bf16.mxu1 %vm1155_vm5, %v4580_v6  ;;  %v8161_v4 = vld [vmem:[%s11387_s3 + $0x404] sm:$0xf]  ;;  %v10309_v6 = vpop.f32.mrf.mxu0  ;;  %v8484_v11 = vpop.f32.mrf.mxu1 }
 0x198   : > { %v4151_v62 = vpop.permute.xlu0 %4150  ;;  %v10315_v21 = vadd.f32 %v8484_v11, %v1374_v36  ;;  %6600 = vperm.xlu1 %8782, %v8161_v4  }
 0x199   : > { %v4581_v7 = vmul.bf16 %v7983_v38, %v9801_v2  ;;  %v4159_v0 = vrot.slane %v4151_v62, %v9155_v42  ;;  %5830 = vperm.xlu0 %8781, %v8096_v59   ;;  %v4187_v38 = vpop.permute.xlu1 %4186  ;;  %v1375_v59 = vadd.f32 %v10193_v31, %v358_v28  ;;  %v2037_v58 = vpop.f32.mrf.mxu1  ;;  %v8163_v28 = vld [vmem:[%s11387_s3 + $0x40c] sm:$0xf]  ;;  %v361_v31 = vld [vmem:[#allocation2 + $0x30] sm:$0xff] }
 0x19a   : > { %v4195_v62 = vrot.slane %v4187_v38, %v9155_v42  ;;  %v10325_v36 = vadd.f32 %v2037_v58, %v1372_v14  ;;  %v1378_v14 = vadd.f32 %v10231_v30, %v361_v31 }
 0x19b   : > { %v7984_v19 = vcombine.low %v4159_v0, %v4171_v1  ;;  %8619 = vmatmul.mubr.msk.bf16.vlgmr.msra.gmra.mxu1 %vm1155_vm5, %v4581_v7  ;;  %v10331_v7 = vand.u32 %v8208_v26, %v8948_v17  ;;  %v8485_v56 = vpop.f32.mrf.mxu1  ;;  %v8162_v1 = vld [vmem:[%s11387_s3 + $0x408] sm:$0xf] }
 0x19c   : > { %v4175_v57 = vpop.permute.xlu0 %4174  ;;  %8685 = vmatpush3.bf16.msra.mxu1 %v6351_v60  ;;  %v1277_v60 = vpop.f32.mrf.mxu0  ;;  %v10336_v11 = vadd.f32 %v8485_v56, %v1375_v59  ;;  %6624 = vperm.xlu1 %8782, %v8163_v28   ;;  %v8099_v59 = vld [vmem:[%s11387_s3 + $0x394] sm:$0xf]  ;;  %v8098_v28 = vld [vmem:[%s11387_s3 + $0x390] sm:$0xf] }
 0x19d   : > { %v4582_v10 = vmul.bf16 %v7984_v19, %v9819_v29  ;;  %v4183_v0 = vrot.slane %v4175_v57, %v9155_v42  ;;  %6588 = vperm.xlu0 %8781, %v8160_v46   ;;  %v4211_v58 = vpop.permute.xlu1 %4210  ;;  %8718 = vmatprep.subr.bf16.mxu0 %v10331_v7  ;;  %v359_v57 = vld [vmem:[#allocation2 + $0x20] sm:$0xff]  ;;  %v10341_v26 = vpop.f32.mrf.mxu1 }
 0x19e   : > { %v4219_v46 = vrot.slane %v4211_v58, %v9155_v42  ;;  %11507 = vst [vmem:[#allocation40_spill] sm:$0xff] %v10341_v26  ;;  %v1376_v56 = vadd.f32 %v10253_v16, %v359_v57  ;;  %v8101_v16 = vld [vmem:[%s11387_s3 + $0x39c] sm:$0xf]  ;;  %v365_v57 = vld [vmem:[#allocation2 + $0x50] sm:$0xff] }
 0x19f   : > { %v7985_v4 = vcombine.low %v4183_v0, %v4195_v62  ;;  %8622 = vmatprep.mubr.msk.bf16.mxu1 %vm1155_vm5, %v4582_v10  ;;  %v362_v62 = vld [vmem:[#allocation2 + $0x38] sm:$0xff]  ;;  %v8459_v10 = vpop.f32.mrf.mxu0  ;;  %v8488_v0 = vpop.f32.mrf.mxu1 }
 0x1a0   : > { %v4199_v17 = vpop.permute.xlu0 %4198  ;;  %v10353_v30 = vadd.f32 %v8488_v0, %v1378_v14  ;;  %5866 = vperm.xlu1 %8782, %v8099_v59   ;;  %v1379_v48 = vadd.f32 %v10270_v23, %v362_v62  ;;  %v363_v62 = vld [vmem:[#allocation2 + $0x40] sm:$0xff] }
 0x1a1   : > { %v4583_v19 = vmul.bf16 %v7985_v4, %v9836_v55  ;;  %v4207_v38 = vrot.slane %v4199_v17, %v9155_v42  ;;  %6612 = vperm.xlu0 %8781, %v8162_v1   ;;  %v4235_v31 = vpop.permute.xlu1 %4234  ;;  %v2053_v17 = vpop.f32.mrf.mxu1 }
 0x1a2   : > { %v4243_v1 = vrot.slane %v4235_v31, %v9155_v42  ;;  %v10360_v13 = vadd.f32 %v2053_v17, %v1376_v56  ;;  %v8164_v17 = vld [vmem:[%s11387_s3 + $0x410] sm:$0xf] }
 0x1a3   : > { %v7986_v58 = vcombine.low %v4207_v38, %v4219_v46  ;;  %8623 = vmatmul.mubr.msk.bf16.gmra.mxu1 %vm1155_vm5, %v4583_v19  ;;  %v10365_v46 = vpop.f32.mrf.mxu0  ;;  %v8489_v14 = vpop.f32.mrf.mxu1  ;;  %v8100_v19 = vld [vmem:[%s11387_s3 + $0x398] sm:$0xf] }
 0x1a4   : > { %v4223_v4 = vpop.permute.xlu0 %4222  ;;  %11508 = vst [vmem:[#allocation41_spill] sm:$0xff] %v10365_v46  ;;  %v10370_v38 = vadd.f32 %v8489_v14, %v1379_v48  ;;  %5890 = vperm.xlu1 %8782, %v8101_v16   ;;  %v8165_v48 = vld [vmem:[%s11387_s3 + $0x414] sm:$0xf]  ;;  %v1380_v16 = vadd.f32 %v1277_v60, %v363_v62  ;;  %v8167_v60 = vld [vmem:[%s11387_s3 + $0x41c] sm:$0xf] }
 0x1a5   : > { %v4584_v25 = vmul.bf16 %v7986_v58, %v9853_v3  ;;  %v4231_v55 = vrot.slane %v4223_v4, %v9155_v42  ;;  %5854 = vperm.xlu0 %8781, %v8098_v28   ;;  %v4259_v59 = vpop.permute.xlu1 %4258  ;;  %v10374_v56 = vpop.f32.mrf.mxu1  ;;  %v1382_v58 = vadd.f32 %v10309_v6, %v365_v57  ;;  %v369_v62 = vld [vmem:[#allocation2 + $0x70] sm:$0xff] }
 0x1a6   : > { %v4267_v0 = vrot.slane %v4259_v59, %v9155_v42  ;;  %11509 = vst [vmem:[#allocation42_spill] sm:$0xff] %v10374_v56 }
 0x1a7   : > { %v7987_v23 = vcombine.low %v4231_v55, %v4243_v1  ;;  %8626 = vmatprep.mubr.msk.bf16.mxu1 %vm1155_vm5, %v4584_v25  ;;  %v366_v25 = vld [vmem:[#allocation2 + $0x58] sm:$0xff]  ;;  %v8462_v55 = vpop.f32.mrf.mxu0  ;;  %v8492_v1 = vpop.f32.mrf.mxu1 }
 0x1a8   : > { %v4247_v28 = vpop.permute.xlu0 %4246  ;;  %v10385_v59 = vadd.f32 %v8492_v1, %v1382_v58  ;;  %6648 = vperm.xlu1 %8782, %v8165_v48  }
 0x1a9   : > { %v4585_v31 = vmul.bf16 %v7987_v23, %v9872_v51  ;;  %v4255_v4 = vrot.slane %v4247_v28, %v9155_v42  ;;  %5878 = vperm.xlu0 %8781, %v8100_v19   ;;  %v4283_v6 = vpop.permute.xlu1 %4282  ;;  %v2069_v23 = vpop.f32.mrf.mxu1  ;;  %v1383_v28 = vadd.f32 %v8459_v10, %v366_v25  ;;  %v367_v25 = vld [vmem:[#allocation2 + $0x60] sm:$0xff] }
 0x1aa   : > { %v4291_v57 = vrot.slane %v4283_v6, %v9155_v42  ;;  %v10391_v46 = vadd.f32 %v2069_v23, %v1380_v16 }
 0x1ab   : > { %v7988_v14 = vcombine.low %v4255_v4, %v4267_v0  ;;  %8627 = vmatmul.mubr.msk.bf16.gmra.mxu1 %vm1155_vm5, %v4585_v31  ;;  %v1293_v0 = vpop.f32.mrf.mxu0  ;;  %v8493_v58 = vpop.f32.mrf.mxu1  ;;  %v8166_v31 = vld [vmem:[%s11387_s3 + $0x418] sm:$0xf] }
 0x1ac   : > { %v4271_v19 = vpop.permute.xlu0 %4270  ;;  %v10399_v10 = vadd.f32 %v8493_v58, %v1383_v28  ;;  %6672 = vperm.xlu1 %8782, %v8167_v60   ;;  %v8102_v28 = vld [vmem:[%s11387_s3 + $0x3a0] sm:$0xf]  ;;  %v1384_v60 = vadd.f32 %v1293_v0, %v367_v25  ;;  %v8105_v0 = vld [vmem:[%s11387_s3 + $0x3ac] sm:$0xf]  ;;  %v373_v25 = vld [vmem:[#allocation2 + $0x90] sm:$0xff] }
 0x1ad   : > { %v4586_v51 = vmul.bf16 %v7988_v14, %v9887_v47  ;;  %v4279_v3 = vrot.slane %v4271_v19, %v9155_v42  ;;  %6636 = vperm.xlu0 %8781, %v8164_v17   ;;  %v4307_v48 = vpop.permute.xlu1 %4306  ;;  %v10403_v16 = vpop.f32.mrf.mxu1  ;;  %v1386_v14 = vadd.f32 %v8462_v55, %v369_v62 }
 0x1ae   : > { %v4315_v1 = vrot.slane %v4307_v48, %v9155_v42  ;;  %11510 = vst [vmem:[#allocation43_spill] sm:$0xff] %v10403_v16 }
 0x1af   : > { %v7989_v4 = vcombine.low %v4279_v3, %v4291_v57  ;;  %8630 = vmatprep.mubr.msk.bf16.mxu1 %vm1155_vm5, %v4586_v51  ;;  %v8103_v3 = vld [vmem:[%s11387_s3 + $0x3a4] sm:$0xf]  ;;  %v370_v57 = vld [vmem:[#allocation2 + $0x78] sm:$0xff]  ;;  %v8463_v51 = vpop.f32.mrf.mxu0  ;;  %v8496_v23 = vpop.f32.mrf.mxu1 }
 0x1b0   : > { %v4295_v17 = vpop.permute.xlu0 %4294  ;;  %v10413_v48 = vadd.f32 %v8496_v23, %v1386_v14  ;;  %5914 = vperm.xlu1 %8782, %v8103_v3   ;;  %v8104_v14 = vld [vmem:[%s11387_s3 + $0x3a8] sm:$0xf] }
 0x1b1   : > { %v4587_v6 = vmul.bf16 %v7989_v4, %v9904_v61  ;;  %v4303_v19 = vrot.slane %v4295_v17, %v9155_v42  ;;  %6660 = vperm.xlu0 %8781, %v8166_v31   ;;  %v4331_v55 = vpop.permute.xlu1 %4330  ;;  %v2085_v4 = vpop.f32.mrf.mxu1  ;;  %v1387_v17 = vadd.f32 %v8463_v51, %v370_v57  ;;  %v371_v57 = vld [vmem:[#allocation2 + $0x80] sm:$0xff] }
 0x1b2   : > { %v4339_v62 = vrot.slane %v4331_v55, %v9155_v42  ;;  %v10419_v16 = vadd.f32 %v2085_v4, %v1384_v60  ;;  %v1390_v60 = vadd.f32 %v10159_v34, %v373_v25  ;;  %v374_v55 = vld [vmem:[#allocation2 + $0x98] sm:$0xff]  ;;  %v8803_v4 = vld [vmem:[%s9097_s28 + $0x4] sm:$0xf]  ;;  %v8806_v25 = vld [vmem:[%s9097_s28 + $0x10] sm:$0xf] }
 0x1b3   : > { %v7990_v58 = vcombine.low %v4303_v19, %v4315_v1  ;;  %8631 = vmatmul.mubr.msk.bf16.gmra.mxu1 %vm1155_vm5, %v4587_v6  ;;  %v8497_v1 = vpop.f32.mrf.mxu1 }
 0x1b4   : > { %v4319_v31 = vpop.permute.xlu0 %4318  ;;  %v10427_v19 = vadd.f32 %v8497_v1, %v1387_v17  ;;  %5938 = vperm.xlu1 %8782, %v8105_v0   ;;  %v8804_v17 = vld [vmem:[%s9097_s28 + $0x8] sm:$0xf]  ;;  %v8805_v0 = vld [vmem:[%s9097_s28 + $0xc] sm:$0xf] }
 0x1b5   : > { %v4588_v61 = vmul.bf16 %v7990_v58, %v9921_v45  ;;  %v4327_v47 = vrot.slane %v4319_v31, %v9155_v42  ;;  %5902 = vperm.xlu0 %8781, %v8102_v28   ;;  %v4355_v3 = vpop.permute.xlu1 %4354  ;;  %v10431_v28 = vpop.f32.mrf.mxu1  ;;  %v8168_v31 = vld [vmem:[%s11387_s3 + $0x420] sm:$0xf]  ;;  %v8015_v34 = vcombine.low %v8803_v4, %v8804_v17  ;;  %v8016_v1 = vcombine.low %v8805_v0, %v8806_v25  ;;  %v8808_v45 = vld [vmem:[%s9097_s28 + $0x18] sm:$0xf]  ;;  %v377_v17 = vld [vmem:[#allocation2 + $0xb0] sm:$0xff] }
 0x1b6   : > { %v4363_v51 = vrot.slane %v4355_v3, %v9155_v42  ;;  %11511 = vst [vmem:[#allocation44_spill] sm:$0xff] %v10431_v28  ;;  %v1391_v4 = vadd.f32 %v10179_v53, %v374_v55 }
 0x1b7   : > { %v7991_v6 = vcombine.low %v4327_v47, %v4339_v62  ;;  %8634 = vmatprep.mubr.msk.bf16.mxu1 %vm1155_vm5, %v4588_v61  ;;  %v8169_v61 = vld [vmem:[%s11387_s3 + $0x424] sm:$0xf]  ;;  %v8500_v62 = vpop.f32.mrf.mxu1  ;;  %v4860_v53 = vshll.u32 %v8015_v34, 16 }
 0x1b8   : > { %v4343_v23 = vpop.permute.xlu0 %4342  ;;  %v10447_v3 = vadd.f32 %v8500_v62, %v1390_v60  ;;  %6696 = vperm.xlu1 %8782, %v8169_v61   ;;  %v4857_v60 = vshrl.u32 %v8015_v34, 16  ;;  %v375_v62 = vld [vmem:[#allocation2 + $0xa0] sm:$0xff] }
 0x1b9   : > { %v4589_v47 = vmul.bf16 %v7991_v6, %v9938_v63  ;;  %v4351_v58 = vrot.slane %v4343_v23, %v9155_v42  ;;  %5926 = vperm.xlu0 %8781, %v8104_v14   ;;  %v1388_v14 = vadd.f32 %v10168_v9, %v371_v57  ;;  %v4379_v23 = vpop.permute.xlu1 %4378  ;;  %v8807_v63 = vld [vmem:[%s9097_s28 + $0x14] sm:$0xf]  ;;  %v2101_v32 = vpop.f32.mrf.mxu1  ;;  %v4862_v29 = vrot.slane %v4860_v53, 4 }
 0x1ba   : > { %v8017_v28 = vcombine.low %v8807_v63, %v8808_v45  ;;  %v4387_v56 = vrot.slane %v4379_v23, %v9155_v42  ;;  %v8170_v63 = vld [vmem:[%s11387_s3 + $0x428] sm:$0xf]  ;;  %v8809_v23 = vld [vmem:[%s9097_s28 + $0x1c] sm:$0xf] }
 0x1bb   : > { %v7992_v6 = vcombine.low %v4351_v58, %v4363_v51  ;;  %8635 = vmatmul.mubr.msk.bf16.gmra.mxu1 %vm1155_vm5, %v4589_v47  ;;  %v10456_v57 = vadd.f32 %v2101_v32, %v1388_v14  ;;  %v8171_v51 = vld [vmem:[%s11387_s3 + $0x42c] sm:$0xf]  ;;  %v8501_v45 = vpop.f32.mrf.mxu1  ;;  %v4865_v47 = vshrl.u32 %v8016_v1, 16  ;;  %v4868_v58 = vshll.u32 %v8016_v1, 16 }
 0x1bc   : > { %v4367_v52 = vpop.permute.xlu0 %4366  ;;  %v4874_v55 = vshrl.u32 %v8017_v28, 16  ;;  %6720 = vperm.xlu1 %8782, %v8171_v51   ;;  %v1394_v1 = vadd.f32 %v10195_v37, %v377_v17  ;;  %v4859_v51 = vrot.slane %v4857_v60, 3  ;;  %v1392_v37 = vadd.f32 %v10204_v22, %v375_v62 }
 0x1bd   : > { %v4590_v0 = vmul.bf16 %v7992_v6, %v9955_v44  ;;  %v4375_v9 = vrot.slane %v4367_v52, %v9155_v42  ;;  %6684 = vperm.xlu0 %8781, %v8168_v31   ;;  %v10464_v52 = vadd.f32 %v8501_v45, %v1391_v4  ;;  %v4403_v32 = vpop.permute.xlu1 %4402  ;;  %v10468_v14 = vpop.f32.mrf.mxu1  ;;  %v4877_v6 = vshll.u32 %v8017_v28, 16  ;;  %v8810_v44 = vld [vmem:[%s9097_s28 + $0x20] sm:$0xf]  ;;  %v11512_v4 = vld [vmem:[#allocation34_spill] sm:$0xff]  ;;  %v8107_v45 = vld [vmem:[%s11387_s3 + $0x3b4] sm:$0xf] }
 0x1be   : > { %v4411_v31 = vrot.slane %v4403_v32, %v9155_v42  ;;  %v8018_v34 = vcombine.low %v8809_v23, %v8810_v44  ;;  %v8106_v28 = vld [vmem:[%s11387_s3 + $0x3b0] sm:$0xf]  ;;  %v4867_v44 = vrot.slane %v4865_v47, 3  ;;  %v4870_v23 = vrot.slane %v4868_v58, 4 }
 0x1bf   : > { %v7993_v61 = vcombine.low %v4375_v9, %v4387_v56  ;;  %8638 = vmatprep.mubr.msk.bf16.mxu1 %vm1155_vm5, %v4590_v0  ;;  %v378_v56 = vld [vmem:[#allocation2 + $0xb8] sm:$0xff]  ;;  %v8504_v32 = vpop.f32.mrf.mxu1  ;;  %v4879_v60 = vrot.slane %v4877_v6, 4 }
 0x1c0   : > { %v4391_v25 = vpop.permute.xlu0 %4390  ;;  %5962 = vperm.xlu1 %8782, %v8107_v45   ;;  %v4883_v53 = vshrl.u32 %v8018_v34, 16  ;;  %v4886_v47 = vshll.u32 %v8018_v34, 16  ;;  %v1395_v58 = vadd.f32 %v10215_v5, %v378_v56  ;;  %v4871_v45 = vor.u32 %v4870_v23, %v4867_v44  ;;  %v8108_v6 = vld [vmem:[%s11387_s3 + $0x3b8] sm:$0xf]  ;;  %v8811_v5 = vld [vmem:[%s9097_s28 + $0x24] sm:$0xf] }
 0x1c1   : > { %v4591_v9 = vmul.bf16 %v7993_v61, %v11512_v4  ;;  %v4399_v0 = vrot.slane %v4391_v25, %v9155_v42  ;;  %6708 = vperm.xlu0 %8781, %v8170_v63   ;;  %v10482_v61 = vadd.f32 %v8504_v32, %v1394_v1  ;;  %v4427_v63 = vpop.permute.xlu1 %4426  ;;  %v4876_v25 = vrot.slane %v4874_v55, 3  ;;  %v2117_v2 = vpop.f32.mrf.mxu1  ;;  %v8109_v55 = vld [vmem:[%s11387_s3 + $0x3bc] sm:$0xf]  ;;  %v381_v1 = vld [vmem:[#allocation2 + $0xd0] sm:$0xff]  ;;  %v8812_v34 = vld [vmem:[%s9097_s28 + $0x28] sm:$0xf] }
 0x1c2   : > { %v4435_v4 = vrot.slane %v4427_v63, %v9155_v42  ;;  %v8019_v56 = vcombine.low %v8811_v5, %v8812_v34  ;;  %v4885_v44 = vrot.slane %v4883_v53, 3  ;;  %v4888_v23 = vrot.slane %v4886_v47, 4  ;;  %v8813_v47 = vld [vmem:[%s9097_s28 + $0x2c] sm:$0xf] }
 0x1c3   : > { %v7994_v17 = vcombine.low %v4399_v0, %v4411_v31  ;;  %8639 = vmatmul.mubr.msk.bf16.gmra.mxu1 %vm1155_vm5, %v4591_v9  ;;  %v10489_v31 = vadd.f32 %v2117_v2, %v1392_v37  ;;  %v8505_v9 = vpop.f32.mrf.mxu1  ;;  %v4863_v0 = vor.u32 %v4862_v29, %v4859_v51  ;;  %v10505_v51 = vor.u32 %v4879_v60, %v4876_v25  ;;  %v8172_v60 = vld [vmem:[%s11387_s3 + $0x430] sm:$0xf] }
 0x1c4   : > { %v4415_v26 = vpop.permute.xlu0 %4414  ;;  %5986 = vperm.xlu1 %8782, %v8109_v55   ;;  %v4895_v53 = vshll.u32 %v8019_v56, 16 }
 0x1c5   : > { %v4592_v22 = vmul.bf16 %v7994_v17, %v9990_v43  ;;  %v4423_v62 = vrot.slane %v4415_v26, %v9155_v42  ;;  %5950 = vperm.xlu0 %8781, %v8106_v28   ;;  %v10499_v26 = vadd.f32 %v8505_v9, %v1395_v58  ;;  %v5044_v2 = vpop.permute.xlu1 %5043  ;;  %v379_v28 = vld [vmem:[#allocation2 + $0xc0] sm:$0xff]  ;;  %v10503_v29 = vpop.f32.mrf.mxu1  ;;  %v4872_v55 = vsel %vm395_vm4, %v4863_v0, %v4871_v45  ;;  %v8816_v0 = vld [vmem:[%s9097_s28 + $0x38] sm:$0xf] }
 0x1c6   : > { %v5052_v37 = vrot.slane %v5044_v2, %v9155_v42  ;;  %v8815_v2 = vld [vmem:[%s9097_s28 + $0x34] sm:$0xf] }
 0x1c7   : > { %v7995_v32 = vcombine.low %v4423_v62, %v4435_v4  ;;  %8642 = vmatprep.mubr.msk.bf16.mxu1 %vm1155_vm5, %v4592_v22  ;;  %v1398_v4 = vadd.f32 %v10233_v49, %v381_v1  ;;  %v8173_v22 = vld [vmem:[%s11387_s3 + $0x434] sm:$0xf]  ;;  %v382_v62 = vld [vmem:[#allocation2 + $0xd8] sm:$0xff]  ;;  %v8508_v25 = vpop.f32.mrf.mxu1  ;;  %v4892_v49 = vshrl.u32 %v8019_v56, 16  ;;  %v8814_v1 = vld [vmem:[%s9097_s28 + $0x30] sm:$0xf]  ;;  %v4881_v56 = vsel %vm395_vm4, %v4871_v45, %v10505_v51 }
 0x1c8   : > { %v5032_v17 = vpop.permute.xlu0 %5031  ;;  %v8020_v9 = vcombine.low %v8813_v47, %v8814_v1  ;;  %6744 = vperm.xlu1 %8782, %v8173_v22   ;;  %v4889_v47 = vor.u32 %v4888_v23, %v4885_v44  ;;  %v8174_v45 = vld [vmem:[%s11387_s3 + $0x438] sm:$0xf] }
 0x1c9   : > { %v4593_v63 = vmul.bf16 %v7995_v32, %v10007_v15  ;;  %v5040_v58 = vrot.slane %v5032_v17, %v9155_v42  ;;  %5974 = vperm.xlu0 %8781, %v8108_v6   ;;  %v1396_v6 = vadd.f32 %v10244_v41, %v379_v28  ;;  %v10520_v34 = vadd.f32 %v8508_v25, %v1398_v4  ;;  %v5068_v32 = vpop.permute.xlu1 %5067  ;;  %v2133_v33 = vpop.f32.mrf.mxu1  ;;  %v385_v28 = vld [vmem:[#allocation2 + $0xf0] sm:$0xff] }
 0x1ca   : > { %v8021_v17 = vcombine.low %v8815_v2, %v8816_v0  ;;  %v5076_v15 = vrot.slane %v5068_v32, %v9155_v42  ;;  %v1399_v41 = vadd.f32 %v10257_v39, %v382_v62  ;;  %v4894_v44 = vrot.slane %v4892_v49, 3  ;;  %v8817_v49 = vld [vmem:[%s9097_s28 + $0x3c] sm:$0xf]  ;;  %v8818_v2 = vld [vmem:[%s9097_s28 + $0x40] sm:$0xf] }
 0x1cb   : > { %v8061_v5 = vcombine.low %v5040_v58, %v5052_v37  ;;  %8643 = vmatmul.mubr.msk.bf16.gmra.mxu1 %vm1155_vm5, %v4593_v63  ;;  %v10530_v63 = vadd.f32 %v2133_v33, %v1396_v6  ;;  %v8175_v58 = vld [vmem:[%s11387_s3 + $0x43c] sm:$0xf]  ;;  %v8509_v25 = vpop.f32.mrf.mxu1  ;;  %v4897_v39 = vrot.slane %v4895_v53, 4  ;;  %v4901_v23 = vshrl.u32 %v8020_v9, 16 }
 0x1cc   : > { %v5056_v43 = vpop.permute.xlu0 %5055  ;;  %v4904_v22 = vshll.u32 %v8020_v9, 16  ;;  %6768 = vperm.xlu1 %8782, %v8175_v58   ;;  %v4913_v32 = vshll.u32 %v8021_v17, 16  ;;  %v8022_v53 = vcombine.low %v8817_v49, %v8818_v2  ;;  %v1402_v9 = vadd.f32 %v10272_v50, %v385_v28 }
 0x1cd   : > { %v5509_v37 = vmul.bf16 %v8061_v5, %v4872_v55  ;;  %v5064_v4 = vrot.slane %v5056_v43, %v9155_v42  ;;  %6732 = vperm.xlu0 %8781, %v8172_v60   ;;  %v10538_v43 = vadd.f32 %v8509_v25, %v1399_v41  ;;  %v5092_v33 = vpop.permute.xlu1 %5091  ;;  %v4910_v55 = vshrl.u32 %v8021_v17, 16  ;;  %v383_v60 = vld [vmem:[#allocation2 + $0xe0] sm:$0xff]  ;;  %v10542_v5 = vpop.f32.mrf.mxu1 }
 0x1ce   : > { %v5100_v1 = vrot.slane %v5092_v33, %v9155_v42  ;;  %v8111_v41 = vld [vmem:[%s11387_s3 + $0x3c4] sm:$0xf]  ;;  %v4898_v25 = vor.u32 %v4897_v39, %v4894_v44  ;;  %v8110_v17 = vld [vmem:[%s11387_s3 + $0x3c0] sm:$0xf]  ;;  %v4903_v33 = vrot.slane %v4901_v23, 3  ;;  %v4906_v50 = vrot.slane %v4904_v22, 4 }
 0x1cf   : > { %v8062_v62 = vcombine.low %v5064_v4, %v5076_v15  ;;  %8652 = vmatprep.mubr.msk.bf16.mxu0 %vm1155_vm5, %v5509_v37  ;;  %v386_v37 = vld [vmem:[#allocation2 + $0xf8] sm:$0xff]  ;;  %v4890_v4 = vsel %vm395_vm4, %v10505_v51, %v4889_v47  ;;  %v8512_v58 = vpop.f32.mrf.mxu1  ;;  %v4915_v39 = vrot.slane %v4913_v32, 4  ;;  %v4919_v2 = vshrl.u32 %v8022_v53, 16 }
 0x1d0   : > { %v5080_v6 = vpop.permute.xlu0 %5079  ;;  %6010 = vperm.xlu1 %8782, %v8111_v41   ;;  %v4922_v23 = vshll.u32 %v8022_v53, 16  ;;  %v4907_v32 = vor.u32 %v4906_v50, %v4903_v33  ;;  %v8819_v53 = vld [vmem:[%s9097_s28 + $0x44] sm:$0xf] }
 0x1d1   : > { %v5510_v15 = vmul.bf16 %v8062_v62, %v4881_v56  ;;  %v5088_v0 = vrot.slane %v5080_v6, %v9155_v42  ;;  %6756 = vperm.xlu0 %8781, %v8174_v45   ;;  %v1400_v56 = vadd.f32 %v10281_v24, %v383_v60  ;;  %v10557_v45 = vadd.f32 %v8512_v58, %v1402_v9  ;;  %v5116_v62 = vpop.permute.xlu1 %5115  ;;  %v2149_v44 = vpop.f32.mrf.mxu1 }
 0x1d2   : > { %v4912_v6 = vrot.slane %v4910_v55, 3  ;;  %v5124_v49 = vrot.slane %v5116_v62, %v9155_v42  ;;  %v1403_v24 = vadd.f32 %v10294_v40, %v386_v37  ;;  %v8113_v55 = vld [vmem:[%s11387_s3 + $0x3cc] sm:$0xf]  ;;  %v4899_v9 = vsel %vm395_vm4, %v4889_v47, %v4898_v25  ;;  %v8820_v40 = vld [vmem:[%s9097_s28 + $0x48] sm:$0xf]  ;;  %v10578_v58 = vpop.f32.mrf.mxu0 }
 0x1d3   : > { %v8063_v28 = vcombine.low %v5088_v0, %v5100_v1  ;;  %8653 = vmatmul.mubr.msk.bf16.vlgmr.msra.gmra.mxu0 %vm1155_vm5, %v5510_v15  ;;  %v10564_v1 = vadd.f32 %v2149_v44, %v1400_v56  ;;  %v8513_v15 = vpop.f32.mrf.mxu1  ;;  %v8023_v0 = vcombine.low %v8819_v53, %v8820_v40  ;;  %v4921_v62 = vrot.slane %v4919_v2, 3 }
 0x1d4   : > { %v5104_v51 = vpop.permute.xlu0 %5103  ;;  %8719 = vmatpush3.bf16.msra.mxu0 %v10331_v7  ;;  %v8112_v7 = vld [vmem:[%s11387_s3 + $0x3c8] sm:$0xf]  ;;  %v10575_v37 = vadd.f32 %v8513_v15, %v1403_v24  ;;  %6034 = vperm.xlu1 %8782, %v8113_v55   ;;  %v4916_v33 = vor.u32 %v4915_v39, %v4912_v6  ;;  %v8176_v24 = vld [vmem:[%s11387_s3 + $0x440] sm:$0xf] }
 0x1d5   : > { %v5511_v22 = vmul.bf16 %v8063_v28, %v4890_v4  ;;  %v5112_v60 = vrot.slane %v5104_v51, %v9155_v42  ;;  %5998 = vperm.xlu0 %8781, %v8110_v17   ;;  %v5140_v4 = vpop.permute.xlu1 %5139  ;;  %v8177_v28 = vld [vmem:[%s11387_s3 + $0x444] sm:$0xf]  ;;  %v4908_v51 = vsel %vm395_vm4, %v4898_v25, %v4907_v32  ;;  %v4928_v6 = vshrl.u32 %v8023_v0, 16 }
 0x1d6   : > { %v5148_v47 = vrot.slane %v5140_v4, %v9155_v42  ;;  %v4931_v39 = vshll.u32 %v8023_v0, 16 }
 0x1d7   : > { %v8064_v41 = vcombine.low %v5112_v60, %v5124_v49  ;;  %8656 = vmatprep.mubr.msk.bf16.mxu0 %vm1155_vm5, %v5511_v22  ;;  %v4924_v49 = vrot.slane %v4922_v23, 4  ;;  %v8821_v22 = vld [vmem:[%s9097_s28 + $0x4c] sm:$0xf]  ;;  %v8822_v60 = vld [vmem:[%s9097_s28 + $0x50] sm:$0xf] }
 0x1d8   : > { %v5128_v17 = vpop.permute.xlu0 %5127  ;;  %v8518_v44 = vpop.f32.mrf.mxu0  ;;  %v8024_v55 = vcombine.low %v8821_v22, %v8822_v60  ;;  %v8823_v23 = vld [vmem:[%s9097_s28 + $0x54] sm:$0xf]  ;;  %6792 = vperm.xlu1 %8782, %v8177_v28   ;;  %v4930_v28 = vrot.slane %v4928_v6, 3  ;;  %v8826_v6 = vld [vmem:[%s9097_s28 + $0x60] sm:$0xf] }
 0x1d9   : > { %v5512_v50 = vmul.bf16 %v8064_v41, %v4899_v9  ;;  %v5136_v56 = vrot.slane %v5128_v17, %v9155_v42  ;;  %6022 = vperm.xlu0 %8781, %v8112_v7   ;;  %v10592_v15 = vadd.f32 %v8518_v44, %v10315_v21  ;;  %v5164_v2 = vpop.permute.xlu1 %5163  ;;  %v8824_v7 = vld [vmem:[%s9097_s28 + $0x58] sm:$0xf]  ;;  %v4917_v41 = vsel %vm395_vm4, %v4907_v32, %v4916_v33  ;;  %v8178_v32 = vld [vmem:[%s11387_s3 + $0x448] sm:$0xf] }
 0x1da   : > { %v8025_v25 = vcombine.low %v8823_v23, %v8824_v7  ;;  %v5172_v53 = vrot.slane %v5164_v2, %v9155_v42  ;;  %v2890_v0 = vpop.f32.mrf.mxu0  ;;  %v4937_v44 = vshrl.u32 %v8024_v55, 16  ;;  %v4940_v22 = vshll.u32 %v8024_v55, 16  ;;  %v8825_v7 = vld [vmem:[%s9097_s28 + $0x5c] sm:$0xf] }
 0x1db   : > { %v8065_v9 = vcombine.low %v5136_v56, %v5148_v47  ;;  %8657 = vmatmul.mubr.msk.bf16.gmra.mxu0 %vm1155_vm5, %v5512_v50  ;;  %v10601_v21 = vadd.f32 %v2890_v0, %v10325_v36  ;;  %v4925_v47 = vor.u32 %v4924_v49, %v4921_v62  ;;  %v8179_v50 = vld [vmem:[%s11387_s3 + $0x44c] sm:$0xf] }
 0x1dc   : > { %v5152_v40 = vpop.permute.xlu0 %5151  ;;  %v8519_v56 = vpop.f32.mrf.mxu0  ;;  %v4946_v49 = vshrl.u32 %v8025_v25, 16  ;;  %6816 = vperm.xlu1 %8782, %v8179_v50   ;;  %v4949_v23 = vshll.u32 %v8025_v25, 16  ;;  %v4942_v25 = vrot.slane %v4940_v22, 4 }
 0x1dd   : > { %v5513_v4 = vmul.bf16 %v8065_v9, %v4908_v51  ;;  %v5160_v17 = vrot.slane %v5152_v40, %v9155_v42  ;;  %6780 = vperm.xlu0 %8781, %v8176_v24   ;;  %v4933_v51 = vrot.slane %v4931_v39, 4  ;;  %v10610_v36 = vadd.f32 %v8519_v56, %v10336_v11  ;;  %v5188_v62 = vpop.permute.xlu1 %5187  ;;  %v8115_v11 = vld [vmem:[%s11387_s3 + $0x3d4] sm:$0xf] }
 0x1de   : > { %v5196_v60 = vrot.slane %v5188_v62, %v9155_v42  ;;  %v10614_v2 = vpop.f32.mrf.mxu0  ;;  %v8026_v39 = vcombine.low %v8825_v7, %v8826_v6  ;;  %v8828_v6 = vld [vmem:[%s9097_s28 + $0x68] sm:$0xf] }
 0x1df   : > { %v8066_v24 = vcombine.low %v5160_v17, %v5172_v53  ;;  %8660 = vmatprep.mubr.msk.bf16.mxu0 %vm1155_vm5, %v5513_v4  ;;  %v4926_v53 = vsel %vm395_vm4, %v4916_v33, %v4925_v47  ;;  %v4934_v0 = vor.u32 %v4933_v51, %v4930_v28  ;;  %v8114_v4 = vld [vmem:[%s11387_s3 + $0x3d0] sm:$0xf]  ;;  %v4939_v17 = vrot.slane %v4937_v44, 3 }
 0x1e0   : > { %v5176_v9 = vpop.permute.xlu0 %5175  ;;  %v8522_v56 = vpop.f32.mrf.mxu0  ;;  %6058 = vperm.xlu1 %8782, %v8115_v11   ;;  %v4951_v51 = vrot.slane %v4949_v23, 4  ;;  %v4955_v62 = vshrl.u32 %v8026_v39, 16  ;;  %v4958_v7 = vshll.u32 %v8026_v39, 16  ;;  %v8116_v11 = vld [vmem:[%s11387_s3 + $0x3d8] sm:$0xf] }
 0x1e1   : > { %v5514_v40 = vmul.bf16 %v8066_v24, %v4917_v41  ;;  %v5184_v55 = vrot.slane %v5176_v9, %v9155_v42  ;;  %6804 = vperm.xlu0 %8781, %v8178_v32   ;;  %v5212_v41 = vpop.permute.xlu1 %5211  ;;  %v4948_v32 = vrot.slane %v4946_v49, 3  ;;  %v10628_v24 = vadd.f32 %v8522_v56, %v10353_v30  ;;  %v8827_v49 = vld [vmem:[%s9097_s28 + $0x64] sm:$0xf] }
 0x1e2   : > { %v5220_v33 = vrot.slane %v5212_v41, %v9155_v42  ;;  %v2906_v22 = vpop.f32.mrf.mxu0  ;;  %v8027_v30 = vcombine.low %v8827_v49, %v8828_v6  ;;  %v4943_v23 = vor.u32 %v4942_v25, %v4939_v17  ;;  %v4957_v17 = vrot.slane %v4955_v62, 3  ;;  %v8830_v62 = vld [vmem:[%s9097_s28 + $0x70] sm:$0xf] }
 0x1e3   : > { %v8067_v50 = vcombine.low %v5184_v55, %v5196_v60  ;;  %8661 = vmatmul.mubr.msk.bf16.gmra.mxu0 %vm1155_vm5, %v5514_v40  ;;  %v8117_v60 = vld [vmem:[%s11387_s3 + $0x3dc] sm:$0xf]  ;;  %v4935_v40 = vsel %vm395_vm4, %v4925_v47, %v4934_v0  ;;  %v10639_v55 = vadd.f32 %v2906_v22, %v10360_v13  ;;  %v4952_v13 = vor.u32 %v4951_v51, %v4948_v32  ;;  %v8180_v22 = vld [vmem:[%s11387_s3 + $0x450] sm:$0xf]  ;;  %v8829_v51 = vld [vmem:[%s9097_s28 + $0x6c] sm:$0xf] }
 0x1e4   : > { %v5200_v28 = vpop.permute.xlu0 %5199  ;;  %6082 = vperm.xlu1 %8782, %v8117_v60   ;;  %v4967_v32 = vshll.u32 %v8027_v30, 16  ;;  %v8028_v60 = vcombine.low %v8829_v51, %v8830_v62 }
 0x1e5   : > { %v5515_v9 = vmul.bf16 %v8067_v50, %v4926_v53  ;;  %v5208_v44 = vrot.slane %v5200_v28, %v9155_v42  ;;  %6046 = vperm.xlu0 %8781, %v8114_v4   ;;  %v8523_v4 = vpop.f32.mrf.mxu0  ;;  %v5236_v50 = vpop.permute.xlu1 %5235  ;;  %v8181_v28 = vld [vmem:[%s11387_s3 + $0x454] sm:$0xf] }
 0x1e6   : > { %v10646_v39 = vadd.f32 %v8523_v4, %v10370_v38  ;;  %v5244_v56 = vrot.slane %v5236_v50, %v9155_v42  ;;  %v4960_v38 = vrot.slane %v4958_v7, 4 }
 0x1e7   : > { %v8068_v53 = vcombine.low %v5208_v44, %v5220_v33  ;;  %8664 = vmatprep.mubr.msk.bf16.mxu0 %vm1155_vm5, %v5515_v9  ;;  %v10650_v33 = vpop.f32.mrf.mxu0  ;;  %v4964_v9 = vshrl.u32 %v8027_v30, 16  ;;  %v4944_v44 = vsel %vm395_vm4, %v4934_v0, %v4943_v23  ;;  %v4953_v0 = vsel %vm395_vm4, %v4943_v23, %v4952_v13 }
 0x1e8   : > { %v5224_v47 = vpop.permute.xlu0 %5223  ;;  %6840 = vperm.xlu1 %8782, %v8181_v28   ;;  %v4969_v23 = vrot.slane %v4967_v32, 4  ;;  %v4973_v28 = vshrl.u32 %v8028_v60, 16  ;;  %v8119_v32 = vld [vmem:[%s11387_s3 + $0x3e4] sm:$0xf] }
 0x1e9   : > { %v5516_v25 = vmul.bf16 %v8068_v53, %v4935_v40  ;;  %v5232_v41 = vrot.slane %v5224_v47, %v9155_v42  ;;  %6070 = vperm.xlu0 %8781, %v8116_v11   ;;  %v8526_v6 = vpop.f32.mrf.mxu0  ;;  %v5260_v40 = vpop.permute.xlu1 %5259  ;;  %v4961_v47 = vor.u32 %v4960_v38, %v4957_v17 }
 0x1ea   : > { %v10663_v11 = vadd.f32 %v8526_v6, %v10385_v59  ;;  %v5268_v7 = vrot.slane %v5260_v40, %v9155_v42 }
 0x1eb   : > { %v8069_v49 = vcombine.low %v5232_v41, %v5244_v56  ;;  %8665 = vmatmul.mubr.msk.bf16.gmra.mxu0 %vm1155_vm5, %v5516_v25  ;;  %v2922_v50 = vpop.f32.mrf.mxu0  ;;  %v8183_v56 = vld [vmem:[%s11387_s3 + $0x45c] sm:$0xf]  ;;  %v4966_v25 = vrot.slane %v4964_v9, 3  ;;  %v8182_v41 = vld [vmem:[%s11387_s3 + $0x458] sm:$0xf] }
 0x1ec   : > { %v5248_v53 = vpop.permute.xlu0 %5247  ;;  %v10672_v59 = vadd.f32 %v2922_v50, %v10391_v46  ;;  %6864 = vperm.xlu1 %8782, %v8183_v56  }
 0x1ed   : > { %v5517_v4 = vmul.bf16 %v8069_v49, %v4944_v44  ;;  %v5256_v30 = vrot.slane %v5248_v53, %v9155_v42  ;;  %6828 = vperm.xlu0 %8781, %v8180_v22   ;;  %v4976_v44 = vshll.u32 %v8028_v60, 16  ;;  %v8527_v62 = vpop.f32.mrf.mxu0  ;;  %v5284_v17 = vpop.permute.xlu1 %5283  ;;  %v4962_v60 = vsel %vm395_vm4, %v4952_v13, %v4961_v47 }
 0x1ee   : > { %v10679_v38 = vadd.f32 %v8527_v62, %v10399_v10  ;;  %v5292_v9 = vrot.slane %v5284_v17, %v9155_v42  ;;  %v4970_v40 = vor.u32 %v4969_v23, %v4966_v25  ;;  %v8118_v10 = vld [vmem:[%s11387_s3 + $0x3e0] sm:$0xf]  ;;  %v8120_v62 = vld [vmem:[%s11387_s3 + $0x3e8] sm:$0xf] }
 0x1ef   : > { %v8070_v51 = vcombine.low %v5256_v30, %v5268_v7  ;;  %8668 = vmatprep.mubr.msk.bf16.mxu0 %vm1155_vm5, %v5517_v4  ;;  %v10683_v6 = vpop.f32.mrf.mxu0  ;;  %v4975_v7 = vrot.slane %v4973_v28, 3  ;;  %v4978_v53 = vrot.slane %v4976_v44, 4  ;;  %v8121_v28 = vld [vmem:[%s11387_s3 + $0x3ec] sm:$0xf] }
 0x1f0   : > { %v5272_v22 = vpop.permute.xlu0 %5271  ;;  %6106 = vperm.xlu1 %8782, %v8119_v32   ;;  %v4971_v44 = vsel %vm395_vm4, %v4961_v47, %v4970_v40 }
 0x1f1   : > { %v5518_v46 = vmul.bf16 %v8070_v51, %v4953_v0  ;;  %v5280_v49 = vrot.slane %v5272_v22, %v9155_v42  ;;  %6852 = vperm.xlu0 %8781, %v8182_v41   ;;  %v8530_v0 = vpop.f32.mrf.mxu0  ;;  %v5308_v30 = vpop.permute.xlu1 %5307 }
 0x1f2   : > { %v10694_v50 = vadd.f32 %v8530_v0, %v10413_v48  ;;  %v5316_v56 = vrot.slane %v5308_v30, %v9155_v42  ;;  %v4979_v48 = vor.u32 %v4978_v53, %v4975_v7  ;;  %v8831_v53 = vld [vmem:[%s9097_s28] sm:$0xf]  ;;  %v372_v0 = vld [vmem:[#allocation2 + $0x88] sm:$0xff] }
 0x1f3   : > { %v8071_v4 = vcombine.low %v5280_v49, %v5292_v9  ;;  %8669 = vmatmul.mubr.msk.bf16.gmra.mxu0 %vm1155_vm5, %v5518_v46  ;;  %v2938_v23 = vpop.f32.mrf.mxu0 }
 0x1f4   : > { %v5296_v41 = vpop.permute.xlu0 %5295  ;;  %v10703_v51 = vadd.f32 %v2938_v23, %v10419_v16  ;;  %6130 = vperm.xlu1 %8782, %v8121_v28   ;;  %v4980_v7 = vsel %vm395_vm4, %v4970_v40, %v4979_v48 }
 0x1f5   : > { %v5519_v13 = vmul.bf16 %v8071_v4, %v4962_v60  ;;  %v5304_v25 = vrot.slane %v5296_v41, %v9155_v42  ;;  %6094 = vperm.xlu0 %8781, %v8118_v10   ;;  %v8531_v9 = vpop.f32.mrf.mxu0  ;;  %v5332_v22 = vpop.permute.xlu1 %5331  ;;  %v8185_v10 = vld [vmem:[%s11387_s3 + $0x464] sm:$0xf]  ;;  %v7949_v4 = vcombine.low %v8831_v53, %v8831_v53 }
 0x1f6   : > { %v10710_v46 = vadd.f32 %v8531_v9, %v10427_v19  ;;  %v5340_v49 = vrot.slane %v5332_v22, %v9155_v42  ;;  %v8184_v19 = vld [vmem:[%s11387_s3 + $0x460] sm:$0xf]  ;;  %v11513_v9 = vld [vmem:[#allocation5_spill] sm:$0xff] }
 0x1f7   : > { %v8072_v17 = vcombine.low %v5304_v25, %v5316_v56  ;;  %8672 = vmatprep.mubr.msk.bf16.mxu0 %vm1155_vm5, %v5519_v13  ;;  %v10714_v60 = vpop.f32.mrf.mxu0  ;;  %v4981_v22 = vsel %vm395_vm4, %v4979_v48, %v11513_v9 }
 0x1f8   : > { %v5320_v47 = vpop.permute.xlu0 %5319  ;;  %6888 = vperm.xlu1 %8782, %v8185_v10  }
 0x1f9   : > { %v5520_v16 = vmul.bf16 %v8072_v17, %v4971_v44  ;;  %v5328_v32 = vrot.slane %v5320_v47, %v9155_v42  ;;  %6118 = vperm.xlu0 %8781, %v8120_v62   ;;  %v8534_v56 = vpop.f32.mrf.mxu0  ;;  %v5356_v41 = vpop.permute.xlu1 %5355  ;;  %v8187_v62 = vld [vmem:[%s11387_s3 + $0x46c] sm:$0xf]  ;;  %v1389_v17 = vadd.f32 %v10186_v12, %v372_v0  ;;  %v4062_v47 = vshll.u32 %v7949_v4, 16  ;;  %v8123_v4 = vld [vmem:[%s11387_s3 + $0x3f4] sm:$0xf] }
 0x1fa   : > { %v10726_v13 = vadd.f32 %v8534_v56, %v10447_v3  ;;  %v5364_v25 = vrot.slane %v5356_v41, %v9155_v42  ;;  %v8122_v41 = vld [vmem:[%s11387_s3 + $0x3f0] sm:$0xf] }
 0x1fb   : > { %v8073_v30 = vcombine.low %v5328_v32, %v5340_v49  ;;  %8673 = vmatmul.mubr.msk.bf16.gmra.mxu0 %vm1155_vm5, %v5520_v16  ;;  %v2954_v44 = vpop.f32.mrf.mxu0  ;;  %v8186_v49 = vld [vmem:[%s11387_s3 + $0x468] sm:$0xf]  ;;  %v4064_v56 = vrot.slane %v4062_v47, 1 }
 0x1fc   : > { %v5344_v23 = vpop.permute.xlu0 %5343  ;;  %v10737_v3 = vadd.f32 %v2954_v44, %v10456_v57  ;;  %6912 = vperm.xlu1 %8782, %v8187_v62  }
 0x1fd   : > { %v5521_v40 = vmul.bf16 %v8073_v30, %v4980_v7  ;;  %v5352_v28 = vrot.slane %v5344_v23, %v9155_v42  ;;  %6876 = vperm.xlu0 %8781, %v8184_v19   ;;  %v8535_v32 = vpop.f32.mrf.mxu0  ;;  %v4451_v10 = vpop.permute.xlu1 %4450  ;;  %v2181_v7 = vadd.f32 %v10468_v14, %v1389_v17  ;;  %v11514_v30 = vld [vmem:[#allocation19_spill] sm:$0xff] }
 0x1fe   : > { %v10745_v12 = vadd.f32 %v8535_v32, %v10464_v52  ;;  %v4459_v48 = vrot.slane %v4451_v10, %v9155_v42  ;;  %v10755_v14 = vsel %vm2205_vm7, %v10011_v54, %v11514_v30 }
 0x1ff   : > { %v8074_v16 = vcombine.low %v5352_v28, %v5364_v25  ;;  %8676 = vmatprep.mubr.msk.bf16.mxu0 %vm1155_vm5, %v5521_v40  ;;  %v2957_v0 = vpop.f32.mrf.mxu0  ;;  %v376_v25 = vld [vmem:[#allocation2 + $0xa8] sm:$0xff] }
 0x200   : > { %v4439_v19 = vpop.permute.xlu0 %4438  ;;  %v10757_v52 = vadd.f32 %v2957_v0, %v2181_v7  ;;  %6154 = vperm.xlu1 %8782, %v8123_v4   ;;  %v1393_v47 = vadd.f32 %v10224_v20, %v376_v25  ;;  %v8124_v7 = vld [vmem:[%s11387_s3 + $0x3f8] sm:$0xf] }
 0x201   : > { %v5522_v57 = vmul.bf16 %v8074_v16, %v4981_v22  ;;  %v4447_v53 = vrot.slane %v4439_v19, %v9155_v42  ;;  %6900 = vperm.xlu0 %8781, %v8186_v49   ;;  %v8538_v40 = vpop.f32.mrf.mxu0  ;;  %v4475_v28 = vpop.permute.xlu1 %4474  ;;  %v8125_v49 = vld [vmem:[%s11387_s3 + $0x3fc] sm:$0xf]  ;;  %v11515_v16 = vld [vmem:[#allocation20_spill] sm:$0xff] }
 0x202   : > { %v10764_v44 = vadd.f32 %v8538_v40, %v10482_v61  ;;  %v4483_v62 = vrot.slane %v4475_v28, %v9155_v42  ;;  %v4066_v61 = vsel %vm9741_vm9, %v11515_v16, %v4064_v56  ;;  %v8191_v16 = vld [vmem:[%s11387_s3 + $0x47c] sm:$0xf] }
 0x203   : > { %v7996_v23 = vcombine.low %v4447_v53, %v4459_v48  ;;  %8677 = vmatmul.mubr.msk.bf16.gmra.mxu0 %vm1155_vm5, %v5522_v57  ;;  %v2970_v22 = vpop.f32.mrf.mxu0  ;;  %v2185_v53 = vadd.f32 %v10503_v29, %v1393_v47  ;;  %v380_v29 = vld [vmem:[#allocation2 + $0xc8] sm:$0xff] }
 0x204   : > { %v4463_v54 = vpop.permute.xlu0 %4462  ;;  %v10777_v10 = vadd.f32 %v2970_v22, %v10489_v31  ;;  %6178 = vperm.xlu1 %8782, %v8125_v49   ;;  %v1397_v32 = vadd.f32 %v10264_v27, %v380_v29 }
 0x205   : > { %v4594_v17 = vmul.bf16 %v7996_v23, %v10755_v14  ;;  %v4471_v9 = vrot.slane %v4463_v54, %v9155_v42  ;;  %6142 = vperm.xlu0 %8781, %v8122_v41   ;;  %v8539_v19 = vpop.f32.mrf.mxu0  ;;  %v5380_v57 = vpop.permute.xlu1 %5379  ;;  %v8189_v41 = vld [vmem:[%s11387_s3 + $0x474] sm:$0xf] }
 0x206   : > { %v10785_v20 = vadd.f32 %v8539_v19, %v10499_v26  ;;  %v5388_v0 = vrot.slane %v5380_v57, %v9155_v42  ;;  %v8188_v26 = vld [vmem:[%s11387_s3 + $0x470] sm:$0xf]  ;;  %v2189_v57 = vadd.f32 %v10542_v5, %v1397_v32 }
 0x207   : > { %v7997_v48 = vcombine.low %v4471_v9, %v4483_v62  ;;  %8646 = vmatprep.mubr.msk.bf16.mxu1 %vm1155_vm5, %v4594_v17  ;;  %v2973_v56 = vpop.f32.mrf.mxu0  ;;  %v11517_v9 = vld [vmem:[#allocation7_spill] sm:$0xff] }
 0x208   : > { %v5368_v4 = vpop.permute.xlu0 %5367  ;;  %v10792_v25 = vadd.f32 %v2973_v56, %v2185_v53  ;;  %6936 = vperm.xlu1 %8782, %v8189_v41  }
 0x209   : > { %v4595_v31 = vmul.bf16 %v7997_v48, %v4066_v61  ;;  %v5376_v30 = vrot.slane %v5368_v4, %v9155_v42  ;;  %6166 = vperm.xlu0 %8781, %v8124_v7   ;;  %v8542_v40 = vpop.f32.mrf.mxu0  ;;  %v5404_v28 = vpop.permute.xlu1 %5403 }
 0x20a   : > { %v10799_v62 = vadd.f32 %v8542_v40, %v10520_v34  ;;  %v5412_v54 = vrot.slane %v5404_v28, %v9155_v42  ;;  %v8190_v34 = vld [vmem:[%s11387_s3 + $0x478] sm:$0xf] }
 0x20b   : > { %v8075_v23 = vcombine.low %v5376_v30, %v5388_v0  ;;  %8647 = vmatmul.mubr.msk.bf16.gmra.mxu1 %vm1155_vm5, %v4595_v31  ;;  %v2986_v47 = vpop.f32.mrf.mxu0 }
 0x20c   : > { %v5392_v17 = vpop.permute.xlu0 %5391  ;;  %v10809_v61 = vadd.f32 %v2986_v47, %v10530_v63  ;;  %6960 = vperm.xlu1 %8782, %v8191_v16   ;;  %v356_v47 = vld [vmem:[#allocation2 + $0x8] sm:$0xff]  ;;  %v10839_v16 = vpop.f32.mrf.mxu1 }
 0x20d   : > { %v5523_v22 = vmul.bf16 %v8075_v23, %v11517_v9  ;;  %v5400_v49 = vrot.slane %v5392_v17, %v9155_v42  ;;  %6924 = vperm.xlu0 %8781, %v8188_v26   ;;  %v8543_v48 = vpop.f32.mrf.mxu0  ;;  %v5819_v19 = vpop.permute.xlu1 %5818 }
 0x20e   : > { %v10817_v53 = vadd.f32 %v8543_v48, %v10538_v43  ;;  %v5827_v0 = vrot.slane %v5819_v19, %v9155_v42  ;;  %v11518_v19 = vld [vmem:[#allocation37_spill] sm:$0xff] }
 0x20f   : > { %v8076_v7 = vcombine.low %v5400_v49, %v5412_v54  ;;  %8680 = vmatprep.mubr.msk.bf16.mxu0 %vm1155_vm5, %v5523_v22  ;;  %v2989_v31 = vpop.f32.mrf.mxu0 }
 0x210   : > { %v5807_v27 = vpop.permute.xlu0 %5806  ;;  %v10822_v30 = vadd.f32 %v2989_v31, %v2189_v57 }
 0x211   : > { %v5524_v63 = vmul.bf16 %v8076_v7, %v9198_v8  ;;  %v5815_v4 = vrot.slane %v5807_v27, %v9155_v42  ;;  %6948 = vperm.xlu0 %8781, %v8190_v34   ;;  %v8546_v41 = vpop.f32.mrf.mxu0  ;;  %v5843_v5 = vpop.permute.xlu1 %5842 }
 0x212   : > { %v10826_v43 = vadd.f32 %v8546_v41, %v10557_v45  ;;  %v5851_v26 = vrot.slane %v5843_v5, %v9155_v42  ;;  %v11520_v41 = vld [vmem:[#allocation40_spill] sm:$0xff] }
 0x213   : > { %v8126_v56 = vcombine.low %v5815_v4, %v5827_v0  ;;  %8681 = vmatmul.mubr.msk.bf16.gmra.mxu0 %vm1155_vm5, %v5524_v63  ;;  %v3002_v40 = vpop.f32.mrf.mxu0  ;;  %v11519_v4 = vld [vmem:[#allocation24_spill] sm:$0xff] }
 0x214   : > { %v5831_v29 = vpop.permute.xlu0 %5830  ;;  %v10832_v28 = vadd.f32 %v3002_v40, %v10564_v1 }
 0x215   : > { %v6284_v23 = vmul.bf16 %v8126_v56, %v9130_v18  ;;  %v5839_v8 = vrot.slane %v5831_v29, %v9155_v42  ;;  %v8547_v17 = vpop.f32.mrf.mxu0  ;;  %v6601_v9 = vpop.permute.xlu1 %6600 }
 0x216   : > { %v10836_v22 = vadd.f32 %v8547_v17, %v10575_v37  ;;  %v6609_v45 = vrot.slane %v6601_v9, %v9155_v42  ;;  %v1373_v37 = vadd.f32 %v11518_v19, %v356_v47 }
 0x217   : > { %v8127_v54 = vcombine.low %v5839_v8, %v5851_v26  ;;  %8686 = vmatprep.mubr.msk.bf16.mxu1 %vm1155_vm5, %v6284_v23  ;;  %v10843_v1 = vpop.f32.mrf.mxu0 }
 0x218   : > { %v6589_v49 = vpop.permute.xlu0 %6588  ;;  %v8552_v7 = vpop.f32.mrf.mxu1  ;;  %v2165_v5 = vadd.f32 %v11520_v41, %v1373_v37  ;;  %v11523_v41 = vld [vmem:[#allocation4_spill] sm:$0xff] }
 0x219   : > { %v6285_v18 = vmul.bf16 %v8127_v54, %v9151_v35  ;;  %v6597_v32 = vrot.slane %v6589_v49, %v9155_v42  ;;  %v6625_v48 = vpop.permute.xlu1 %6624  ;;  %v3798_v57 = vadd.f32 %v8552_v7, %v10592_v15  ;;  %v8586_v63 = vpop.f32.mrf.mxu0 }
 0x21a   : > { %v6633_v0 = vrot.slane %v6625_v48, %v9155_v42  ;;  %v3669_v56 = vpop.f32.mrf.mxu1  ;;  %v3018_v54 = vadd.f32 %v10614_v2, %v2165_v5 }
 0x21b   : > { %v8192_v34 = vcombine.low %v6597_v32, %v6609_v45  ;;  %8687 = vmatmul.mubr.msk.bf16.vlgmr.msra.gmra.mxu1 %vm1155_vm5, %v6285_v18  ;;  %v3796_v26 = vadd.f32 %v3669_v56, %v10601_v21  ;;  %v10853_v29 = vadd.f32 %v8586_v63, %v3798_v57  ;;  %v3899_v23 = vpop.f32.mrf.mxu0  ;;  %v360_v18 = vld [vmem:[#allocation2 + $0x28] sm:$0xff]  ;;  %v11521_v21 = vld [vmem:[#allocation25_spill] sm:$0xff] }
 0x21c   : > { %v6613_v27 = vpop.permute.xlu0 %6612  ;;  %v8553_v40 = vpop.f32.mrf.mxu1 }
 0x21d   : > { %v7066_v31 = vmul.bf16 %v8192_v34, %v11519_v4  ;;  %v6621_v35 = vrot.slane %v6613_v27, %v9155_v42  ;;  %v5867_v15 = vpop.permute.xlu1 %5866  ;;  %v3799_v17 = vadd.f32 %v8553_v40, %v10610_v36  ;;  %v10858_v9 = vadd.f32 %v3899_v23, %v3796_v26  ;;  %v8587_v47 = vpop.f32.mrf.mxu0 }
 0x21e   : > { %v5875_v45 = vrot.slane %v5867_v15, %v9155_v42  ;;  %v3672_v7 = vpop.f32.mrf.mxu1 }
 0x21f   : > { %v8193_v8 = vcombine.low %v6621_v35, %v6633_v0  ;;  %8720 = vmatprep.mubr.msk.bf16.mxu0 %vm1155_vm5, %v7066_v31  ;;  %v3797_v48 = vadd.f32 %v3672_v7, %v3018_v54  ;;  %v10863_v19 = vadd.f32 %v8587_v47, %v3799_v17  ;;  %v3902_v37 = vpop.f32.mrf.mxu0  ;;  %v11522_v0 = vld [vmem:[#allocation38_spill] sm:$0xff] }
 0x220   : > { %v5855_v49 = vpop.permute.xlu0 %5854  ;;  %v1377_v27 = vadd.f32 %v11522_v0, %v360_v18 }
 0x221   : > { %v7067_v32 = vmul.bf16 %v8193_v8, %v11521_v21  ;;  %v5863_v34 = vrot.slane %v5855_v49, %v9155_v42  ;;  %v5891_v36 = vpop.permute.xlu1 %5890  ;;  %v10868_v4 = vadd.f32 %v3902_v37, %v3797_v48  ;;  %v8590_v56 = vpop.f32.mrf.mxu0  ;;  %v11524_v8 = vld [vmem:[#allocation42_spill] sm:$0xff]  ;;  %v364_v48 = vld [vmem:[#allocation2 + $0x48] sm:$0xff] }
 0x222   : > { %v5899_v31 = vrot.slane %v5891_v36, %v9155_v42  ;;  %v2169_v40 = vadd.f32 %v11524_v8, %v1377_v27  ;;  %v11527_v8 = vld [vmem:[#allocation26_spill] sm:$0xff] }
 0x223   : > { %v8128_v57 = vcombine.low %v5863_v34, %v5875_v45  ;;  %v8556_v2 = vpop.f32.mrf.mxu1  ;;  %8721 = vmatmul.mubr.msk.bf16.vlgmr.msra.gmra.mxu0 %vm1155_vm5, %v7067_v32  ;;  %v3915_v17 = vpop.f32.mrf.mxu0 }
 0x224   : > { %v3802_v63 = vadd.f32 %v8556_v2, %v10628_v24  ;;  %v5879_v35 = vpop.permute.xlu0 %5878  ;;  %v3022_v47 = vadd.f32 %v10650_v33, %v2169_v40 }
 0x225   : > { %v6286_v5 = vmul.bf16 %v8128_v57, %v11523_v41  ;;  %v5887_v26 = vrot.slane %v5879_v35, %v9155_v42  ;;  %v3685_v23 = vpop.f32.mrf.mxu1  ;;  %v6649_v49 = vpop.permute.xlu1 %6648 }
 0x226   : > { %v3800_v15 = vadd.f32 %v3685_v23, %v10639_v55  ;;  %v10875_v54 = vadd.f32 %v8590_v56, %v3802_v63  ;;  %v6657_v32 = vrot.slane %v6649_v49, %v9155_v42  ;;  %v8591_v7 = vpop.f32.mrf.mxu0  ;;  %v11525_v55 = vld [vmem:[#allocation6_spill] sm:$0xff] }
 0x227   : > { %v8129_v45 = vcombine.low %v5887_v26, %v5899_v31  ;;  %v8557_v24 = vpop.f32.mrf.mxu1  ;;  %8690 = vmatprep.mubr.msk.bf16.mxu1 %vm1155_vm5, %v6286_v5  ;;  %v11526_v31 = vld [vmem:[#allocation41_spill] sm:$0xff] }
 0x228   : > { %v3803_v18 = vadd.f32 %v8557_v24, %v10646_v39  ;;  %v10880_v21 = vadd.f32 %v3915_v17, %v3800_v15  ;;  %v6637_v34 = vpop.permute.xlu0 %6636  ;;  %v3918_v27 = vpop.f32.mrf.mxu0  ;;  %v1381_v35 = vadd.f32 %v11526_v31, %v364_v48 }
 0x229   : > { %v6287_v37 = vmul.bf16 %v8129_v45, %v11525_v55  ;;  %v6645_v57 = vrot.slane %v6637_v34, %v9155_v42  ;;  %v3688_v2 = vpop.f32.mrf.mxu1  ;;  %v6673_v39 = vpop.permute.xlu1 %6672  ;;  %v11528_v45 = vld [vmem:[#allocation43_spill] sm:$0xff] }
 0x22a   : > { %v3801_v36 = vadd.f32 %v3688_v2, %v3022_v47  ;;  %v10885_v0 = vadd.f32 %v8591_v7, %v3803_v18  ;;  %v6681_v5 = vrot.slane %v6673_v39, %v9155_v42  ;;  %v8594_v23 = vpop.f32.mrf.mxu0  ;;  %v2173_v24 = vadd.f32 %v11528_v45, %v1381_v35 }
 0x22b   : > { %v8194_v63 = vcombine.low %v6645_v57, %v6657_v32  ;;  %v8560_v33 = vpop.f32.mrf.mxu1  ;;  %8691 = vmatmul.mubr.msk.bf16.gmra.mxu1 %vm1155_vm5, %v6287_v37 }
 0x22c   : > { %v3806_v56 = vadd.f32 %v8560_v33, %v10663_v11  ;;  %v10890_v41 = vadd.f32 %v3918_v27, %v3801_v36  ;;  %v6661_v26 = vpop.permute.xlu0 %6660  ;;  %v3931_v18 = vpop.f32.mrf.mxu0  ;;  %v3026_v7 = vadd.f32 %v10683_v6, %v2173_v24  ;;  %v368_v36 = vld [vmem:[#allocation2 + $0x68] sm:$0xff] }
 0x22d   : > { %v7068_v40 = vmul.bf16 %v8194_v63, %v11527_v8  ;;  %v6669_v15 = vrot.slane %v6661_v26, %v9155_v42  ;;  %v3701_v17 = vpop.f32.mrf.mxu1  ;;  %v5915_v34 = vpop.permute.xlu1 %5914 }
 0x22e   : > { %v3804_v49 = vadd.f32 %v3701_v17, %v10672_v59  ;;  %v10897_v47 = vadd.f32 %v8594_v23, %v3806_v56  ;;  %v5923_v37 = vrot.slane %v5915_v34, %v9155_v42  ;;  %v8595_v2 = vpop.f32.mrf.mxu0  ;;  %v11529_v59 = vld [vmem:[#allocation27_spill] sm:$0xff]  ;;  %v11530_v17 = vld [vmem:[#allocation8_spill] sm:$0xff] }
 0x22f   : > { %v8195_v32 = vcombine.low %v6669_v15, %v6681_v5  ;;  %v8561_v11 = vpop.f32.mrf.mxu1  ;;  %8724 = vmatprep.mubr.msk.bf16.mxu0 %vm1155_vm5, %v7068_v40  ;;  %v1385_v5 = vadd.f32 %v10578_v58, %v368_v36 }
 0x230   : > { %v3807_v48 = vadd.f32 %v8561_v11, %v10679_v38  ;;  %v10902_v55 = vadd.f32 %v3931_v18, %v3804_v49  ;;  %v5903_v57 = vpop.permute.xlu0 %5902  ;;  %v3934_v35 = vpop.f32.mrf.mxu0  ;;  %v11531_v18 = vld [vmem:[#allocation44_spill] sm:$0xff] }
 0x231   : > { %v7069_v27 = vmul.bf16 %v8195_v32, %v11529_v59  ;;  %v5911_v63 = vrot.slane %v5903_v57, %v9155_v42  ;;  %v3704_v33 = vpop.f32.mrf.mxu1  ;;  %v5939_v38 = vpop.permute.xlu1 %5938  ;;  %v2177_v32 = vadd.f32 %v11531_v18, %v1385_v5 }
 0x232   : > { %v3805_v39 = vadd.f32 %v3704_v33, %v3026_v7  ;;  %v10907_v31 = vadd.f32 %v8595_v2, %v3807_v48  ;;  %v5947_v8 = vrot.slane %v5939_v38, %v9155_v42  ;;  %v8598_v15 = vpop.f32.mrf.mxu0 }
 0x233   : > { %v8130_v56 = vcombine.low %v5911_v63, %v5923_v37  ;;  %v8564_v6 = vpop.f32.mrf.mxu1  ;;  %8725 = vmatmul.mubr.msk.bf16.gmra.mxu0 %vm1155_vm5, %v7069_v27  ;;  %v3030_v37 = vadd.f32 %v10714_v60, %v2177_v32  ;;  %v11532_v63 = vld [vmem:[#allocation9_spill] sm:$0xff] }
 0x234   : > { %v3810_v26 = vadd.f32 %v8564_v6, %v10694_v50  ;;  %v10912_v23 = vadd.f32 %v3934_v35, %v3805_v39  ;;  %v5927_v40 = vpop.permute.xlu0 %5926  ;;  %v3947_v58 = vpop.f32.mrf.mxu0 }
 0x235   : > { %v6288_v45 = vmul.bf16 %v8130_v56, %v11530_v17  ;;  %v5935_v24 = vrot.slane %v5927_v40, %v9155_v42  ;;  %v3717_v49 = vpop.f32.mrf.mxu1  ;;  %v6697_v48 = vpop.permute.xlu1 %6696  ;;  %v11533_v17 = vld [vmem:[#allocation28_spill] sm:$0xff] }
 0x236   : > { %v3808_v11 = vadd.f32 %v3717_v49, %v10703_v51  ;;  %v10919_v34 = vadd.f32 %v8598_v15, %v3810_v26  ;;  %v6705_v36 = vrot.slane %v6697_v48, %v9155_v42  ;;  %v8599_v27 = vpop.f32.mrf.mxu0 }
 0x237   : > { %v8131_v7 = vcombine.low %v5935_v24, %v5947_v8  ;;  %v8565_v50 = vpop.f32.mrf.mxu1  ;;  %8694 = vmatprep.mubr.msk.bf16.mxu1 %vm1155_vm5, %v6288_v45 }
 0x238   : > { %v3811_v57 = vadd.f32 %v8565_v50, %v10710_v46  ;;  %v10924_v2 = vadd.f32 %v3947_v58, %v3808_v11  ;;  %v6685_v59 = vpop.permute.xlu0 %6684  ;;  %v3950_v6 = vpop.f32.mrf.mxu0 }
 0x239   : > { %v6289_v51 = vmul.bf16 %v8131_v7, %v11532_v63  ;;  %v6693_v33 = vrot.slane %v6685_v59, %v9155_v42  ;;  %v3720_v39 = vpop.f32.mrf.mxu1  ;;  %v6721_v46 = vpop.permute.xlu1 %6720  ;;  %v11534_v59 = vld [vmem:[#allocation29_spill] sm:$0xff] }
 0x23a   : > { %v3809_v35 = vadd.f32 %v3720_v39, %v3030_v37  ;;  %v10929_v56 = vadd.f32 %v8599_v27, %v3811_v57  ;;  %v6729_v8 = vrot.slane %v6721_v46, %v9155_v42  ;;  %v8602_v15 = vpop.f32.mrf.mxu0 }
 0x23b   : > { %v8196_v38 = vcombine.low %v6693_v33, %v6705_v36  ;;  %v8568_v5 = vpop.f32.mrf.mxu1  ;;  %8695 = vmatmul.mubr.msk.bf16.gmra.mxu1 %vm1155_vm5, %v6289_v51 }
 0x23c   : > { %v3814_v60 = vadd.f32 %v8568_v5, %v10726_v13  ;;  %v10933_v26 = vadd.f32 %v3950_v6, %v3809_v35  ;;  %v6709_v40 = vpop.permute.xlu0 %6708  ;;  %v3963_v11 = vpop.f32.mrf.mxu0 }
 0x23d   : > { %v7070_v45 = vmul.bf16 %v8196_v38, %v11533_v17  ;;  %v6717_v24 = vrot.slane %v6709_v40, %v9155_v42  ;;  %v3733_v49 = vpop.f32.mrf.mxu1  ;;  %v5963_v13 = vpop.permute.xlu1 %5962  ;;  %v11535_v40 = vld [vmem:[#allocation10_spill] sm:$0xff] }
 0x23e   : > { %v3812_v18 = vadd.f32 %v3733_v49, %v10737_v3  ;;  %v10939_v32 = vadd.f32 %v8602_v15, %v3814_v60  ;;  %v5971_v37 = vrot.slane %v5963_v13, %v9155_v42  ;;  %v8603_v36 = vpop.f32.mrf.mxu0 }
 0x23f   : > { %v8197_v58 = vcombine.low %v6717_v24, %v6729_v8  ;;  %v8569_v7 = vpop.f32.mrf.mxu1  ;;  %8728 = vmatprep.mubr.msk.bf16.mxu0 %vm1155_vm5, %v7070_v45 }
 0x240   : > { %v3815_v50 = vadd.f32 %v8569_v7, %v10745_v12  ;;  %v10943_v48 = vadd.f32 %v3963_v11, %v3812_v18  ;;  %v5951_v57 = vpop.permute.xlu0 %5950  ;;  %v3966_v39 = vpop.f32.mrf.mxu0 }
 0x241   : > { %v7071_v27 = vmul.bf16 %v8197_v58, %v11534_v59  ;;  %v5959_v3 = vrot.slane %v5951_v57, %v9155_v42  ;;  %v3736_v63 = vpop.f32.mrf.mxu1  ;;  %v5987_v12 = vpop.permute.xlu1 %5986  ;;  %v11536_v57 = vld [vmem:[#allocation11_spill] sm:$0xff] }
 0x242   : > { %v3813_v51 = vadd.f32 %v3736_v63, %v10757_v52  ;;  %v10949_v33 = vadd.f32 %v8603_v36, %v3815_v50  ;;  %v5995_v46 = vrot.slane %v5987_v12, %v9155_v42  ;;  %v8606_v8 = vpop.f32.mrf.mxu0 }
 0x243   : > { %v8132_v35 = vcombine.low %v5959_v3, %v5971_v37  ;;  %v8572_v6 = vpop.f32.mrf.mxu1  ;;  %8729 = vmatmul.mubr.msk.bf16.gmra.mxu0 %vm1155_vm5, %v7071_v27 }
 0x244   : > { %v3818_v38 = vadd.f32 %v8572_v6, %v10764_v44  ;;  %v10953_v5 = vadd.f32 %v3966_v39, %v3813_v51  ;;  %v5975_v60 = vpop.permute.xlu0 %5974  ;;  %v3979_v49 = vpop.f32.mrf.mxu0 }
 0x245   : > { %v6290_v15 = vmul.bf16 %v8132_v35, %v11535_v40  ;;  %v5983_v52 = vrot.slane %v5975_v60, %v9155_v42  ;;  %v3749_v17 = vpop.f32.mrf.mxu1  ;;  %v6745_v44 = vpop.permute.xlu1 %6744  ;;  %v11537_v60 = vld [vmem:[#allocation30_spill] sm:$0xff] }
 0x246   : > { %v3816_v45 = vadd.f32 %v3749_v17, %v10777_v10  ;;  %v10959_v24 = vadd.f32 %v8606_v8, %v3818_v38  ;;  %v6753_v13 = vrot.slane %v6745_v44, %v9155_v42  ;;  %v8607_v37 = vpop.f32.mrf.mxu0 }
 0x247   : > { %v8133_v18 = vcombine.low %v5983_v52, %v5995_v46  ;;  %v8573_v11 = vpop.f32.mrf.mxu1  ;;  %8698 = vmatprep.mubr.msk.bf16.mxu1 %vm1155_vm5, %v6290_v15 }
 0x248   : > { %v3819_v58 = vadd.f32 %v8573_v11, %v10785_v20  ;;  %v10963_v7 = vadd.f32 %v3979_v49, %v3816_v45  ;;  %v6733_v50 = vpop.permute.xlu0 %6732  ;;  %v3982_v63 = vpop.f32.mrf.mxu0 }
 0x249   : > { %v6291_v36 = vmul.bf16 %v8133_v18, %v11536_v57  ;;  %v6741_v10 = vrot.slane %v6733_v50, %v9155_v42  ;;  %v3752_v59 = vpop.f32.mrf.mxu1  ;;  %v6769_v20 = vpop.permute.xlu1 %6768  ;;  %v384_v50 = vld [vmem:[#allocation2 + $0xe8] sm:$0xff] }
 0x24a   : > { %v3817_v27 = vadd.f32 %v3752_v59, %v10792_v25  ;;  %v10969_v3 = vadd.f32 %v8607_v37, %v3819_v58  ;;  %v6777_v12 = vrot.slane %v6769_v20, %v9155_v42  ;;  %v8610_v46 = vpop.f32.mrf.mxu0  ;;  %v11538_v37 = vld [vmem:[#allocation31_spill] sm:$0xff] }
 0x24b   : > { %v8198_v51 = vcombine.low %v6741_v10, %v6753_v13  ;;  %v8576_v39 = vpop.f32.mrf.mxu1  ;;  %8699 = vmatmul.mubr.msk.bf16.gmra.mxu1 %vm1155_vm5, %v6291_v36 }
 0x24c   : > { %v3822_v35 = vadd.f32 %v8576_v39, %v10799_v62  ;;  %v10973_v6 = vadd.f32 %v3982_v63, %v3817_v27  ;;  %v6757_v38 = vpop.permute.xlu0 %6756  ;;  %v3995_v17 = vpop.f32.mrf.mxu0  ;;  %v11539_v39 = vld [vmem:[#allocation39_spill] sm:$0xff] }
 0x24d   : > { %v7072_v8 = vmul.bf16 %v8198_v51, %v11537_v60  ;;  %v6765_v25 = vrot.slane %v6757_v38, %v9155_v42  ;;  %v3765_v40 = vpop.f32.mrf.mxu1  ;;  %v6011_v62 = vpop.permute.xlu1 %6010  ;;  %v1401_v20 = vadd.f32 %v11539_v39, %v384_v50 }
 0x24e   : > { %v3820_v15 = vadd.f32 %v3765_v40, %v10809_v61  ;;  %v10979_v52 = vadd.f32 %v8610_v46, %v3822_v35  ;;  %v6019_v44 = vrot.slane %v6011_v62, %v9155_v42  ;;  %v8611_v13 = vpop.f32.mrf.mxu0 }
 0x24f   : > { %v8199_v45 = vcombine.low %v6765_v25, %v6777_v12  ;;  %v8577_v49 = vpop.f32.mrf.mxu1  ;;  %8732 = vmatprep.mubr.msk.bf16.mxu0 %vm1155_vm5, %v7072_v8  ;;  %v11540_v8 = vld [vmem:[#allocation12_spill] sm:$0xff] }
 0x250   : > { %v3823_v18 = vadd.f32 %v8577_v49, %v10817_v53  ;;  %v10983_v11 = vadd.f32 %v3995_v17, %v3820_v15  ;;  %v5999_v58 = vpop.permute.xlu0 %5998  ;;  %v3998_v27 = vpop.f32.mrf.mxu0  ;;  %v2193_v15 = vadd.f32 %v10839_v16, %v1401_v20 }
 0x251   : > { %v7073_v57 = vmul.bf16 %v8199_v45, %v11538_v37  ;;  %v6007_v61 = vrot.slane %v5999_v58, %v9155_v42  ;;  %v3768_v36 = vpop.f32.mrf.mxu1  ;;  %v6035_v53 = vpop.permute.xlu1 %6034 }
 0x252   : > { %v3821_v10 = vadd.f32 %v3768_v36, %v10822_v30  ;;  %v10989_v59 = vadd.f32 %v8611_v13, %v3823_v18  ;;  %v6043_v38 = vrot.slane %v6035_v53, %v9155_v42  ;;  %v8614_v60 = vpop.f32.mrf.mxu0 }
 0x253   : > { %v8134_v63 = vcombine.low %v6007_v61, %v6019_v44  ;;  %v8580_v51 = vpop.f32.mrf.mxu1  ;;  %8733 = vmatmul.mubr.msk.bf16.gmra.mxu0 %vm1155_vm5, %v7073_v57  ;;  %v3046_v44 = vadd.f32 %v10843_v1, %v2193_v15  ;;  %v11541_v57 = vld [vmem:[#allocation13_spill] sm:$0xff] }
 0x254   : > { %v3826_v35 = vadd.f32 %v8580_v51, %v10826_v43  ;;  %v10994_v12 = vadd.f32 %v3998_v27, %v3821_v10  ;;  %v6023_v46 = vpop.permute.xlu0 %6022  ;;  %v4011_v49 = vpop.f32.mrf.mxu0 }
 0x255   : > { %v6292_v30 = vmul.bf16 %v8134_v63, %v11540_v8  ;;  %v6031_v25 = vrot.slane %v6023_v46, %v9155_v42  ;;  %v3781_v40 = vpop.f32.mrf.mxu1  ;;  %v6793_v18 = vpop.permute.xlu1 %6792 }
 0x256   : > { %v3824_v17 = vadd.f32 %v3781_v40, %v10832_v28  ;;  %v11001_v45 = vadd.f32 %v8614_v60, %v3826_v35  ;;  %v6801_v50 = vrot.slane %v6793_v18, %v9155_v42  ;;  %v8615_v16 = vpop.f32.mrf.mxu0  ;;  %v11542_v35 = vld [vmem:[#allocation32_spill] sm:$0xff] }
 0x257   : > { %v8135_v62 = vcombine.low %v6031_v25, %v6043_v38  ;;  %v8581_v43 = vpop.f32.mrf.mxu1  ;;  %8702 = vmatprep.mubr.msk.bf16.mxu1 %vm1155_vm5, %v6292_v30 }
 0x258   : > { %v3827_v58 = vadd.f32 %v8581_v43, %v10836_v22  ;;  %v11006_v13 = vadd.f32 %v4011_v49, %v3824_v17  ;;  %v6781_v37 = vpop.permute.xlu0 %6780  ;;  %v4014_v63 = vpop.f32.mrf.mxu0  ;;  %v11543_v17 = vld [vmem:[#allocation33_spill] sm:$0xff] }
 0x259   : > { %v6293_v28 = vmul.bf16 %v8135_v62, %v11541_v57  ;;  %v6789_v61 = vrot.slane %v6781_v37, %v9155_v42  ;;  %v3784_v36 = vpop.f32.mrf.mxu1  ;;  %v6817_v22 = vpop.permute.xlu1 %6816  ;;  %v11544_v57 = vld [vmem:[#allocation14_spill] sm:$0xff] }
 0x25a   : > { %v3825_v10 = vadd.f32 %v3784_v36, %v3046_v44  ;;  %v11011_v27 = vadd.f32 %v8615_v16, %v3827_v58  ;;  %v6825_v39 = vrot.slane %v6817_v22, %v9155_v42 }
 0x25b   : > { %v8200_v51 = vcombine.low %v6789_v61, %v6801_v50  ;;  %v11013_v53 = vpop.f32.mrf.mxu1  ;;  %8703 = vmatmul.mubr.msk.bf16.gmra.mxu1 %vm1155_vm5, %v6293_v28 }
 0x25c   : > { %v11016_v1 = vadd.f32 %v4014_v63, %v3825_v10  ;;  %v6805_v20 = vpop.permute.xlu0 %6804 }
 0x25d   : > { %v7074_v38 = vmul.bf16 %v8200_v51, %v11542_v35  ;;  %v6813_v46 = vrot.slane %v6805_v20, %v9155_v42  ;;  %v11021_v60 = vpop.f32.mrf.mxu1  ;;  %v6059_v25 = vpop.permute.xlu1 %6058  ;;  %v11545_v35 = vld [vmem:[#allocation15_spill] sm:$0xff] }
 0x25e   : > { %v6067_v40 = vrot.slane %v6059_v25, %v9155_v42 }
 0x25f   : > { %v8201_v8 = vcombine.low %v6813_v46, %v6825_v39  ;;  %v11023_v30 = vpop.f32.mrf.mxu1  ;;  %8736 = vmatprep.mubr.msk.bf16.mxu0 %vm1155_vm5, %v7074_v38 }
 0x260   : > { %v6047_v15 = vpop.permute.xlu0 %6046 }
 0x261   : > { %v7075_v49 = vmul.bf16 %v8201_v8, %v11543_v17  ;;  %v6055_v62 = vrot.slane %v6047_v15, %v9155_v42  ;;  %v11029_v43 = vpop.f32.mrf.mxu1  ;;  %v6083_v58 = vpop.permute.xlu1 %6082 }
 0x262   : > { %v6091_v37 = vrot.slane %v6083_v58, %v9155_v42 }
 0x263   : > { %v8136_v18 = vcombine.low %v6055_v62, %v6067_v40  ;;  %v8624_v44 = vpop.f32.mrf.mxu1  ;;  %8737 = vmatmul.mubr.msk.bf16.gmra.mxu0 %vm1155_vm5, %v7075_v49  ;;  %v11546_v62 = vld [vmem:[#allocation34_spill] sm:$0xff] }
 0x264   : > { %v11033_v50 = vadd.f32 %v8624_v44, %v10875_v54  ;;  %v6071_v16 = vpop.permute.xlu0 %6070 }
 0x265   : > { %v6294_v28 = vmul.bf16 %v8136_v18, %v11544_v57  ;;  %v6079_v61 = vrot.slane %v6071_v16, %v9155_v42  ;;  %v4699_v36 = vpop.f32.mrf.mxu1  ;;  %v6841_v22 = vpop.permute.xlu1 %6840 }
 0x266   : > { %v11039_v10 = vadd.f32 %v4699_v36, %v10880_v21  ;;  %v6849_v54 = vrot.slane %v6841_v22, %v9155_v42  ;;  %v11547_v36 = vld [vmem:[#allocation35_spill] sm:$0xff] }
 0x267   : > { %v8137_v63 = vcombine.low %v6079_v61, %v6091_v37  ;;  %v8625_v51 = vpop.f32.mrf.mxu1  ;;  %8706 = vmatprep.mubr.msk.bf16.mxu1 %vm1155_vm5, %v6294_v28 }
 0x268   : > { %v11043_v39 = vadd.f32 %v8625_v51, %v10885_v0  ;;  %v6829_v20 = vpop.permute.xlu0 %6828 }
 0x269   : > { %v6295_v38 = vmul.bf16 %v8137_v63, %v11545_v35  ;;  %v6837_v46 = vrot.slane %v6829_v20, %v9155_v42  ;;  %v4702_v8 = vpop.f32.mrf.mxu1  ;;  %v6865_v15 = vpop.permute.xlu1 %6864 }
 0x26a   : > { %v11049_v25 = vadd.f32 %v4702_v8, %v10890_v41  ;;  %v6873_v0 = vrot.slane %v6865_v15, %v9155_v42  ;;  %v11548_v8 = vld [vmem:[#allocation16_spill] sm:$0xff] }
 0x26b   : > { %v8202_v21 = vcombine.low %v6837_v46, %v6849_v54  ;;  %v8628_v40 = vpop.f32.mrf.mxu1  ;;  %8707 = vmatmul.mubr.msk.bf16.gmra.mxu1 %vm1155_vm5, %v6295_v38 }
 0x26c   : > { %v11053_v17 = vadd.f32 %v8628_v40, %v10897_v47  ;;  %v6853_v49 = vpop.permute.xlu0 %6852 }
 0x26d   : > { %v7076_v18 = vmul.bf16 %v8202_v21, %v11546_v62  ;;  %v6861_v44 = vrot.slane %v6853_v49, %v9155_v42  ;;  %v4715_v58 = vpop.f32.mrf.mxu1  ;;  %v6107_v57 = vpop.permute.xlu1 %6106 }
 0x26e   : > { %v11059_v37 = vadd.f32 %v4715_v58, %v10902_v55  ;;  %v6115_v47 = vrot.slane %v6107_v57, %v9155_v42  ;;  %v11549_v58 = vld [vmem:[#allocation17_spill] sm:$0xff] }
 0x26f   : > { %v8203_v41 = vcombine.low %v6861_v44, %v6873_v0  ;;  %v8629_v16 = vpop.f32.mrf.mxu1  ;;  %8740 = vmatprep.mubr.msk.bf16.mxu0 %vm1155_vm5, %v7076_v18 }
 0x270   : > { %v11063_v28 = vadd.f32 %v8629_v16, %v10907_v31  ;;  %v6095_v61 = vpop.permute.xlu0 %6094 }
 0x271   : > { %v7077_v63 = vmul.bf16 %v8203_v41, %v11547_v36  ;;  %v6103_v51 = vrot.slane %v6095_v61, %v9155_v42  ;;  %v4718_v22 = vpop.f32.mrf.mxu1  ;;  %v6131_v35 = vpop.permute.xlu1 %6130 }
 0x272   : > { %v11069_v54 = vadd.f32 %v4718_v22, %v10912_v23  ;;  %v6139_v31 = vrot.slane %v6131_v35, %v9155_v42  ;;  %v11550_v22 = vld [vmem:[#allocation36_spill] sm:$0xff] }
 0x273   : > { %v8138_v55 = vcombine.low %v6103_v51, %v6115_v47  ;;  %v8632_v20 = vpop.f32.mrf.mxu1  ;;  %8741 = vmatmul.mubr.msk.bf16.gmra.mxu0 %vm1155_vm5, %v7077_v63 }
 0x274   : > { %v11073_v38 = vadd.f32 %v8632_v20, %v10919_v34  ;;  %v6119_v46 = vpop.permute.xlu0 %6118 }
 0x275   : > { %v6296_v21 = vmul.bf16 %v8138_v55, %v11548_v8  ;;  %v6127_v40 = vrot.slane %v6119_v46, %v9155_v42  ;;  %v4731_v15 = vpop.f32.mrf.mxu1  ;;  %v6889_v62 = vpop.permute.xlu1 %6888 }
 0x276   : > { %v11079_v0 = vadd.f32 %v4731_v15, %v10924_v2  ;;  %v6897_v34 = vrot.slane %v6889_v62, %v9155_v42 }
 0x277   : > { %v8139_v23 = vcombine.low %v6127_v40, %v6139_v31  ;;  %v8633_v49 = vpop.f32.mrf.mxu1  ;;  %8710 = vmatprep.mubr.msk.bf16.mxu1 %vm1155_vm5, %v6296_v21 }
 0x278   : > { %v11083_v18 = vadd.f32 %v8633_v49, %v10929_v56  ;;  %v6877_v44 = vpop.permute.xlu0 %6876 }
 0x279   : > { %v6297_v41 = vmul.bf16 %v8139_v23, %v11549_v58  ;;  %v6885_v16 = vrot.slane %v6877_v44, %v9155_v42  ;;  %v4734_v57 = vpop.f32.mrf.mxu1  ;;  %v6913_v36 = vpop.permute.xlu1 %6912 }
 0x27a   : > { %v11089_v47 = vadd.f32 %v4734_v57, %v10933_v26  ;;  %v6921_v56 = vrot.slane %v6913_v36, %v9155_v42 }
 0x27b   : > { %v8204_v2 = vcombine.low %v6885_v16, %v6897_v34  ;;  %v8636_v61 = vpop.f32.mrf.mxu1  ;;  %8711 = vmatmul.mubr.msk.bf16.gmra.mxu1 %vm1155_vm5, %v6297_v41 }
 0x27c   : > { %v11093_v63 = vadd.f32 %v8636_v61, %v10939_v32  ;;  %v6901_v51 = vpop.permute.xlu0 %6900 }
 0x27d   : > { %v7078_v55 = vmul.bf16 %v8204_v2, %v11550_v22  ;;  %v6909_v20 = vrot.slane %v6901_v51, %v9155_v42  ;;  %v4747_v35 = vpop.f32.mrf.mxu1  ;;  %v6155_v8 = vpop.permute.xlu1 %6154 }
 0x27e   : > { %v11099_v26 = vadd.f32 %v4747_v35, %v10943_v48  ;;  %v6163_v21 = vrot.slane %v6155_v8, %v9155_v42  ;;  %v8832_v48 = vld [vmem:[%s9097_s28 + $0x8] sm:$0xf] }
 0x27f   : > { %v8205_v31 = vcombine.low %v6909_v20, %v6921_v56  ;;  %v8637_v46 = vpop.f32.mrf.mxu1  ;;  %8744 = vmatprep.mubr.msk.bf16.mxu0 %vm1155_vm5, %v7078_v55  ;;  %v8159_v34 = vcombine.low %v8832_v48, %v8832_v48 }
 0x280   : > { %v11103_v32 = vadd.f32 %v8637_v46, %v10949_v33  ;;  %v6143_v40 = vpop.permute.xlu0 %6142 }
 0x281   : > { %v7079_v15 = vmul.bf16 %v8205_v31, %v10755_v14  ;;  %v6151_v23 = vrot.slane %v6143_v40, %v9155_v42  ;;  %v4750_v49 = vpop.f32.mrf.mxu1  ;;  %v6179_v41 = vpop.permute.xlu1 %6178  ;;  %v11551_v14 = vld [vmem:[#allocation18_spill] sm:$0xff]  ;;  %v6548_v56 = vshll.u32 %v8159_v34, 16  ;;  %v11552_v31 = vld [vmem:[#allocation3_spill] sm:$0xff] }
 0x282   : > { %v11109_v62 = vadd.f32 %v4750_v49, %v10953_v5  ;;  %v6187_v16 = vrot.slane %v6179_v41, %v9155_v42 }
 0x283   : > { %v8140_v44 = vcombine.low %v6151_v23, %v6163_v21  ;;  %v8640_v58 = vpop.f32.mrf.mxu1  ;;  %8745 = vmatmul.mubr.msk.bf16.gmra.mxu0 %vm1155_vm5, %v7079_v15  ;;  %v6550_v40 = vrot.slane %v6548_v56, 1 }
 0x284   : > { %v11114_v33 = vadd.f32 %v8640_v58, %v10959_v24  ;;  %v6167_v57 = vpop.permute.xlu0 %6166 }
 0x285   : > { %v6298_v2 = vmul.bf16 %v8140_v44, %v11551_v14  ;;  %v6175_v61 = vrot.slane %v6167_v57, %v9155_v42  ;;  %v4763_v36 = vpop.f32.mrf.mxu1  ;;  %v6937_v55 = vpop.permute.xlu1 %6936  ;;  %v11553_v44 = vld [vmem:[#allocation22_spill] sm:$0xff]  ;;  %v11554_v57 = vld [vmem:[#allocation23_spill] sm:$0xff] }
 0x286   : > { %v11120_v5 = vadd.f32 %v4763_v36, %v10963_v7  ;;  %v6945_v20 = vrot.slane %v6937_v55, %v9155_v42 }
 0x287   : > { %v8141_v51 = vcombine.low %v6175_v61, %v6187_v16  ;;  %v8641_v22 = vpop.f32.mrf.mxu1  ;;  %8714 = vmatprep.mubr.msk.bf16.mxu1 %vm1155_vm5, %v6298_v2 }
 0x288   : > { %v11124_v24 = vadd.f32 %v8641_v22, %v10969_v3  ;;  %v6925_v35 = vpop.permute.xlu0 %6924 }
 0x289   : > { %v6299_v46 = vmul.bf16 %v8141_v51, %v11552_v31  ;;  %v6933_v8 = vrot.slane %v6925_v35, %v9155_v42  ;;  %v4766_v21 = vpop.f32.mrf.mxu1  ;;  %v6961_v49 = vpop.permute.xlu1 %6960 }
 0x28a   : > { %v11130_v7 = vadd.f32 %v4766_v21, %v10973_v6  ;;  %v6969_v48 = vrot.slane %v6961_v49, %v9155_v42  ;;  %v6551_v6 = vsel %vm2205_vm7, %v11554_v57, %v6550_v40 }
 0x28b   : > { %v8206_v15 = vcombine.low %v6933_v8, %v6945_v20  ;;  %v8644_v23 = vpop.f32.mrf.mxu1  ;;  %8715 = vmatmul.mubr.msk.bf16.gmra.mxu1 %vm1155_vm5, %v6299_v46 }
 0x28c   : > { %v4836_v3 = vadd.f32 %v8644_v23, %v10979_v52  ;;  %v6949_v34 = vpop.permute.xlu0 %6948 }
 0x28d   : > { %v7080_v58 = vmul.bf16 %v8206_v15, %v11553_v44  ;;  %v6957_v41 = vrot.slane %v6949_v34, %v9155_v42  ;;  %v4779_v16 = vpop.f32.mrf.mxu1 }
 0x28e   : > { %v4834_v14 = vadd.f32 %v4779_v16, %v10983_v11 }
 0x28f   : > { %v8207_v2 = vcombine.low %v6957_v41, %v6969_v48  ;;  %v8645_v61 = vpop.f32.mrf.mxu1  ;;  %8748 = vmatprep.mubr.msk.bf16.mxu0 %vm1155_vm5, %v7080_v58 }
 0x290   : > { %v4837_v36 = vadd.f32 %v8645_v61, %v10989_v59 }
 0x291   : > { %v7081_v52 = vmul.bf16 %v8207_v2, %v6551_v6  ;;  %v4782_v56 = vpop.f32.mrf.mxu1 }
 0x292   : > { %v4835_v51 = vadd.f32 %v4782_v56, %v10994_v12 }
 0x293   : > { %v11143_v22 = vpop.f32.mrf.mxu0  ;;  %8749 = vmatmul.mubr.msk.bf16.gmra.mxu0 %vm1155_vm5, %v7081_v52 }
 0x295   : > { %v11146_v42 = vpop.f32.mrf.mxu0 }
 0x297   : > { %v11148_v55 = vpop.f32.mrf.mxu0 }
 0x299   : > { %v11150_v20 = vpop.f32.mrf.mxu0 }
 0x29b   : > { %v8658_v11 = vpop.f32.mrf.mxu0 }
 0x29c   : > { %v11153_v35 = vadd.f32 %v8658_v11, %v11033_v50 }
 0x29d   : > { %v5628_v31 = vpop.f32.mrf.mxu0 }
 0x29e   : > { %v11156_v59 = vadd.f32 %v5628_v31, %v11039_v10 }
 0x29f   : > { %v8659_v46 = vpop.f32.mrf.mxu0 }
 0x2a0   : > { %v11159_v12 = vadd.f32 %v8659_v46, %v11043_v39 }
 0x2a1   : > { %v5631_v8 = vpop.f32.mrf.mxu0 }
 0x2a2   : > { %v11162_v21 = vadd.f32 %v5631_v8, %v11049_v25 }
 0x2a3   : > { %v8662_v40 = vpop.f32.mrf.mxu0 }
 0x2a4   : > { %v11165_v15 = vadd.f32 %v8662_v40, %v11053_v17 }
 0x2a5   : > { %v5644_v23 = vpop.f32.mrf.mxu0 }
 0x2a6   : > { %v11168_v50 = vadd.f32 %v5644_v23, %v11059_v37 }
 0x2a7   : > { %v8663_v49 = vpop.f32.mrf.mxu0 }
 0x2a8   : > { %v11171_v10 = vadd.f32 %v8663_v49, %v11063_v28 }
 0x2a9   : > { %v5647_v48 = vpop.f32.mrf.mxu0 }
 0x2aa   : > { %v11174_v39 = vadd.f32 %v5647_v48, %v11069_v54 }
 0x2ab   : > { %v8666_v34 = vpop.f32.mrf.mxu0 }
 0x2ac   : > { %v11177_v25 = vadd.f32 %v8666_v34, %v11073_v38 }
 0x2ad   : > { %v5660_v44 = vpop.f32.mrf.mxu0 }
 0x2ae   : > { %v11180_v17 = vadd.f32 %v5660_v44, %v11079_v0 }
 0x2af   : > { %v8667_v58 = vpop.f32.mrf.mxu0 }
 0x2b0   : > { %v11183_v37 = vadd.f32 %v8667_v58, %v11083_v18 }
 0x2b1   : > { %v5663_v41 = vpop.f32.mrf.mxu0 }
 0x2b2   : > { %v11186_v28 = vadd.f32 %v5663_v41, %v11089_v47 }
 0x2b3   : > { %v8670_v16 = vpop.f32.mrf.mxu0 }
 0x2b4   : > { %v11189_v54 = vadd.f32 %v8670_v16, %v11093_v63 }
 0x2b5   : > { %v5676_v57 = vpop.f32.mrf.mxu0 }
 0x2b6   : > { %v11192_v38 = vadd.f32 %v5676_v57, %v11099_v26 }
 0x2b7   : > { %v8671_v6 = vpop.f32.mrf.mxu0 }
 0x2b8   : > { %v11195_v0 = vadd.f32 %v8671_v6, %v11103_v32 }
 0x2b9   : > { %v5679_v2 = vpop.f32.mrf.mxu0 }
 0x2ba   : > { %v11198_v18 = vadd.f32 %v5679_v2, %v11109_v62 }
 0x2bb   : > { %v8674_v61 = vpop.f32.mrf.mxu0 }
 0x2bc   : > { %v11201_v47 = vadd.f32 %v8674_v61, %v11114_v33 }
 0x2bd   : > { %v5692_v52 = vpop.f32.mrf.mxu0 }
 0x2be   : > { %v11204_v63 = vadd.f32 %v5692_v52, %v11120_v5 }
 0x2bf   : > { %v8675_v56 = vpop.f32.mrf.mxu0 }
 0x2c0   : > { %v11207_v26 = vadd.f32 %v8675_v56, %v11124_v24  ;;  %v4813_v56 = vadd.f32 %v11023_v30, %v10863_v19 }
 0x2c1   : > { %v5695_v11 = vpop.f32.mrf.mxu0 }
 0x2c2   : > { %v11210_v32 = vadd.f32 %v5695_v11, %v11130_v7 }
 0x2c3   : > { %v8678_v31 = vpop.f32.mrf.mxu0 }
 0x2c4   : > { %v11212_v46 = vadd.f32 %v8678_v31, %v4836_v3 }
 0x2c5   : > { %v5708_v62 = vpop.f32.mrf.mxu0 }
 0x2c6   : > { %v11214_v8 = vadd.f32 %v5708_v62, %v4834_v14 }
 0x2c7   : > { %v8679_v33 = vpop.f32.mrf.mxu0 }
 0x2c8   : > { %v11216_v40 = vadd.f32 %v8679_v33, %v4837_v36  ;;  %v4811_v33 = vadd.f32 %v11029_v43, %v10868_v4 }
 0x2c9   : > { %v5711_v23 = vpop.f32.mrf.mxu0 }
 0x2ca   : > { %v11218_v5 = vadd.f32 %v5711_v23, %v4835_v51  ;;  %v5742_v23 = vadd.f32 %v11148_v55, %v4813_v56 }
 0x2cb   : > { %v8648_v49 = vpop.f32.mrf.mxu1 }
 0x2cc   : > { %v4840_v24 = vadd.f32 %v8648_v49, %v11001_v45 }
 0x2cd   : > { %v4795_v48 = vpop.f32.mrf.mxu1 }
 0x2ce   : > { %v4838_v34 = vadd.f32 %v4795_v48, %v11006_v13 }
 0x2cf   : > { %v8649_v7 = vpop.f32.mrf.mxu1 }
 0x2d0   : > { %v4841_v44 = vadd.f32 %v8649_v7, %v11011_v27  ;;  %v4812_v27 = vadd.f32 %v11013_v53, %v10853_v29 }
 0x2d1   : > { %v4798_v3 = vpop.f32.mrf.mxu1 }
 0x2d2   : > { %v4839_v58 = vadd.f32 %v4798_v3, %v11016_v1  ;;  %v4810_v1 = vadd.f32 %v11021_v60, %v10858_v9  ;;  %v5741_v61 = vadd.f32 %v11143_v22, %v4812_v27  ;;  %v5740_v60 = vadd.f32 %v11150_v20, %v4811_v33 }
 0x2d3   : > { %v8682_v14 = vpop.f32.mrf.mxu0 }
 0x2d4   : > { %v11224_v41 = vadd.f32 %v8682_v14, %v4840_v24  ;;  %v5739_v11 = vadd.f32 %v11146_v42, %v4810_v1 }
 0x2d5   : > { %v5724_v36 = vpop.f32.mrf.mxu0 }
 0x2d6   : > { %v11226_v16 = vadd.f32 %v5724_v36, %v4838_v34 }
 0x2d7   : > { %v8683_v51 = vpop.f32.mrf.mxu0 }
 0x2d8   : > { %v11228_v57 = vadd.f32 %v8683_v51, %v4841_v44 }
 0x2d9   : > { %v5727_v6 = vpop.f32.mrf.mxu0 }
 0x2da   : > { %v11230_v45 = vadd.f32 %v5727_v6, %v4839_v58 }
 0x2db   : > { %v8688_v2 = vpop.f32.mrf.mxu1 }
 0x2dc   : > { %v6516_v31 = vadd.f32 %v8688_v2, %v5741_v61 }
 0x2dd   : > { %v6387_v13 = vpop.f32.mrf.mxu1 }
 0x2de   : > { %v6514_v49 = vadd.f32 %v6387_v13, %v5739_v11 }
 0x2df   : > { %v8689_v52 = vpop.f32.mrf.mxu1 }
 0x2e0   : > { %v6517_v22 = vadd.f32 %v8689_v52, %v5742_v23 }
 0x2e1   : > { %v6390_v53 = vpop.f32.mrf.mxu1 }
 0x2e2   : > { %v6515_v42 = vadd.f32 %v6390_v53, %v5740_v60 }
 0x2e3   : > { %v8722_v62 = vpop.f32.mrf.mxu0 }
 0x2e4   : > { %v7298_v29 = vadd.f32 %v8722_v62, %v6516_v31 }
 0x2e5   : > { %v7169_v9 = vpop.f32.mrf.mxu0 }
 0x2e6   : > { %7331 = vst.msk [vmem:[#allocation2 + $0x10] sm:$0xff] %vm290_vm6, %v7298_v29  ;;  %v7296_v19 = vadd.f32 %v7169_v9, %v6514_v49 }
 0x2e7   : > { %v8723_v30 = vpop.f32.mrf.mxu0 }
 0x2e8   : > { %7329 = vst.msk [vmem:[#allocation2] sm:$0xff] %vm290_vm6, %v7296_v19  ;;  %v7299_v24 = vadd.f32 %v8723_v30, %v6517_v22 }
 0x2e9   : > { %v7172_v48 = vpop.f32.mrf.mxu0 }
 0x2ea   : > { %7332 = vst.msk [vmem:[#allocation2 + $0x18] sm:$0xff] %vm290_vm6, %v7299_v24  ;;  %v7297_v4 = vadd.f32 %v7172_v48, %v6515_v42 }
 0x2eb   : > { %v8692_v43 = vpop.f32.mrf.mxu1 }
 0x2ec   : > { %7330 = vst.msk [vmem:[#allocation2 + $0x8] sm:$0xff] %vm290_vm6, %v7297_v4  ;;  %v6520_v36 = vadd.f32 %v8692_v43, %v11153_v35 }
 0x2ed   : > { %v7366_v55 = vld [vmem:[#allocation2 + $0x10] sm:$0xff]  ;;  %v6403_v20 = vpop.f32.mrf.mxu1 }
 0x2ee   : > { %v8263_v34 = vpack.c.bf16 %v7366_v55, %v7366_v55  ;;  %v6518_v13 = vadd.f32 %v6403_v20, %v11156_v59 }
 0x2ef   : > { %v7364_v7 = vld [vmem:[#allocation2] sm:$0xff]  ;;  %v8693_v58 = vpop.f32.mrf.mxu1 }
 0x2f0   : > { %7527 = vst.msk [vmem:[%s11253_s25 + $0x8] sm:$0xf] %vm7524_vm10, %v8263_v34  ;;  %v8261_v44 = vpack.c.bf16 %v7364_v7, %v7364_v7  ;;  %v6521_v52 = vadd.f32 %v8693_v58, %v11159_v12 }
 0x2f1   : > { %v7367_v3 = vld [vmem:[#allocation2 + $0x18] sm:$0xff]  ;;  %v6406_v1 = vpop.f32.mrf.mxu1 }
 0x2f2   : > { %7525 = vst.msk [vmem:[%s11253_s25] sm:$0xf] %vm7524_vm10, %v8261_v44  ;;  %v8264_v14 = vpack.c.bf16 %v7367_v3, %v7367_v3  ;;  %v6519_v35 = vadd.f32 %v6406_v1, %v11162_v21 }
 0x2f3   : > { %v7365_v51 = vld [vmem:[#allocation2 + $0x8] sm:$0xff]  ;;  %v8726_v6 = vpop.f32.mrf.mxu0 }
 0x2f4   : > { %7528 = vst.msk [vmem:[%s11253_s25 + $0xc] sm:$0xf] %vm7524_vm10, %v8264_v14  ;;  %v8262_v2 = vpack.c.bf16 %v7365_v51, %v7365_v51  ;;  %v7302_v27 = vadd.f32 %v8726_v6, %v6520_v36 }
 0x2f5   : > { %v7185_v61 = vpop.f32.mrf.mxu0 }
 0x2f6   : > { %7526 = vst.msk [vmem:[%s11253_s25 + $0x4] sm:$0xf] %vm7524_vm10, %v8262_v2  ;;  %v7300_v56 = vadd.f32 %v7185_v61, %v6518_v13 }
 0x2f7   : > { %7335 = vst.msk [vmem:[#allocation2 + $0x30] sm:$0xff] %vm290_vm6, %v7302_v27  ;;  %v8727_v11 = vpop.f32.mrf.mxu0 }
 0x2f8   : > { %7333 = vst.msk [vmem:[#allocation2 + $0x20] sm:$0xff] %vm290_vm6, %v7300_v56  ;;  %v7303_v31 = vadd.f32 %v8727_v11, %v6521_v52 }
 0x2f9   : > { %v7188_v62 = vpop.f32.mrf.mxu0 }
 0x2fa   : > { %7336 = vst.msk [vmem:[#allocation2 + $0x38] sm:$0xff] %vm290_vm6, %v7303_v31  ;;  %v7301_v59 = vadd.f32 %v7188_v62, %v6519_v35 }
 0x2fb   : > { %v8696_v33 = vpop.f32.mrf.mxu1 }
 0x2fc   : > { %7334 = vst.msk [vmem:[#allocation2 + $0x28] sm:$0xff] %vm290_vm6, %v7301_v59  ;;  %v6524_v22 = vadd.f32 %v8696_v33, %v11165_v15 }
 0x2fd   : > { %v6419_v23 = vpop.f32.mrf.mxu1 }
 0x2fe   : > { %v7370_v12 = vld [vmem:[#allocation2 + $0x30] sm:$0xff]  ;;  %v6522_v24 = vadd.f32 %v6419_v23, %v11168_v50 }
 0x2ff   : > { %v8267_v49 = vpack.c.bf16 %v7370_v12, %v7370_v12  ;;  %v7368_v29 = vld [vmem:[#allocation2 + $0x20] sm:$0xff]  ;;  %v8697_v9 = vpop.f32.mrf.mxu1 }
 0x300   : > { %v8265_v21 = vpack.c.bf16 %v7368_v29, %v7368_v29  ;;  %v6525_v55 = vadd.f32 %v8697_v9, %v11171_v10 }
 0x301   : > { %7531 = vst.msk [vmem:[%s11253_s25 + $0x18] sm:$0xf] %vm7524_vm10, %v8267_v49  ;;  %v7371_v53 = vld [vmem:[#allocation2 + $0x38] sm:$0xff]  ;;  %v6422_v4 = vpop.f32.mrf.mxu1 }
 0x302   : > { %7529 = vst.msk [vmem:[%s11253_s25 + $0x10] sm:$0xf] %vm7524_vm10, %v8265_v21  ;;  %v8268_v60 = vpack.c.bf16 %v7371_v53, %v7371_v53  ;;  %v6523_v15 = vadd.f32 %v6422_v4, %v11174_v39 }
 0x303   : > { %v7369_v19 = vld [vmem:[#allocation2 + $0x28] sm:$0xff]  ;;  %v8730_v30 = vpop.f32.mrf.mxu0 }
 0x304   : > { %7532 = vst.msk [vmem:[%s11253_s25 + $0x1c] sm:$0xf] %vm7524_vm10, %v8268_v60  ;;  %v8266_v42 = vpack.c.bf16 %v7369_v19, %v7369_v19  ;;  %v7306_v48 = vadd.f32 %v8730_v30, %v6524_v22 }
 0x305   : > { %v7201_v43 = vpop.f32.mrf.mxu0 }
 0x306   : > { %7530 = vst.msk [vmem:[%s11253_s25 + $0x14] sm:$0xf] %vm7524_vm10, %v8266_v42  ;;  %v7304_v20 = vadd.f32 %v7201_v43, %v6522_v24 }
 0x307   : > { %7339 = vst.msk [vmem:[#allocation2 + $0x50] sm:$0xff] %vm290_vm6, %v7306_v48  ;;  %v8731_v34 = vpop.f32.mrf.mxu0 }
 0x308   : > { %7337 = vst.msk [vmem:[#allocation2 + $0x40] sm:$0xff] %vm290_vm6, %v7304_v20  ;;  %v7307_v7 = vadd.f32 %v8731_v34, %v6525_v55 }
 0x309   : > { %v7204_v44 = vpop.f32.mrf.mxu0 }
 0x30a   : > { %7340 = vst.msk [vmem:[#allocation2 + $0x58] sm:$0xff] %vm290_vm6, %v7307_v7  ;;  %v7305_v50 = vadd.f32 %v7204_v44, %v6523_v15 }
 0x30b   : > { %v8700_v3 = vpop.f32.mrf.mxu1 }
 0x30c   : > { %7338 = vst.msk [vmem:[#allocation2 + $0x48] sm:$0xff] %vm290_vm6, %v7305_v50  ;;  %v6528_v13 = vadd.f32 %v8700_v3, %v11177_v25 }
 0x30d   : > { %v6435_v58 = vpop.f32.mrf.mxu1 }
 0x30e   : > { %v7374_v10 = vld [vmem:[#allocation2 + $0x50] sm:$0xff]  ;;  %v6526_v52 = vadd.f32 %v6435_v58, %v11180_v17 }
 0x30f   : > { %v8271_v14 = vpack.c.bf16 %v7374_v10, %v7374_v10  ;;  %v7372_v36 = vld [vmem:[#allocation2 + $0x40] sm:$0xff]  ;;  %v8701_v6 = vpop.f32.mrf.mxu1 }
 0x310   : > { %v8269_v39 = vpack.c.bf16 %v7372_v36, %v7372_v36  ;;  %v6529_v31 = vadd.f32 %v8701_v6, %v11183_v37 }
 0x311   : > { %7535 = vst.msk [vmem:[%s11253_s25 + $0x28] sm:$0xf] %vm7524_vm10, %v8271_v14  ;;  %v7375_v51 = vld [vmem:[#allocation2 + $0x58] sm:$0xff]  ;;  %v6438_v11 = vpop.f32.mrf.mxu1 }
 0x312   : > { %7533 = vst.msk [vmem:[%s11253_s25 + $0x20] sm:$0xf] %vm7524_vm10, %v8269_v39  ;;  %v8272_v2 = vpack.c.bf16 %v7375_v51, %v7375_v51  ;;  %v6527_v25 = vadd.f32 %v6438_v11, %v11186_v28 }
 0x313   : > { %v7373_v27 = vld [vmem:[#allocation2 + $0x48] sm:$0xff]  ;;  %v8734_v1 = vpop.f32.mrf.mxu0 }
 0x314   : > { %7536 = vst.msk [vmem:[%s11253_s25 + $0x2c] sm:$0xf] %vm7524_vm10, %v8272_v2  ;;  %v8270_v61 = vpack.c.bf16 %v7373_v27, %v7373_v27  ;;  %v7310_v56 = vadd.f32 %v8734_v1, %v6528_v13 }
 0x315   : > { %v7217_v35 = vpop.f32.mrf.mxu0 }
 0x316   : > { %7534 = vst.msk [vmem:[%s11253_s25 + $0x24] sm:$0xf] %vm7524_vm10, %v8270_v61  ;;  %v7308_v62 = vadd.f32 %v7217_v35, %v6526_v52 }
 0x317   : > { %7343 = vst.msk [vmem:[#allocation2 + $0x70] sm:$0xff] %vm290_vm6, %v7310_v56  ;;  %v8735_v59 = vpop.f32.mrf.mxu0 }
 0x318   : > { %7341 = vst.msk [vmem:[#allocation2 + $0x60] sm:$0xff] %vm290_vm6, %v7308_v62  ;;  %v7311_v33 = vadd.f32 %v8735_v59, %v6529_v31 }
 0x319   : > { %v7220_v12 = vpop.f32.mrf.mxu0 }
 0x31a   : > { %7344 = vst.msk [vmem:[#allocation2 + $0x78] sm:$0xff] %vm290_vm6, %v7311_v33  ;;  %v7309_v17 = vadd.f32 %v7220_v12, %v6527_v25 }
 0x31b   : > { %v8704_v23 = vpop.f32.mrf.mxu1 }
 0x31c   : > { %7342 = vst.msk [vmem:[#allocation2 + $0x68] sm:$0xff] %vm290_vm6, %v7309_v17  ;;  %v6532_v22 = vadd.f32 %v8704_v23, %v11189_v54 }
 0x31d   : > { %v6451_v49 = vpop.f32.mrf.mxu1 }
 0x31e   : > { %v7378_v37 = vld [vmem:[#allocation2 + $0x70] sm:$0xff]  ;;  %v6530_v24 = vadd.f32 %v6451_v49, %v11192_v38 }
 0x31f   : > { %v8275_v29 = vpack.c.bf16 %v7378_v37, %v7378_v37  ;;  %v7376_v21 = vld [vmem:[#allocation2 + $0x60] sm:$0xff]  ;;  %v8705_v9 = vpop.f32.mrf.mxu1 }
 0x320   : > { %v8273_v28 = vpack.c.bf16 %v7376_v21, %v7376_v21  ;;  %v6533_v55 = vadd.f32 %v8705_v9, %v11195_v0 }
 0x321   : > { %7539 = vst.msk [vmem:[%s11253_s25 + $0x38] sm:$0xf] %vm7524_vm10, %v8275_v29  ;;  %v7379_v53 = vld [vmem:[#allocation2 + $0x78] sm:$0xff]  ;;  %v6454_v4 = vpop.f32.mrf.mxu1 }
 0x322   : > { %7537 = vst.msk [vmem:[%s11253_s25 + $0x30] sm:$0xf] %vm7524_vm10, %v8273_v28  ;;  %v8276_v60 = vpack.c.bf16 %v7379_v53, %v7379_v53  ;;  %v6531_v54 = vadd.f32 %v6454_v4, %v11198_v18 }
 0x323   : > { %v7377_v19 = vld [vmem:[#allocation2 + $0x68] sm:$0xff]  ;;  %v8738_v30 = vpop.f32.mrf.mxu0 }
 0x324   : > { %7540 = vst.msk [vmem:[%s11253_s25 + $0x3c] sm:$0xf] %vm7524_vm10, %v8276_v60  ;;  %v8274_v42 = vpack.c.bf16 %v7377_v19, %v7377_v19  ;;  %v7314_v48 = vadd.f32 %v8738_v30, %v6532_v22 }
 0x325   : > { %v7233_v43 = vpop.f32.mrf.mxu0 }
 0x326   : > { %7538 = vst.msk [vmem:[%s11253_s25 + $0x34] sm:$0xf] %vm7524_vm10, %v8274_v42  ;;  %v7312_v20 = vadd.f32 %v7233_v43, %v6530_v24 }
 0x327   : > { %7347 = vst.msk [vmem:[#allocation2 + $0x90] sm:$0xff] %vm290_vm6, %v7314_v48  ;;  %v8739_v34 = vpop.f32.mrf.mxu0 }
 0x328   : > { %7345 = vst.msk [vmem:[#allocation2 + $0x80] sm:$0xff] %vm290_vm6, %v7312_v20  ;;  %v7315_v15 = vadd.f32 %v8739_v34, %v6533_v55 }
 0x329   : > { %v7236_v7 = vpop.f32.mrf.mxu0 }
 0x32a   : > { %7348 = vst.msk [vmem:[#allocation2 + $0x98] sm:$0xff] %vm290_vm6, %v7315_v15  ;;  %v7313_v38 = vadd.f32 %v7236_v7, %v6531_v54 }
 0x32b   : > { %v8708_v44 = vpop.f32.mrf.mxu1 }
 0x32c   : > { %7346 = vst.msk [vmem:[#allocation2 + $0x88] sm:$0xff] %vm290_vm6, %v7313_v38  ;;  %v6536_v39 = vadd.f32 %v8708_v44, %v11201_v47 }
 0x32d   : > { %v6467_v50 = vpop.f32.mrf.mxu1 }
 0x32e   : > { %v7382_v0 = vld [vmem:[#allocation2 + $0x90] sm:$0xff]  ;;  %v6534_v13 = vadd.f32 %v6467_v50, %v11204_v63 }
 0x32f   : > { %v8279_v3 = vpack.c.bf16 %v7382_v0, %v7382_v0  ;;  %v7380_v10 = vld [vmem:[#allocation2 + $0x80] sm:$0xff]  ;;  %v8709_v14 = vpop.f32.mrf.mxu1 }
 0x330   : > { %v8277_v18 = vpack.c.bf16 %v7380_v10, %v7380_v10  ;;  %v6537_v52 = vadd.f32 %v8709_v14, %v11207_v26 }
 0x331   : > { %7543 = vst.msk [vmem:[%s11253_s25 + $0x48] sm:$0xf] %vm7524_vm10, %v8279_v3  ;;  %v7383_v58 = vld [vmem:[#allocation2 + $0x98] sm:$0xff]  ;;  %v6470_v1 = vpop.f32.mrf.mxu1 }
 0x332   : > { %7541 = vst.msk [vmem:[%s11253_s25 + $0x40] sm:$0xf] %vm7524_vm10, %v8277_v18  ;;  %v8280_v36 = vpack.c.bf16 %v7383_v58, %v7383_v58  ;;  %v6535_v47 = vadd.f32 %v6470_v1, %v11210_v32 }
 0x333   : > { %v7381_v51 = vld [vmem:[#allocation2 + $0x88] sm:$0xff]  ;;  %v8742_v6 = vpop.f32.mrf.mxu0 }
 0x334   : > { %7544 = vst.msk [vmem:[%s11253_s25 + $0x4c] sm:$0xf] %vm7524_vm10, %v8280_v36  ;;  %v8278_v2 = vpack.c.bf16 %v7381_v51, %v7381_v51  ;;  %v7318_v27 = vadd.f32 %v8742_v6, %v6536_v39 }
 0x335   : > { %v7249_v61 = vpop.f32.mrf.mxu0 }
 0x336   : > { %7542 = vst.msk [vmem:[%s11253_s25 + $0x44] sm:$0xf] %vm7524_vm10, %v8278_v2  ;;  %v7316_v56 = vadd.f32 %v7249_v61, %v6534_v13 }
 0x337   : > { %7351 = vst.msk [vmem:[#allocation2 + $0xb0] sm:$0xff] %vm290_vm6, %v7318_v27  ;;  %v8743_v11 = vpop.f32.mrf.mxu0 }
 0x338   : > { %7349 = vst.msk [vmem:[#allocation2 + $0xa0] sm:$0xff] %vm290_vm6, %v7316_v56  ;;  %v7319_v35 = vadd.f32 %v8743_v11, %v6537_v52 }
 0x339   : > { %v7252_v31 = vpop.f32.mrf.mxu0 }
 0x33a   : > { %7352 = vst.msk [vmem:[#allocation2 + $0xb8] sm:$0xff] %vm290_vm6, %v7319_v35  ;;  %v7317_v63 = vadd.f32 %v7252_v31, %v6535_v47 }
 0x33b   : > { %v8712_v62 = vpop.f32.mrf.mxu1 }
 0x33c   : > { %7350 = vst.msk [vmem:[#allocation2 + $0xa8] sm:$0xff] %vm290_vm6, %v7317_v63  ;;  %v6540_v37 = vadd.f32 %v8712_v62, %v11212_v46 }
 0x33d   : > { %v6483_v59 = vpop.f32.mrf.mxu1 }
 0x33e   : > { %v7386_v26 = vld [vmem:[#allocation2 + $0xb0] sm:$0xff]  ;;  %v6538_v28 = vadd.f32 %v6483_v59, %v11214_v8 }
 0x33f   : > { %v8283_v25 = vpack.c.bf16 %v7386_v26, %v7386_v26  ;;  %v7384_v33 = vld [vmem:[#allocation2 + $0xa0] sm:$0xff]  ;;  %v8713_v17 = vpop.f32.mrf.mxu1 }
 0x340   : > { %v8281_v32 = vpack.c.bf16 %v7384_v33, %v7384_v33  ;;  %v6541_v22 = vadd.f32 %v8713_v17, %v11216_v40 }
 0x341   : > { %7547 = vst.msk [vmem:[%s11253_s25 + $0x58] sm:$0xf] %vm7524_vm10, %v8283_v25  ;;  %v7387_v12 = vld [vmem:[#allocation2 + $0xb8] sm:$0xff]  ;;  %v6486_v9 = vpop.f32.mrf.mxu1 }
 0x342   : > { %7545 = vst.msk [vmem:[%s11253_s25 + $0x50] sm:$0xf] %vm7524_vm10, %v8281_v32  ;;  %v8284_v23 = vpack.c.bf16 %v7387_v12, %v7387_v12  ;;  %v6539_v46 = vadd.f32 %v6486_v9, %v11218_v5 }
 0x343   : > { %v7385_v49 = vld [vmem:[#allocation2 + $0xa8] sm:$0xff]  ;;  %v8746_v29 = vpop.f32.mrf.mxu0 }
 0x344   : > { %7548 = vst.msk [vmem:[%s11253_s25 + $0x5c] sm:$0xf] %vm7524_vm10, %v8284_v23  ;;  %v8282_v21 = vpack.c.bf16 %v7385_v49, %v7385_v49  ;;  %v7322_v53 = vadd.f32 %v8746_v29, %v6540_v37 }
 0x345   : > { %v7265_v60 = vpop.f32.mrf.mxu0 }
 0x346   : > { %7546 = vst.msk [vmem:[%s11253_s25 + $0x54] sm:$0xf] %vm7524_vm10, %v8282_v21  ;;  %v7320_v19 = vadd.f32 %v7265_v60, %v6538_v28 }
 0x347   : > { %7355 = vst.msk [vmem:[#allocation2 + $0xd0] sm:$0xff] %vm290_vm6, %v7322_v53  ;;  %v8747_v30 = vpop.f32.mrf.mxu0 }
 0x348   : > { %7353 = vst.msk [vmem:[#allocation2 + $0xc0] sm:$0xff] %vm290_vm6, %v7320_v19  ;;  %v7323_v42 = vadd.f32 %v8747_v30, %v6541_v22 }
 0x349   : > { %v7268_v24 = vpop.f32.mrf.mxu0 }
 0x34a   : > { %7356 = vst.msk [vmem:[#allocation2 + $0xd8] sm:$0xff] %vm290_vm6, %v7323_v42  ;;  %v7321_v8 = vadd.f32 %v7268_v24, %v6539_v46 }
 0x34b   : > { %v8716_v48 = vpop.f32.mrf.mxu1 }
 0x34c   : > { %7354 = vst.msk [vmem:[#allocation2 + $0xc8] sm:$0xff] %vm290_vm6, %v7321_v8  ;;  %v6544_v15 = vadd.f32 %v8716_v48, %v11224_v41 }
 0x34d   : > { %v6499_v4 = vpop.f32.mrf.mxu1 }
 0x34e   : > { %v7390_v40 = vld [vmem:[#allocation2 + $0xd0] sm:$0xff]  ;;  %v6542_v0 = vadd.f32 %v6499_v4, %v11226_v16 }
 0x34f   : > { %v8287_v43 = vpack.c.bf16 %v7390_v40, %v7390_v40  ;;  %v7388_v55 = vld [vmem:[#allocation2 + $0xc0] sm:$0xff]  ;;  %v8717_v34 = vpop.f32.mrf.mxu1 }
 0x350   : > { %v8285_v5 = vpack.c.bf16 %v7388_v55, %v7388_v55  ;;  %v6545_v18 = vadd.f32 %v8717_v34, %v11228_v57 }
 0x351   : > { %7551 = vst.msk [vmem:[%s11253_s25 + $0x68] sm:$0xf] %vm7524_vm10, %v8287_v43  ;;  %v7391_v20 = vld [vmem:[#allocation2 + $0xd8] sm:$0xff]  ;;  %v6502_v3 = vpop.f32.mrf.mxu1 }
 0x352   : > { %7549 = vst.msk [vmem:[%s11253_s25 + $0x60] sm:$0xf] %vm7524_vm10, %v8285_v5  ;;  %v8288_v54 = vpack.c.bf16 %v7391_v20, %v7391_v20  ;;  %v6543_v14 = vadd.f32 %v6502_v3, %v11230_v45 }
 0x353   : > { %v7389_v7 = vld [vmem:[#allocation2 + $0xc8] sm:$0xff]  ;;  %v8750_v38 = vpop.f32.mrf.mxu0 }
 0x354   : > { %7552 = vst.msk [vmem:[%s11253_s25 + $0x6c] sm:$0xf] %vm7524_vm10, %v8288_v54  ;;  %v8286_v44 = vpack.c.bf16 %v7389_v7, %v7389_v7  ;;  %v7326_v50 = vadd.f32 %v8750_v38, %v6544_v15 }
 0x355   : > { %v7281_v10 = vpop.f32.mrf.mxu0 }
 0x356   : > { %7550 = vst.msk [vmem:[%s11253_s25 + $0x64] sm:$0xf] %vm7524_vm10, %v8286_v44  ;;  %v7324_v58 = vadd.f32 %v7281_v10, %v6542_v0 }
 0x357   : > { %7359 = vst.msk [vmem:[#allocation2 + $0xf0] sm:$0xff] %vm290_vm6, %v7326_v50  ;;  %v8751_v41 = vpop.f32.mrf.mxu0 }
 0x358   : > { %7357 = vst.msk [vmem:[#allocation2 + $0xe0] sm:$0xff] %vm290_vm6, %v7324_v58  ;;  %v7327_v36 = vadd.f32 %v8751_v41, %v6545_v18 }
 0x359   : > { %v7284_v16 = vpop.f32.mrf.mxu0 }
 0x35a   : > { %7360 = vst.msk [vmem:[#allocation2 + $0xf8] sm:$0xff] %vm290_vm6, %v7327_v36  ;;  %v7325_v39 = vadd.f32 %v7284_v16, %v6543_v14 }
 0x35c   : > { %7358 = vst.msk [vmem:[#allocation2 + $0xe8] sm:$0xff] %vm290_vm6, %v7325_v39 }
 0x35e   : > { %v7394_v51 = vld [vmem:[#allocation2 + $0xf0] sm:$0xff] }
 0x35f   : > { %v8291_v57 = vpack.c.bf16 %v7394_v51, %v7394_v51  ;;  %v7392_v6 = vld [vmem:[#allocation2 + $0xe0] sm:$0xff] }
 0x360   : > { %v8289_v2 = vpack.c.bf16 %v7392_v6, %v7392_v6 }
 0x361   : > { %7555 = vst.msk [vmem:[%s11253_s25 + $0x78] sm:$0xf] %vm7524_vm10, %v8291_v57  ;;  %v7395_v13 = vld [vmem:[#allocation2 + $0xf8] sm:$0xff] }
 0x362   : > { %7553 = vst.msk [vmem:[%s11253_s25 + $0x70] sm:$0xf] %vm7524_vm10, %v8289_v2  ;;  %v8292_v45 = vpack.c.bf16 %v7395_v13, %v7395_v13 }
 0x363   : > { %v7393_v27 = vld [vmem:[#allocation2 + $0xe8] sm:$0xff] }
 0x364   : > { %7556 = vst.msk [vmem:[%s11253_s25 + $0x7c] sm:$0xf] %vm7524_vm10, %v8292_v45  ;;  %v8290_v1 = vpack.c.bf16 %v7393_v27, %v7393_v27 }
 0x366   : > { %7554 = vst.msk [vmem:[%s11253_s25 + $0x74] sm:$0xf] %vm7524_vm10, %v8290_v1 }
 0x367 PF: > { %s14_s17 = sadd.s32 1, %s8855_s17   ;;  %s11555_s15 = smov %s8851_s16 }
 0x368   : > { %p11_p5 = scmp.ge.s32.totalorder %s14_s17, 4   ;;  %s11556_s16 = smov %s11558_s18 }
 0x36a   :  { %13 = sbr.rel (!%p11_p5) target bundleno = 2 (0x2), region = 95 }

</bundles_post_ra>
